<compile_context>
chip_gen: v7x
topology: tpu7x:2x2x1
jax: 0.10.0
libtpu: 0.0.40
codegen_flags: <defaults>
</compile_context>

<pallas_src>
import jax
import jax.numpy as jnp
from jax.experimental import pallas as pl
from jax.experimental.pallas import tpu as pltpu

# ----------------------------- synthetic config ------------------------------
BATCH = 2
CHANNELS = 3          # CLIP images are RGB
IMAGE_RES = 16
PATCH = 4
GRID = IMAGE_RES // PATCH            # 4
NUM_PATCHES = GRID * GRID            # 16
SEQ = NUM_PATCHES + 1                # 17 (CLS + patches)
PATCH_DIM = CHANNELS * PATCH * PATCH  # 48
WIDTH = 32                           # transformer width
HEADS = 4
HEAD_DIM = WIDTH // HEADS            # 8
LAYERS = 2
EMBED_DIM = 16                       # clip.visual.proj output dim
N_CLASS = 10
DTYPE = jnp.float32


# ------------------------------ in-kernel helpers -----------------------------
def _layernorm(x, g, b, eps=1e-5):
    """Row-wise LayerNorm over last dim with affine (eps like nn.LayerNorm)."""
    x = x.astype(jnp.float32)
    mu = jnp.mean(x, axis=-1, keepdims=True)
    var = jnp.mean(jnp.square(x - mu), axis=-1, keepdims=True)
    return (x - mu) * jax.lax.rsqrt(var + eps) * g.astype(jnp.float32) + b.astype(jnp.float32)


# ------------------------------- fused kernel ---------------------------------
def _clip_fwd_kernel(
    patches_ref,                 # (1, SEQ, PATCH_DIM)  this batch's patches (row 0 zeros)
    cls_pos_ref,                 # (SEQ, WIDTH)         pos emb, row 0 += class embedding
    conv_w_ref,                  # (PATCH_DIM, WIDTH)
    ln_pre_g_ref, ln_pre_b_ref,  # (1, WIDTH)
    ln1_g_ref, ln1_b_ref,        # (LAYERS, 1, WIDTH)
    qkv_w_ref, qkv_b_ref,        # (LAYERS, WIDTH, 3W), (LAYERS, 1, 3W)
    out_w_ref, out_b_ref,        # (LAYERS, WIDTH, WIDTH), (LAYERS, 1, WIDTH)
    ln2_g_ref, ln2_b_ref,        # (LAYERS, 1, WIDTH)
    fc1_w_ref, fc1_b_ref,        # (LAYERS, WIDTH, 4W), (LAYERS, 1, 4W)
    fc2_w_ref, fc2_b_ref,        # (LAYERS, 4W, WIDTH), (LAYERS, 1, WIDTH)
    ln_post_g_ref, ln_post_b_ref,  # (1, WIDTH)
    proj_ref,                    # (WIDTH, EMBED_DIM)
    cls_w_ref, cls_b_ref,        # (EMBED_DIM, N_CLASS), (1, N_CLASS)
    o_ref,                       # (1, 1, N_CLASS)
    attn_scratch,                # VMEM (SEQ, WIDTH) f32
):
    # ---- patch embedding (conv1 with kernel==stride as a matmul) + cls/pos ----
    x = jnp.dot(patches_ref[0].astype(jnp.float32), conv_w_ref[...],
                preferred_element_type=jnp.float32)              # (SEQ, WIDTH)
    x = x + cls_pos_ref[...].astype(jnp.float32)

    # ---- ln_pre ----
    x = _layernorm(x, ln_pre_g_ref[...], ln_pre_b_ref[...])

    scale = 1.0 / (HEAD_DIM ** 0.5)

    # ---- transformer blocks (unrolled; weights indexed with static layer id) ----
    for l in range(LAYERS):
        # --- multi-head self-attention (pre-LN residual) ---
        y = _layernorm(x, ln1_g_ref[l], ln1_b_ref[l])
        qkv = jnp.dot(y, qkv_w_ref[l], preferred_element_type=jnp.float32)
        qkv = qkv + qkv_b_ref[l].astype(jnp.float32)             # (SEQ, 3*WIDTH)

        for h in range(HEADS):
            q = qkv[:, h * HEAD_DIM:(h + 1) * HEAD_DIM] * scale
            k = qkv[:, WIDTH + h * HEAD_DIM: WIDTH + (h + 1) * HEAD_DIM]
            v = qkv[:, 2 * WIDTH + h * HEAD_DIM: 2 * WIDTH + (h + 1) * HEAD_DIM]
            # scores: contract the head dim directly (no k transpose)
            s = jax.lax.dot_general(q, k, (((1,), (1,)), ((), ())),
                                    preferred_element_type=jnp.float32)  # (SEQ, SEQ)
            s = s - jnp.max(s, axis=-1, keepdims=True)
            p = jnp.exp(s)
            p = p * pl.reciprocal(jnp.sum(p, axis=-1, keepdims=True), approx=True)
            attn_scratch[:, h * HEAD_DIM:(h + 1) * HEAD_DIM] = jnp.dot(
                p, v, preferred_element_type=jnp.float32)       # (SEQ, HEAD_DIM)

        attn = attn_scratch[...]                                 # (SEQ, WIDTH)
        attn_out = jnp.dot(attn, out_w_ref[l], preferred_element_type=jnp.float32)
        attn_out = attn_out + out_b_ref[l].astype(jnp.float32)
        x = x + attn_out

        # --- MLP with QuickGELU (pre-LN residual) ---
        y = _layernorm(x, ln2_g_ref[l], ln2_b_ref[l])
        hdn = jnp.dot(y, fc1_w_ref[l], preferred_element_type=jnp.float32)
        hdn = hdn + fc1_b_ref[l].astype(jnp.float32)             # (SEQ, 4*WIDTH)
        hdn = hdn * jax.nn.sigmoid(1.702 * hdn)                  # QuickGELU
        mlp_out = jnp.dot(hdn, fc2_w_ref[l], preferred_element_type=jnp.float32)
        mlp_out = mlp_out + fc2_b_ref[l].astype(jnp.float32)
        x = x + mlp_out

    # ---- ln_post on CLS token, visual proj, cls head ----
    cls = x[0:1, :]                                              # (1, WIDTH)
    cls = _layernorm(cls, ln_post_g_ref[...], ln_post_b_ref[...])
    feat = jnp.dot(cls, proj_ref[...], preferred_element_type=jnp.float32)   # (1, EMBED_DIM)
    logits = jnp.dot(feat, cls_w_ref[...], preferred_element_type=jnp.float32)
    logits = logits + cls_b_ref[...].astype(jnp.float32)         # (1, N_CLASS)
    o_ref[0] = logits.astype(o_ref.dtype)


# ----------------------------- parameter creation ----------------------------
def init_params(key):
    """Synthetic params, stored pre-transposed / pre-stacked in kernel layout."""
    def nrm(k, shape, scale=0.02):
        return (scale * jax.random.normal(k, shape, dtype=jnp.float32)).astype(DTYPE)

    keys = iter(jax.random.split(key, 8 + LAYERS * 8))
    params = {
        # Conv2d(C, WIDTH, kernel=PATCH, stride=PATCH, bias=False) weight, stored
        # flattened+transposed as (C*P*P, WIDTH) so the patch matmul needs no .T.
        "conv_w": nrm(next(keys), (PATCH_DIM, WIDTH)),
        "class_embedding": nrm(next(keys), (WIDTH,)),
        "pos_embedding": nrm(next(keys), (SEQ, WIDTH)),
        "ln_pre_g": jnp.ones((1, WIDTH), DTYPE),
        "ln_pre_b": jnp.zeros((1, WIDTH), DTYPE),
        "ln_post_g": jnp.ones((1, WIDTH), DTYPE),
        "ln_post_b": jnp.zeros((1, WIDTH), DTYPE),
        "proj": nrm(next(keys), (WIDTH, EMBED_DIM)),              # clip.visual.proj
        "cls_w": nrm(next(keys), (EMBED_DIM, N_CLASS)),           # nn.Linear, pre-transposed
        "cls_b": jnp.zeros((1, N_CLASS), DTYPE),
    }

    def stack(shape):  # per-layer weights stacked on a leading LAYERS axis
        return jnp.stack([nrm(next(keys), shape) for _ in range(LAYERS)])

    params.update({
        "ln1_g": jnp.ones((LAYERS, 1, WIDTH), DTYPE),
        "ln1_b": jnp.zeros((LAYERS, 1, WIDTH), DTYPE),
        "qkv_w": stack((WIDTH, 3 * WIDTH)),    # MultiheadAttention in_proj, (in, out)
        "qkv_b": stack((1, 3 * WIDTH)),
        "out_w": stack((WIDTH, WIDTH)),        # out_proj, (in, out)
        "out_b": stack((1, WIDTH)),
        "ln2_g": jnp.ones((LAYERS, 1, WIDTH), DTYPE),
        "ln2_b": jnp.zeros((LAYERS, 1, WIDTH), DTYPE),
        "fc1_w": stack((WIDTH, 4 * WIDTH)),    # mlp c_fc, (in, out)
        "fc1_b": stack((1, 4 * WIDTH)),
        "fc2_w": stack((4 * WIDTH, WIDTH)),    # mlp c_proj, (in, out)
        "fc2_b": stack((1, WIDTH)),
    })
    return params


# --------------------------------- forward -----------------------------------
def clip_image_encoder_forward(image, params):
    # layout: image is NCHW, (B, C, H, W) — same as the PyTorch module input.
    image = image.astype(DTYPE)          # image.type(self.dtype)
    B = image.shape[0]

    # Patch extraction (layout glue only; the conv matmul itself runs in Pallas).
    patches = (image.reshape(B, CHANNELS, GRID, PATCH, GRID, PATCH)
                    .transpose(0, 2, 4, 1, 3, 5)                      # (B, gh, gw, C, P, P)
                    .reshape(B, NUM_PATCHES, PATCH_DIM))
    # Prepend a zero "patch" row for the CLS slot -> (B, SEQ, PATCH_DIM).
    patches = jnp.concatenate(
        [jnp.zeros((B, 1, PATCH_DIM), DTYPE), patches], axis=1)

    # Class embedding folded into position 0 of the positional table (row 0 patch is zero).
    cls_pos = params["pos_embedding"].at[0].add(params["class_embedding"])  # (SEQ, WIDTH)

    def full(shape):
        return pl.BlockSpec(shape, lambda b: (0,) * len(shape))

    in_specs = [
        pl.BlockSpec((1, SEQ, PATCH_DIM), lambda b: (b, 0, 0)),   # per-batch patches
        full((SEQ, WIDTH)),                                        # cls_pos
        full((PATCH_DIM, WIDTH)),                                  # conv_w
        full((1, WIDTH)), full((1, WIDTH)),                        # ln_pre g/b
        full((LAYERS, 1, WIDTH)), full((LAYERS, 1, WIDTH)),        # ln1 g/b
        full((LAYERS, WIDTH, 3 * WIDTH)), full((LAYERS, 1, 3 * WIDTH)),  # qkv w/b
        full((LAYERS, WIDTH, WIDTH)), full((LAYERS, 1, WIDTH)),    # out_proj w/b
        full((LAYERS, 1, WIDTH)), full((LAYERS, 1, WIDTH)),        # ln2 g/b
        full((LAYERS, WIDTH, 4 * WIDTH)), full((LAYERS, 1, 4 * WIDTH)),  # fc1 w/b
        full((LAYERS, 4 * WIDTH, WIDTH)), full((LAYERS, 1, WIDTH)),      # fc2 w/b
        full((1, WIDTH)), full((1, WIDTH)),                        # ln_post g/b
        full((WIDTH, EMBED_DIM)),                                  # proj
        full((EMBED_DIM, N_CLASS)), full((1, N_CLASS)),            # cls head w/b
    ]

    out = pl.pallas_call(
        _clip_fwd_kernel,
        out_shape=jax.ShapeDtypeStruct((B, 1, N_CLASS), DTYPE),
        grid=(B,),
        in_specs=in_specs,
        out_specs=pl.BlockSpec((1, 1, N_CLASS), lambda b: (b, 0, 0)),
        scratch_shapes=[pltpu.VMEM((SEQ, WIDTH), jnp.float32)],
        compiler_params=pltpu.CompilerParams(dimension_semantics=("parallel",)),
    )(
        patches, cls_pos, params["conv_w"],
        params["ln_pre_g"], params["ln_pre_b"],
        params["ln1_g"], params["ln1_b"],
        params["qkv_w"], params["qkv_b"],
        params["out_w"], params["out_b"],
        params["ln2_g"], params["ln2_b"],
        params["fc1_w"], params["fc1_b"],
        params["fc2_w"], params["fc2_b"],
        params["ln_post_g"], params["ln_post_b"],
        params["proj"],
        params["cls_w"], params["cls_b"],
    )
    return out.reshape(B, N_CLASS)


# ----------------------------------- main -------------------------------------
if __name__ == "__main__":
    key = jax.random.PRNGKey(0)
    k_img, k_par = jax.random.split(key)
    image = jax.random.normal(k_img, (BATCH, CHANNELS, IMAGE_RES, IMAGE_RES), dtype=jnp.float32)
    params = init_params(k_par)

    fwd = jax.jit(clip_image_encoder_forward)
    out = fwd(image, params)
    out = jax.block_until_ready(out)

    assert out.shape == (BATCH, N_CLASS)
    assert bool(jnp.all(jnp.isfinite(out)))
    print("KERNEL_OK")
</pallas_src>

<mosaic_0001>
module attributes {stable_mosaic.version = 11 : i64} {
  func.func @_clip_fwd_kernel(%arg0: i32, %arg1: memref<1x17x48xf32, #tpu.memory_space<vmem>>, %arg2: memref<17x32xf32, #tpu.memory_space<vmem>>, %arg3: memref<48x32xf32, #tpu.memory_space<vmem>>, %arg4: memref<1x32xf32, #tpu.memory_space<vmem>>, %arg5: memref<1x32xf32, #tpu.memory_space<vmem>>, %arg6: memref<2x1x32xf32, #tpu.memory_space<vmem>>, %arg7: memref<2x1x32xf32, #tpu.memory_space<vmem>>, %arg8: memref<2x32x96xf32, #tpu.memory_space<vmem>>, %arg9: memref<2x1x96xf32, #tpu.memory_space<vmem>>, %arg10: memref<2x32x32xf32, #tpu.memory_space<vmem>>, %arg11: memref<2x1x32xf32, #tpu.memory_space<vmem>>, %arg12: memref<2x1x32xf32, #tpu.memory_space<vmem>>, %arg13: memref<2x1x32xf32, #tpu.memory_space<vmem>>, %arg14: memref<2x32x128xf32, #tpu.memory_space<vmem>>, %arg15: memref<2x1x128xf32, #tpu.memory_space<vmem>>, %arg16: memref<2x128x32xf32, #tpu.memory_space<vmem>>, %arg17: memref<2x1x32xf32, #tpu.memory_space<vmem>>, %arg18: memref<1x32xf32, #tpu.memory_space<vmem>>, %arg19: memref<1x32xf32, #tpu.memory_space<vmem>>, %arg20: memref<32x16xf32, #tpu.memory_space<vmem>>, %arg21: memref<16x10xf32, #tpu.memory_space<vmem>>, %arg22: memref<1x10xf32, #tpu.memory_space<vmem>>, %arg23: memref<1x1x10xf32, #tpu.memory_space<vmem>>, %arg24: memref<17x32xf32, #tpu.memory_space<vmem>>) attributes {dimension_semantics = [#tpu.dimension_semantics<parallel>], iteration_bounds = array<i64: 2>, scalar_prefetch = 0 : i64, scratch_operands = 1 : i64, tpu.core_type = #tpu.core_type<tc>, window_params = [{transform_indices = @transform_0, window_bounds = array<i64: 1, 17, 48>}, {pipeline_mode = #tpu.pipeline_mode<synchronous>, transform_indices = @transform_1, window_bounds = array<i64: 17, 32>}, {pipeline_mode = #tpu.pipeline_mode<synchronous>, transform_indices = @transform_2, window_bounds = array<i64: 48, 32>}, {pipeline_mode = #tpu.pipeline_mode<synchronous>, transform_indices = @transform_3, window_bounds = array<i64: 1, 32>}, {pipeline_mode = #tpu.pipeline_mode<synchronous>, transform_indices = @transform_4, window_bounds = array<i64: 1, 32>}, {pipeline_mode = #tpu.pipeline_mode<synchronous>, transform_indices = @transform_5, window_bounds = array<i64: 2, 1, 32>}, {pipeline_mode = #tpu.pipeline_mode<synchronous>, transform_indices = @transform_6, window_bounds = array<i64: 2, 1, 32>}, {pipeline_mode = #tpu.pipeline_mode<synchronous>, transform_indices = @transform_7, window_bounds = array<i64: 2, 32, 96>}, {pipeline_mode = #tpu.pipeline_mode<synchronous>, transform_indices = @transform_8, window_bounds = array<i64: 2, 1, 96>}, {pipeline_mode = #tpu.pipeline_mode<synchronous>, transform_indices = @transform_9, window_bounds = array<i64: 2, 32, 32>}, {pipeline_mode = #tpu.pipeline_mode<synchronous>, transform_indices = @transform_10, window_bounds = array<i64: 2, 1, 32>}, {pipeline_mode = #tpu.pipeline_mode<synchronous>, transform_indices = @transform_11, window_bounds = array<i64: 2, 1, 32>}, {pipeline_mode = #tpu.pipeline_mode<synchronous>, transform_indices = @transform_12, window_bounds = array<i64: 2, 1, 32>}, {pipeline_mode = #tpu.pipeline_mode<synchronous>, transform_indices = @transform_13, window_bounds = array<i64: 2, 32, 128>}, {pipeline_mode = #tpu.pipeline_mode<synchronous>, transform_indices = @transform_14, window_bounds = array<i64: 2, 1, 128>}, {pipeline_mode = #tpu.pipeline_mode<synchronous>, transform_indices = @transform_15, window_bounds = array<i64: 2, 128, 32>}, {pipeline_mode = #tpu.pipeline_mode<synchronous>, transform_indices = @transform_16, window_bounds = array<i64: 2, 1, 32>}, {pipeline_mode = #tpu.pipeline_mode<synchronous>, transform_indices = @transform_17, window_bounds = array<i64: 1, 32>}, {pipeline_mode = #tpu.pipeline_mode<synchronous>, transform_indices = @transform_18, window_bounds = array<i64: 1, 32>}, {pipeline_mode = #tpu.pipeline_mode<synchronous>, transform_indices = @transform_19, window_bounds = array<i64: 32, 16>}, {pipeline_mode = #tpu.pipeline_mode<synchronous>, transform_indices = @transform_20, window_bounds = array<i64: 16, 10>}, {pipeline_mode = #tpu.pipeline_mode<synchronous>, transform_indices = @transform_21, window_bounds = array<i64: 1, 10>}, {transform_indices = @transform_22, window_bounds = array<i64: 1, 1, 10>}]} {
    %c0 = arith.constant 0 : index
    %c0_0 = arith.constant 0 : index
    %c0_1 = arith.constant 0 : index
    %0 = vector.load %arg1[%c0, %c0_0, %c0_1] : memref<1x17x48xf32, #tpu.memory_space<vmem>>, vector<1x17x48xf32>
    %1 = vector.shape_cast %0 : vector<1x17x48xf32> to vector<17x48xf32>
    %c0_2 = arith.constant 0 : index
    %c0_3 = arith.constant 0 : index
    %2 = vector.load %arg3[%c0_2, %c0_3] : memref<48x32xf32, #tpu.memory_space<vmem>>, vector<48x32xf32>
    %cst = arith.constant dense<0.000000e+00> : vector<17x32xf32>
    %3 = tpu.matmul %1, %2, %cst {dimension_numbers = #tpu.dot_dimension_numbers<[1], [0], [0], [1], [0, 0, 1, 1], [], []>} : vector<17x48xf32>, vector<48x32xf32>, vector<17x32xf32> -> vector<17x32xf32>
    %c0_4 = arith.constant 0 : index
    %c0_5 = arith.constant 0 : index
    %4 = vector.load %arg2[%c0_4, %c0_5] : memref<17x32xf32, #tpu.memory_space<vmem>>, vector<17x32xf32>
    %5 = arith.addf %3, %4 : vector<17x32xf32>
    %c0_6 = arith.constant 0 : index
    %c0_7 = arith.constant 0 : index
    %6 = vector.load %arg4[%c0_6, %c0_7] : memref<1x32xf32, #tpu.memory_space<vmem>>, vector<1x32xf32>
    %c0_8 = arith.constant 0 : index
    %c0_9 = arith.constant 0 : index
    %7 = vector.load %arg5[%c0_8, %c0_9] : memref<1x32xf32, #tpu.memory_space<vmem>>, vector<1x32xf32>
    %cst_10 = arith.constant dense<0.000000e+00> : vector<17xf32>
    %8 = vector.multi_reduction <add>, %5, %cst_10 [1] : vector<17x32xf32> to vector<17xf32>
    %9 = vector.shape_cast %8 : vector<17xf32> to vector<17x1xf32>
    %cst_11 = arith.constant 3.200000e+01 : f32
    %10 = vector.broadcast %cst_11 : f32 to vector<17x1xf32>
    %11 = arith.divf %9, %10 : vector<17x1xf32>
    %12 = vector.broadcast %11 : vector<17x1xf32> to vector<17x32xf32>
    %13 = arith.subf %5, %12 : vector<17x32xf32>
    %14 = arith.mulf %13, %13 : vector<17x32xf32>
    %cst_12 = arith.constant dense<0.000000e+00> : vector<17xf32>
    %15 = vector.multi_reduction <add>, %14, %cst_12 [1] : vector<17x32xf32> to vector<17xf32>
    %16 = vector.shape_cast %15 : vector<17xf32> to vector<17x1xf32>
    %cst_13 = arith.constant 3.200000e+01 : f32
    %17 = vector.broadcast %cst_13 : f32 to vector<17x1xf32>
    %18 = arith.divf %16, %17 : vector<17x1xf32>
    %19 = vector.broadcast %11 : vector<17x1xf32> to vector<17x32xf32>
    %20 = arith.subf %5, %19 : vector<17x32xf32>
    %cst_14 = arith.constant 9.99999974E-6 : f32
    %21 = vector.broadcast %cst_14 : f32 to vector<17x1xf32>
    %22 = arith.addf %18, %21 : vector<17x1xf32>
    %23 = math.rsqrt %22 : vector<17x1xf32>
    %24 = vector.broadcast %23 : vector<17x1xf32> to vector<17x32xf32>
    %25 = arith.mulf %20, %24 : vector<17x32xf32>
    %26 = vector.broadcast %6 : vector<1x32xf32> to vector<17x32xf32>
    %27 = arith.mulf %25, %26 : vector<17x32xf32>
    %28 = vector.broadcast %7 : vector<1x32xf32> to vector<17x32xf32>
    %29 = arith.addf %27, %28 : vector<17x32xf32>
    %c0_15 = arith.constant 0 : index
    %c0_16 = arith.constant 0 : index
    %c0_17 = arith.constant 0 : index
    %30 = vector.load %arg6[%c0_15, %c0_16, %c0_17] : memref<2x1x32xf32, #tpu.memory_space<vmem>>, vector<1x1x32xf32>
    %31 = vector.shape_cast %30 : vector<1x1x32xf32> to vector<1x32xf32>
    %c0_18 = arith.constant 0 : index
    %c0_19 = arith.constant 0 : index
    %c0_20 = arith.constant 0 : index
    %32 = vector.load %arg7[%c0_18, %c0_19, %c0_20] : memref<2x1x32xf32, #tpu.memory_space<vmem>>, vector<1x1x32xf32>
    %33 = vector.shape_cast %32 : vector<1x1x32xf32> to vector<1x32xf32>
    %cst_21 = arith.constant dense<0.000000e+00> : vector<17xf32>
    %34 = vector.multi_reduction <add>, %29, %cst_21 [1] : vector<17x32xf32> to vector<17xf32>
    %35 = vector.shape_cast %34 : vector<17xf32> to vector<17x1xf32>
    %cst_22 = arith.constant 3.200000e+01 : f32
    %36 = vector.broadcast %cst_22 : f32 to vector<17x1xf32>
    %37 = arith.divf %35, %36 : vector<17x1xf32>
    %38 = vector.broadcast %37 : vector<17x1xf32> to vector<17x32xf32>
    %39 = arith.subf %29, %38 : vector<17x32xf32>
    %40 = arith.mulf %39, %39 : vector<17x32xf32>
    %cst_23 = arith.constant dense<0.000000e+00> : vector<17xf32>
    %41 = vector.multi_reduction <add>, %40, %cst_23 [1] : vector<17x32xf32> to vector<17xf32>
    %42 = vector.shape_cast %41 : vector<17xf32> to vector<17x1xf32>
    %cst_24 = arith.constant 3.200000e+01 : f32
    %43 = vector.broadcast %cst_24 : f32 to vector<17x1xf32>
    %44 = arith.divf %42, %43 : vector<17x1xf32>
    %45 = vector.broadcast %37 : vector<17x1xf32> to vector<17x32xf32>
    %46 = arith.subf %29, %45 : vector<17x32xf32>
    %cst_25 = arith.constant 9.99999974E-6 : f32
    %47 = vector.broadcast %cst_25 : f32 to vector<17x1xf32>
    %48 = arith.addf %44, %47 : vector<17x1xf32>
    %49 = math.rsqrt %48 : vector<17x1xf32>
    %50 = vector.broadcast %49 : vector<17x1xf32> to vector<17x32xf32>
    %51 = arith.mulf %46, %50 : vector<17x32xf32>
    %52 = vector.broadcast %31 : vector<1x32xf32> to vector<17x32xf32>
    %53 = arith.mulf %51, %52 : vector<17x32xf32>
    %54 = vector.broadcast %33 : vector<1x32xf32> to vector<17x32xf32>
    %55 = arith.addf %53, %54 : vector<17x32xf32>
    %c0_26 = arith.constant 0 : index
    %c0_27 = arith.constant 0 : index
    %c0_28 = arith.constant 0 : index
    %56 = vector.load %arg8[%c0_26, %c0_27, %c0_28] : memref<2x32x96xf32, #tpu.memory_space<vmem>>, vector<1x32x96xf32>
    %57 = vector.shape_cast %56 : vector<1x32x96xf32> to vector<32x96xf32>
    %cst_29 = arith.constant dense<0.000000e+00> : vector<17x96xf32>
    %58 = tpu.matmul %55, %57, %cst_29 {dimension_numbers = #tpu.dot_dimension_numbers<[1], [0], [0], [1], [0, 0, 1, 1], [], []>} : vector<17x32xf32>, vector<32x96xf32>, vector<17x96xf32> -> vector<17x96xf32>
    %c0_30 = arith.constant 0 : index
    %c0_31 = arith.constant 0 : index
    %c0_32 = arith.constant 0 : index
    %59 = vector.load %arg9[%c0_30, %c0_31, %c0_32] : memref<2x1x96xf32, #tpu.memory_space<vmem>>, vector<1x1x96xf32>
    %60 = vector.shape_cast %59 : vector<1x1x96xf32> to vector<1x96xf32>
    %61 = vector.broadcast %60 : vector<1x96xf32> to vector<17x96xf32>
    %62 = arith.addf %58, %61 : vector<17x96xf32>
    %63 = vector.extract_strided_slice %62 {offsets = [0, 0], sizes = [17, 8], strides = [1, 1]} : vector<17x96xf32> to vector<17x8xf32>
    %cst_33 = arith.constant 0.353553385 : f32
    %64 = vector.broadcast %cst_33 : f32 to vector<17x8xf32>
    %65 = arith.mulf %63, %64 : vector<17x8xf32>
    %66 = vector.extract_strided_slice %62 {offsets = [0, 32], sizes = [17, 8], strides = [1, 1]} : vector<17x96xf32> to vector<17x8xf32>
    %67 = vector.extract_strided_slice %62 {offsets = [0, 64], sizes = [17, 8], strides = [1, 1]} : vector<17x96xf32> to vector<17x8xf32>
    %cst_34 = arith.constant dense<0.000000e+00> : vector<17x17xf32>
    %68 = tpu.matmul %65, %66, %cst_34 {dimension_numbers = #tpu.dot_dimension_numbers<[1], [1], [0], [0], [0, 0, 1, 0], [], []>} : vector<17x8xf32>, vector<17x8xf32>, vector<17x17xf32> -> vector<17x17xf32>
    %cst_35 = arith.constant dense<0xFF800000> : vector<17xf32>
    %69 = vector.multi_reduction <maximumf>, %68, %cst_35 [1] : vector<17x17xf32> to vector<17xf32>
    %70 = vector.shape_cast %69 : vector<17xf32> to vector<17x1xf32>
    %71 = vector.broadcast %70 : vector<17x1xf32> to vector<17x17xf32>
    %72 = arith.subf %68, %71 : vector<17x17xf32>
    %73 = math.exp %72 : vector<17x17xf32>
    %cst_36 = arith.constant dense<0.000000e+00> : vector<17xf32>
    %74 = vector.multi_reduction <add>, %73, %cst_36 [1] : vector<17x17xf32> to vector<17xf32>
    %75 = vector.shape_cast %74 : vector<17xf32> to vector<17x1xf32>
    %76 = tpu.reciprocal %75 {approx = true} : vector<17x1xf32> -> vector<17x1xf32>
    %77 = vector.broadcast %76 : vector<17x1xf32> to vector<17x17xf32>
    %78 = arith.mulf %73, %77 : vector<17x17xf32>
    %cst_37 = arith.constant dense<0.000000e+00> : vector<17x8xf32>
    %79 = tpu.matmul %78, %67, %cst_37 {dimension_numbers = #tpu.dot_dimension_numbers<[1], [0], [0], [1], [0, 0, 1, 1], [], []>} : vector<17x17xf32>, vector<17x8xf32>, vector<17x8xf32> -> vector<17x8xf32>
    %c0_38 = arith.constant 0 : index
    %c0_39 = arith.constant 0 : index
    %80 = vector.load %arg24[%c0_38, %c0_39] : memref<17x32xf32, #tpu.memory_space<vmem>>, vector<17x8xf32>
    tpu.vector_store %arg24[%c0_38, %c0_39], %79 {strides = array<i32>} : memref<17x32xf32, #tpu.memory_space<vmem>>, vector<17x8xf32>,
    %81 = vector.extract_strided_slice %62 {offsets = [0, 8], sizes = [17, 8], strides = [1, 1]} : vector<17x96xf32> to vector<17x8xf32>
    %cst_40 = arith.constant 0.353553385 : f32
    %82 = vector.broadcast %cst_40 : f32 to vector<17x8xf32>
    %83 = arith.mulf %81, %82 : vector<17x8xf32>
    %84 = vector.extract_strided_slice %62 {offsets = [0, 40], sizes = [17, 8], strides = [1, 1]} : vector<17x96xf32> to vector<17x8xf32>
    %85 = vector.extract_strided_slice %62 {offsets = [0, 72], sizes = [17, 8], strides = [1, 1]} : vector<17x96xf32> to vector<17x8xf32>
    %cst_41 = arith.constant dense<0.000000e+00> : vector<17x17xf32>
    %86 = tpu.matmul %83, %84, %cst_41 {dimension_numbers = #tpu.dot_dimension_numbers<[1], [1], [0], [0], [0, 0, 1, 0], [], []>} : vector<17x8xf32>, vector<17x8xf32>, vector<17x17xf32> -> vector<17x17xf32>
    %cst_42 = arith.constant dense<0xFF800000> : vector<17xf32>
    %87 = vector.multi_reduction <maximumf>, %86, %cst_42 [1] : vector<17x17xf32> to vector<17xf32>
    %88 = vector.shape_cast %87 : vector<17xf32> to vector<17x1xf32>
    %89 = vector.broadcast %88 : vector<17x1xf32> to vector<17x17xf32>
    %90 = arith.subf %86, %89 : vector<17x17xf32>
    %91 = math.exp %90 : vector<17x17xf32>
    %cst_43 = arith.constant dense<0.000000e+00> : vector<17xf32>
    %92 = vector.multi_reduction <add>, %91, %cst_43 [1] : vector<17x17xf32> to vector<17xf32>
    %93 = vector.shape_cast %92 : vector<17xf32> to vector<17x1xf32>
    %94 = tpu.reciprocal %93 {approx = true} : vector<17x1xf32> -> vector<17x1xf32>
    %95 = vector.broadcast %94 : vector<17x1xf32> to vector<17x17xf32>
    %96 = arith.mulf %91, %95 : vector<17x17xf32>
    %cst_44 = arith.constant dense<0.000000e+00> : vector<17x8xf32>
    %97 = tpu.matmul %96, %85, %cst_44 {dimension_numbers = #tpu.dot_dimension_numbers<[1], [0], [0], [1], [0, 0, 1, 1], [], []>} : vector<17x17xf32>, vector<17x8xf32>, vector<17x8xf32> -> vector<17x8xf32>
    %c0_45 = arith.constant 0 : index
    %c8 = arith.constant 8 : index
    %98 = vector.load %arg24[%c0_45, %c8] : memref<17x32xf32, #tpu.memory_space<vmem>>, vector<17x8xf32>
    tpu.vector_store %arg24[%c0_45, %c8], %97 {strides = array<i32>} : memref<17x32xf32, #tpu.memory_space<vmem>>, vector<17x8xf32>,
    %99 = vector.extract_strided_slice %62 {offsets = [0, 16], sizes = [17, 8], strides = [1, 1]} : vector<17x96xf32> to vector<17x8xf32>
    %cst_46 = arith.constant 0.353553385 : f32
    %100 = vector.broadcast %cst_46 : f32 to vector<17x8xf32>
    %101 = arith.mulf %99, %100 : vector<17x8xf32>
    %102 = vector.extract_strided_slice %62 {offsets = [0, 48], sizes = [17, 8], strides = [1, 1]} : vector<17x96xf32> to vector<17x8xf32>
    %103 = vector.extract_strided_slice %62 {offsets = [0, 80], sizes = [17, 8], strides = [1, 1]} : vector<17x96xf32> to vector<17x8xf32>
    %cst_47 = arith.constant dense<0.000000e+00> : vector<17x17xf32>
    %104 = tpu.matmul %101, %102, %cst_47 {dimension_numbers = #tpu.dot_dimension_numbers<[1], [1], [0], [0], [0, 0, 1, 0], [], []>} : vector<17x8xf32>, vector<17x8xf32>, vector<17x17xf32> -> vector<17x17xf32>
    %cst_48 = arith.constant dense<0xFF800000> : vector<17xf32>
    %105 = vector.multi_reduction <maximumf>, %104, %cst_48 [1] : vector<17x17xf32> to vector<17xf32>
    %106 = vector.shape_cast %105 : vector<17xf32> to vector<17x1xf32>
    %107 = vector.broadcast %106 : vector<17x1xf32> to vector<17x17xf32>
    %108 = arith.subf %104, %107 : vector<17x17xf32>
    %109 = math.exp %108 : vector<17x17xf32>
    %cst_49 = arith.constant dense<0.000000e+00> : vector<17xf32>
    %110 = vector.multi_reduction <add>, %109, %cst_49 [1] : vector<17x17xf32> to vector<17xf32>
    %111 = vector.shape_cast %110 : vector<17xf32> to vector<17x1xf32>
    %112 = tpu.reciprocal %111 {approx = true} : vector<17x1xf32> -> vector<17x1xf32>
    %113 = vector.broadcast %112 : vector<17x1xf32> to vector<17x17xf32>
    %114 = arith.mulf %109, %113 : vector<17x17xf32>
    %cst_50 = arith.constant dense<0.000000e+00> : vector<17x8xf32>
    %115 = tpu.matmul %114, %103, %cst_50 {dimension_numbers = #tpu.dot_dimension_numbers<[1], [0], [0], [1], [0, 0, 1, 1], [], []>} : vector<17x17xf32>, vector<17x8xf32>, vector<17x8xf32> -> vector<17x8xf32>
    %c0_51 = arith.constant 0 : index
    %c16 = arith.constant 16 : index
    %116 = vector.load %arg24[%c0_51, %c16] : memref<17x32xf32, #tpu.memory_space<vmem>>, vector<17x8xf32>
    tpu.vector_store %arg24[%c0_51, %c16], %115 {strides = array<i32>} : memref<17x32xf32, #tpu.memory_space<vmem>>, vector<17x8xf32>,
    %117 = vector.extract_strided_slice %62 {offsets = [0, 24], sizes = [17, 8], strides = [1, 1]} : vector<17x96xf32> to vector<17x8xf32>
    %cst_52 = arith.constant 0.353553385 : f32
    %118 = vector.broadcast %cst_52 : f32 to vector<17x8xf32>
    %119 = arith.mulf %117, %118 : vector<17x8xf32>
    %120 = vector.extract_strided_slice %62 {offsets = [0, 56], sizes = [17, 8], strides = [1, 1]} : vector<17x96xf32> to vector<17x8xf32>
    %121 = vector.extract_strided_slice %62 {offsets = [0, 88], sizes = [17, 8], strides = [1, 1]} : vector<17x96xf32> to vector<17x8xf32>
    %cst_53 = arith.constant dense<0.000000e+00> : vector<17x17xf32>
    %122 = tpu.matmul %119, %120, %cst_53 {dimension_numbers = #tpu.dot_dimension_numbers<[1], [1], [0], [0], [0, 0, 1, 0], [], []>} : vector<17x8xf32>, vector<17x8xf32>, vector<17x17xf32> -> vector<17x17xf32>
    %cst_54 = arith.constant dense<0xFF800000> : vector<17xf32>
    %123 = vector.multi_reduction <maximumf>, %122, %cst_54 [1] : vector<17x17xf32> to vector<17xf32>
    %124 = vector.shape_cast %123 : vector<17xf32> to vector<17x1xf32>
    %125 = vector.broadcast %124 : vector<17x1xf32> to vector<17x17xf32>
    %126 = arith.subf %122, %125 : vector<17x17xf32>
    %127 = math.exp %126 : vector<17x17xf32>
    %cst_55 = arith.constant dense<0.000000e+00> : vector<17xf32>
    %128 = vector.multi_reduction <add>, %127, %cst_55 [1] : vector<17x17xf32> to vector<17xf32>
    %129 = vector.shape_cast %128 : vector<17xf32> to vector<17x1xf32>
    %130 = tpu.reciprocal %129 {approx = true} : vector<17x1xf32> -> vector<17x1xf32>
    %131 = vector.broadcast %130 : vector<17x1xf32> to vector<17x17xf32>
    %132 = arith.mulf %127, %131 : vector<17x17xf32>
    %cst_56 = arith.constant dense<0.000000e+00> : vector<17x8xf32>
    %133 = tpu.matmul %132, %121, %cst_56 {dimension_numbers = #tpu.dot_dimension_numbers<[1], [0], [0], [1], [0, 0, 1, 1], [], []>} : vector<17x17xf32>, vector<17x8xf32>, vector<17x8xf32> -> vector<17x8xf32>
    %c0_57 = arith.constant 0 : index
    %c24 = arith.constant 24 : index
    %134 = vector.load %arg24[%c0_57, %c24] : memref<17x32xf32, #tpu.memory_space<vmem>>, vector<17x8xf32>
    tpu.vector_store %arg24[%c0_57, %c24], %133 {strides = array<i32>} : memref<17x32xf32, #tpu.memory_space<vmem>>, vector<17x8xf32>,
    %c0_58 = arith.constant 0 : index
    %c0_59 = arith.constant 0 : index
    %135 = vector.load %arg24[%c0_58, %c0_59] : memref<17x32xf32, #tpu.memory_space<vmem>>, vector<17x32xf32>
    %c0_60 = arith.constant 0 : index
    %c0_61 = arith.constant 0 : index
    %c0_62 = arith.constant 0 : index
    %136 = vector.load %arg10[%c0_60, %c0_61, %c0_62] : memref<2x32x32xf32, #tpu.memory_space<vmem>>, vector<1x32x32xf32>
    %137 = vector.shape_cast %136 : vector<1x32x32xf32> to vector<32x32xf32>
    %cst_63 = arith.constant dense<0.000000e+00> : vector<17x32xf32>
    %138 = tpu.matmul %135, %137, %cst_63 {dimension_numbers = #tpu.dot_dimension_numbers<[1], [0], [0], [1], [0, 0, 1, 1], [], []>} : vector<17x32xf32>, vector<32x32xf32>, vector<17x32xf32> -> vector<17x32xf32>
    %c0_64 = arith.constant 0 : index
    %c0_65 = arith.constant 0 : index
    %c0_66 = arith.constant 0 : index
    %139 = vector.load %arg11[%c0_64, %c0_65, %c0_66] : memref<2x1x32xf32, #tpu.memory_space<vmem>>, vector<1x1x32xf32>
    %140 = vector.shape_cast %139 : vector<1x1x32xf32> to vector<1x32xf32>
    %141 = vector.broadcast %140 : vector<1x32xf32> to vector<17x32xf32>
    %142 = arith.addf %138, %141 : vector<17x32xf32>
    %143 = arith.addf %29, %142 : vector<17x32xf32>
    %c0_67 = arith.constant 0 : index
    %c0_68 = arith.constant 0 : index
    %c0_69 = arith.constant 0 : index
    %144 = vector.load %arg12[%c0_67, %c0_68, %c0_69] : memref<2x1x32xf32, #tpu.memory_space<vmem>>, vector<1x1x32xf32>
    %145 = vector.shape_cast %144 : vector<1x1x32xf32> to vector<1x32xf32>
    %c0_70 = arith.constant 0 : index
    %c0_71 = arith.constant 0 : index
    %c0_72 = arith.constant 0 : index
    %146 = vector.load %arg13[%c0_70, %c0_71, %c0_72] : memref<2x1x32xf32, #tpu.memory_space<vmem>>, vector<1x1x32xf32>
    %147 = vector.shape_cast %146 : vector<1x1x32xf32> to vector<1x32xf32>
    %cst_73 = arith.constant dense<0.000000e+00> : vector<17xf32>
    %148 = vector.multi_reduction <add>, %143, %cst_73 [1] : vector<17x32xf32> to vector<17xf32>
    %149 = vector.shape_cast %148 : vector<17xf32> to vector<17x1xf32>
    %cst_74 = arith.constant 3.200000e+01 : f32
    %150 = vector.broadcast %cst_74 : f32 to vector<17x1xf32>
    %151 = arith.divf %149, %150 : vector<17x1xf32>
    %152 = vector.broadcast %151 : vector<17x1xf32> to vector<17x32xf32>
    %153 = arith.subf %143, %152 : vector<17x32xf32>
    %154 = arith.mulf %153, %153 : vector<17x32xf32>
    %cst_75 = arith.constant dense<0.000000e+00> : vector<17xf32>
    %155 = vector.multi_reduction <add>, %154, %cst_75 [1] : vector<17x32xf32> to vector<17xf32>
    %156 = vector.shape_cast %155 : vector<17xf32> to vector<17x1xf32>
    %cst_76 = arith.constant 3.200000e+01 : f32
    %157 = vector.broadcast %cst_76 : f32 to vector<17x1xf32>
    %158 = arith.divf %156, %157 : vector<17x1xf32>
    %159 = vector.broadcast %151 : vector<17x1xf32> to vector<17x32xf32>
    %160 = arith.subf %143, %159 : vector<17x32xf32>
    %cst_77 = arith.constant 9.99999974E-6 : f32
    %161 = vector.broadcast %cst_77 : f32 to vector<17x1xf32>
    %162 = arith.addf %158, %161 : vector<17x1xf32>
    %163 = math.rsqrt %162 : vector<17x1xf32>
    %164 = vector.broadcast %163 : vector<17x1xf32> to vector<17x32xf32>
    %165 = arith.mulf %160, %164 : vector<17x32xf32>
    %166 = vector.broadcast %145 : vector<1x32xf32> to vector<17x32xf32>
    %167 = arith.mulf %165, %166 : vector<17x32xf32>
    %168 = vector.broadcast %147 : vector<1x32xf32> to vector<17x32xf32>
    %169 = arith.addf %167, %168 : vector<17x32xf32>
    %c0_78 = arith.constant 0 : index
    %c0_79 = arith.constant 0 : index
    %c0_80 = arith.constant 0 : index
    %170 = vector.load %arg14[%c0_78, %c0_79, %c0_80] : memref<2x32x128xf32, #tpu.memory_space<vmem>>, vector<1x32x128xf32>
    %171 = vector.shape_cast %170 : vector<1x32x128xf32> to vector<32x128xf32>
    %cst_81 = arith.constant dense<0.000000e+00> : vector<17x128xf32>
    %172 = tpu.matmul %169, %171, %cst_81 {dimension_numbers = #tpu.dot_dimension_numbers<[1], [0], [0], [1], [0, 0, 1, 1], [], []>} : vector<17x32xf32>, vector<32x128xf32>, vector<17x128xf32> -> vector<17x128xf32>
    %c0_82 = arith.constant 0 : index
    %c0_83 = arith.constant 0 : index
    %c0_84 = arith.constant 0 : index
    %173 = vector.load %arg15[%c0_82, %c0_83, %c0_84] : memref<2x1x128xf32, #tpu.memory_space<vmem>>, vector<1x1x128xf32>
    %174 = vector.shape_cast %173 : vector<1x1x128xf32> to vector<1x128xf32>
    %175 = vector.broadcast %174 : vector<1x128xf32> to vector<17x128xf32>
    %176 = arith.addf %172, %175 : vector<17x128xf32>
    %cst_85 = arith.constant 1.702000e+00 : f32
    %177 = vector.broadcast %cst_85 : f32 to vector<17x128xf32>
    %178 = arith.mulf %177, %176 : vector<17x128xf32>
    %179 = arith.negf %178 : vector<17x128xf32>
    %180 = math.exp %179 : vector<17x128xf32>
    %cst_86 = arith.constant 1.000000e+00 : f32
    %181 = vector.broadcast %cst_86 : f32 to vector<17x128xf32>
    %182 = arith.addf %181, %180 : vector<17x128xf32>
    %183 = arith.divf %181, %182 : vector<17x128xf32>
    %184 = arith.mulf %176, %183 : vector<17x128xf32>
    %c0_87 = arith.constant 0 : index
    %c0_88 = arith.constant 0 : index
    %c0_89 = arith.constant 0 : index
    %185 = vector.load %arg16[%c0_87, %c0_88, %c0_89] : memref<2x128x32xf32, #tpu.memory_space<vmem>>, vector<1x128x32xf32>
    %186 = vector.shape_cast %185 : vector<1x128x32xf32> to vector<128x32xf32>
    %cst_90 = arith.constant dense<0.000000e+00> : vector<17x32xf32>
    %187 = tpu.matmul %184, %186, %cst_90 {dimension_numbers = #tpu.dot_dimension_numbers<[1], [0], [0], [1], [0, 0, 1, 1], [], []>} : vector<17x128xf32>, vector<128x32xf32>, vector<17x32xf32> -> vector<17x32xf32>
    %c0_91 = arith.constant 0 : index
    %c0_92 = arith.constant 0 : index
    %c0_93 = arith.constant 0 : index
    %188 = vector.load %arg17[%c0_91, %c0_92, %c0_93] : memref<2x1x32xf32, #tpu.memory_space<vmem>>, vector<1x1x32xf32>
    %189 = vector.shape_cast %188 : vector<1x1x32xf32> to vector<1x32xf32>
    %190 = vector.broadcast %189 : vector<1x32xf32> to vector<17x32xf32>
    %191 = arith.addf %187, %190 : vector<17x32xf32>
    %192 = arith.addf %143, %191 : vector<17x32xf32>
    %c1 = arith.constant 1 : index
    %c0_94 = arith.constant 0 : index
    %c0_95 = arith.constant 0 : index
    %193 = vector.load %arg6[%c1, %c0_94, %c0_95] : memref<2x1x32xf32, #tpu.memory_space<vmem>>, vector<1x1x32xf32>
    %194 = vector.shape_cast %193 : vector<1x1x32xf32> to vector<1x32xf32>
    %c1_96 = arith.constant 1 : index
    %c0_97 = arith.constant 0 : index
    %c0_98 = arith.constant 0 : index
    %195 = vector.load %arg7[%c1_96, %c0_97, %c0_98] : memref<2x1x32xf32, #tpu.memory_space<vmem>>, vector<1x1x32xf32>
    %196 = vector.shape_cast %195 : vector<1x1x32xf32> to vector<1x32xf32>
    %cst_99 = arith.constant dense<0.000000e+00> : vector<17xf32>
    %197 = vector.multi_reduction <add>, %192, %cst_99 [1] : vector<17x32xf32> to vector<17xf32>
    %198 = vector.shape_cast %197 : vector<17xf32> to vector<17x1xf32>
    %cst_100 = arith.constant 3.200000e+01 : f32
    %199 = vector.broadcast %cst_100 : f32 to vector<17x1xf32>
    %200 = arith.divf %198, %199 : vector<17x1xf32>
    %201 = vector.broadcast %200 : vector<17x1xf32> to vector<17x32xf32>
    %202 = arith.subf %192, %201 : vector<17x32xf32>
    %203 = arith.mulf %202, %202 : vector<17x32xf32>
    %cst_101 = arith.constant dense<0.000000e+00> : vector<17xf32>
    %204 = vector.multi_reduction <add>, %203, %cst_101 [1] : vector<17x32xf32> to vector<17xf32>
    %205 = vector.shape_cast %204 : vector<17xf32> to vector<17x1xf32>
    %cst_102 = arith.constant 3.200000e+01 : f32
    %206 = vector.broadcast %cst_102 : f32 to vector<17x1xf32>
    %207 = arith.divf %205, %206 : vector<17x1xf32>
    %208 = vector.broadcast %200 : vector<17x1xf32> to vector<17x32xf32>
    %209 = arith.subf %192, %208 : vector<17x32xf32>
    %cst_103 = arith.constant 9.99999974E-6 : f32
    %210 = vector.broadcast %cst_103 : f32 to vector<17x1xf32>
    %211 = arith.addf %207, %210 : vector<17x1xf32>
    %212 = math.rsqrt %211 : vector<17x1xf32>
    %213 = vector.broadcast %212 : vector<17x1xf32> to vector<17x32xf32>
    %214 = arith.mulf %209, %213 : vector<17x32xf32>
    %215 = vector.broadcast %194 : vector<1x32xf32> to vector<17x32xf32>
    %216 = arith.mulf %214, %215 : vector<17x32xf32>
    %217 = vector.broadcast %196 : vector<1x32xf32> to vector<17x32xf32>
    %218 = arith.addf %216, %217 : vector<17x32xf32>
    %c1_104 = arith.constant 1 : index
    %c0_105 = arith.constant 0 : index
    %c0_106 = arith.constant 0 : index
    %219 = vector.load %arg8[%c1_104, %c0_105, %c0_106] : memref<2x32x96xf32, #tpu.memory_space<vmem>>, vector<1x32x96xf32>
    %220 = vector.shape_cast %219 : vector<1x32x96xf32> to vector<32x96xf32>
    %cst_107 = arith.constant dense<0.000000e+00> : vector<17x96xf32>
    %221 = tpu.matmul %218, %220, %cst_107 {dimension_numbers = #tpu.dot_dimension_numbers<[1], [0], [0], [1], [0, 0, 1, 1], [], []>} : vector<17x32xf32>, vector<32x96xf32>, vector<17x96xf32> -> vector<17x96xf32>
    %c1_108 = arith.constant 1 : index
    %c0_109 = arith.constant 0 : index
    %c0_110 = arith.constant 0 : index
    %222 = vector.load %arg9[%c1_108, %c0_109, %c0_110] : memref<2x1x96xf32, #tpu.memory_space<vmem>>, vector<1x1x96xf32>
    %223 = vector.shape_cast %222 : vector<1x1x96xf32> to vector<1x96xf32>
    %224 = vector.broadcast %223 : vector<1x96xf32> to vector<17x96xf32>
    %225 = arith.addf %221, %224 : vector<17x96xf32>
    %226 = vector.extract_strided_slice %225 {offsets = [0, 0], sizes = [17, 8], strides = [1, 1]} : vector<17x96xf32> to vector<17x8xf32>
    %cst_111 = arith.constant 0.353553385 : f32
    %227 = vector.broadcast %cst_111 : f32 to vector<17x8xf32>
    %228 = arith.mulf %226, %227 : vector<17x8xf32>
    %229 = vector.extract_strided_slice %225 {offsets = [0, 32], sizes = [17, 8], strides = [1, 1]} : vector<17x96xf32> to vector<17x8xf32>
    %230 = vector.extract_strided_slice %225 {offsets = [0, 64], sizes = [17, 8], strides = [1, 1]} : vector<17x96xf32> to vector<17x8xf32>
    %cst_112 = arith.constant dense<0.000000e+00> : vector<17x17xf32>
    %231 = tpu.matmul %228, %229, %cst_112 {dimension_numbers = #tpu.dot_dimension_numbers<[1], [1], [0], [0], [0, 0, 1, 0], [], []>} : vector<17x8xf32>, vector<17x8xf32>, vector<17x17xf32> -> vector<17x17xf32>
    %cst_113 = arith.constant dense<0xFF800000> : vector<17xf32>
    %232 = vector.multi_reduction <maximumf>, %231, %cst_113 [1] : vector<17x17xf32> to vector<17xf32>
    %233 = vector.shape_cast %232 : vector<17xf32> to vector<17x1xf32>
    %234 = vector.broadcast %233 : vector<17x1xf32> to vector<17x17xf32>
    %235 = arith.subf %231, %234 : vector<17x17xf32>
    %236 = math.exp %235 : vector<17x17xf32>
    %cst_114 = arith.constant dense<0.000000e+00> : vector<17xf32>
    %237 = vector.multi_reduction <add>, %236, %cst_114 [1] : vector<17x17xf32> to vector<17xf32>
    %238 = vector.shape_cast %237 : vector<17xf32> to vector<17x1xf32>
    %239 = tpu.reciprocal %238 {approx = true} : vector<17x1xf32> -> vector<17x1xf32>
    %240 = vector.broadcast %239 : vector<17x1xf32> to vector<17x17xf32>
    %241 = arith.mulf %236, %240 : vector<17x17xf32>
    %cst_115 = arith.constant dense<0.000000e+00> : vector<17x8xf32>
    %242 = tpu.matmul %241, %230, %cst_115 {dimension_numbers = #tpu.dot_dimension_numbers<[1], [0], [0], [1], [0, 0, 1, 1], [], []>} : vector<17x17xf32>, vector<17x8xf32>, vector<17x8xf32> -> vector<17x8xf32>
    %c0_116 = arith.constant 0 : index
    %c0_117 = arith.constant 0 : index
    %243 = vector.load %arg24[%c0_116, %c0_117] : memref<17x32xf32, #tpu.memory_space<vmem>>, vector<17x8xf32>
    tpu.vector_store %arg24[%c0_116, %c0_117], %242 {strides = array<i32>} : memref<17x32xf32, #tpu.memory_space<vmem>>, vector<17x8xf32>,
    %244 = vector.extract_strided_slice %225 {offsets = [0, 8], sizes = [17, 8], strides = [1, 1]} : vector<17x96xf32> to vector<17x8xf32>
    %cst_118 = arith.constant 0.353553385 : f32
    %245 = vector.broadcast %cst_118 : f32 to vector<17x8xf32>
    %246 = arith.mulf %244, %245 : vector<17x8xf32>
    %247 = vector.extract_strided_slice %225 {offsets = [0, 40], sizes = [17, 8], strides = [1, 1]} : vector<17x96xf32> to vector<17x8xf32>
    %248 = vector.extract_strided_slice %225 {offsets = [0, 72], sizes = [17, 8], strides = [1, 1]} : vector<17x96xf32> to vector<17x8xf32>
    %cst_119 = arith.constant dense<0.000000e+00> : vector<17x17xf32>
    %249 = tpu.matmul %246, %247, %cst_119 {dimension_numbers = #tpu.dot_dimension_numbers<[1], [1], [0], [0], [0, 0, 1, 0], [], []>} : vector<17x8xf32>, vector<17x8xf32>, vector<17x17xf32> -> vector<17x17xf32>
    %cst_120 = arith.constant dense<0xFF800000> : vector<17xf32>
    %250 = vector.multi_reduction <maximumf>, %249, %cst_120 [1] : vector<17x17xf32> to vector<17xf32>
    %251 = vector.shape_cast %250 : vector<17xf32> to vector<17x1xf32>
    %252 = vector.broadcast %251 : vector<17x1xf32> to vector<17x17xf32>
    %253 = arith.subf %249, %252 : vector<17x17xf32>
    %254 = math.exp %253 : vector<17x17xf32>
    %cst_121 = arith.constant dense<0.000000e+00> : vector<17xf32>
    %255 = vector.multi_reduction <add>, %254, %cst_121 [1] : vector<17x17xf32> to vector<17xf32>
    %256 = vector.shape_cast %255 : vector<17xf32> to vector<17x1xf32>
    %257 = tpu.reciprocal %256 {approx = true} : vector<17x1xf32> -> vector<17x1xf32>
    %258 = vector.broadcast %257 : vector<17x1xf32> to vector<17x17xf32>
    %259 = arith.mulf %254, %258 : vector<17x17xf32>
    %cst_122 = arith.constant dense<0.000000e+00> : vector<17x8xf32>
    %260 = tpu.matmul %259, %248, %cst_122 {dimension_numbers = #tpu.dot_dimension_numbers<[1], [0], [0], [1], [0, 0, 1, 1], [], []>} : vector<17x17xf32>, vector<17x8xf32>, vector<17x8xf32> -> vector<17x8xf32>
    %c0_123 = arith.constant 0 : index
    %c8_124 = arith.constant 8 : index
    %261 = vector.load %arg24[%c0_123, %c8_124] : memref<17x32xf32, #tpu.memory_space<vmem>>, vector<17x8xf32>
    tpu.vector_store %arg24[%c0_123, %c8_124], %260 {strides = array<i32>} : memref<17x32xf32, #tpu.memory_space<vmem>>, vector<17x8xf32>,
    %262 = vector.extract_strided_slice %225 {offsets = [0, 16], sizes = [17, 8], strides = [1, 1]} : vector<17x96xf32> to vector<17x8xf32>
    %cst_125 = arith.constant 0.353553385 : f32
    %263 = vector.broadcast %cst_125 : f32 to vector<17x8xf32>
    %264 = arith.mulf %262, %263 : vector<17x8xf32>
    %265 = vector.extract_strided_slice %225 {offsets = [0, 48], sizes = [17, 8], strides = [1, 1]} : vector<17x96xf32> to vector<17x8xf32>
    %266 = vector.extract_strided_slice %225 {offsets = [0, 80], sizes = [17, 8], strides = [1, 1]} : vector<17x96xf32> to vector<17x8xf32>
    %cst_126 = arith.constant dense<0.000000e+00> : vector<17x17xf32>
    %267 = tpu.matmul %264, %265, %cst_126 {dimension_numbers = #tpu.dot_dimension_numbers<[1], [1], [0], [0], [0, 0, 1, 0], [], []>} : vector<17x8xf32>, vector<17x8xf32>, vector<17x17xf32> -> vector<17x17xf32>
    %cst_127 = arith.constant dense<0xFF800000> : vector<17xf32>
    %268 = vector.multi_reduction <maximumf>, %267, %cst_127 [1] : vector<17x17xf32> to vector<17xf32>
    %269 = vector.shape_cast %268 : vector<17xf32> to vector<17x1xf32>
    %270 = vector.broadcast %269 : vector<17x1xf32> to vector<17x17xf32>
    %271 = arith.subf %267, %270 : vector<17x17xf32>
    %272 = math.exp %271 : vector<17x17xf32>
    %cst_128 = arith.constant dense<0.000000e+00> : vector<17xf32>
    %273 = vector.multi_reduction <add>, %272, %cst_128 [1] : vector<17x17xf32> to vector<17xf32>
    %274 = vector.shape_cast %273 : vector<17xf32> to vector<17x1xf32>
    %275 = tpu.reciprocal %274 {approx = true} : vector<17x1xf32> -> vector<17x1xf32>
    %276 = vector.broadcast %275 : vector<17x1xf32> to vector<17x17xf32>
    %277 = arith.mulf %272, %276 : vector<17x17xf32>
    %cst_129 = arith.constant dense<0.000000e+00> : vector<17x8xf32>
    %278 = tpu.matmul %277, %266, %cst_129 {dimension_numbers = #tpu.dot_dimension_numbers<[1], [0], [0], [1], [0, 0, 1, 1], [], []>} : vector<17x17xf32>, vector<17x8xf32>, vector<17x8xf32> -> vector<17x8xf32>
    %c0_130 = arith.constant 0 : index
    %c16_131 = arith.constant 16 : index
    %279 = vector.load %arg24[%c0_130, %c16_131] : memref<17x32xf32, #tpu.memory_space<vmem>>, vector<17x8xf32>
    tpu.vector_store %arg24[%c0_130, %c16_131], %278 {strides = array<i32>} : memref<17x32xf32, #tpu.memory_space<vmem>>, vector<17x8xf32>,
    %280 = vector.extract_strided_slice %225 {offsets = [0, 24], sizes = [17, 8], strides = [1, 1]} : vector<17x96xf32> to vector<17x8xf32>
    %cst_132 = arith.constant 0.353553385 : f32
    %281 = vector.broadcast %cst_132 : f32 to vector<17x8xf32>
    %282 = arith.mulf %280, %281 : vector<17x8xf32>
    %283 = vector.extract_strided_slice %225 {offsets = [0, 56], sizes = [17, 8], strides = [1, 1]} : vector<17x96xf32> to vector<17x8xf32>
    %284 = vector.extract_strided_slice %225 {offsets = [0, 88], sizes = [17, 8], strides = [1, 1]} : vector<17x96xf32> to vector<17x8xf32>
    %cst_133 = arith.constant dense<0.000000e+00> : vector<17x17xf32>
    %285 = tpu.matmul %282, %283, %cst_133 {dimension_numbers = #tpu.dot_dimension_numbers<[1], [1], [0], [0], [0, 0, 1, 0], [], []>} : vector<17x8xf32>, vector<17x8xf32>, vector<17x17xf32> -> vector<17x17xf32>
    %cst_134 = arith.constant dense<0xFF800000> : vector<17xf32>
    %286 = vector.multi_reduction <maximumf>, %285, %cst_134 [1] : vector<17x17xf32> to vector<17xf32>
    %287 = vector.shape_cast %286 : vector<17xf32> to vector<17x1xf32>
    %288 = vector.broadcast %287 : vector<17x1xf32> to vector<17x17xf32>
    %289 = arith.subf %285, %288 : vector<17x17xf32>
    %290 = math.exp %289 : vector<17x17xf32>
    %cst_135 = arith.constant dense<0.000000e+00> : vector<17xf32>
    %291 = vector.multi_reduction <add>, %290, %cst_135 [1] : vector<17x17xf32> to vector<17xf32>
    %292 = vector.shape_cast %291 : vector<17xf32> to vector<17x1xf32>
    %293 = tpu.reciprocal %292 {approx = true} : vector<17x1xf32> -> vector<17x1xf32>
    %294 = vector.broadcast %293 : vector<17x1xf32> to vector<17x17xf32>
    %295 = arith.mulf %290, %294 : vector<17x17xf32>
    %cst_136 = arith.constant dense<0.000000e+00> : vector<17x8xf32>
    %296 = tpu.matmul %295, %284, %cst_136 {dimension_numbers = #tpu.dot_dimension_numbers<[1], [0], [0], [1], [0, 0, 1, 1], [], []>} : vector<17x17xf32>, vector<17x8xf32>, vector<17x8xf32> -> vector<17x8xf32>
    %c0_137 = arith.constant 0 : index
    %c24_138 = arith.constant 24 : index
    %297 = vector.load %arg24[%c0_137, %c24_138] : memref<17x32xf32, #tpu.memory_space<vmem>>, vector<17x8xf32>
    tpu.vector_store %arg24[%c0_137, %c24_138], %296 {strides = array<i32>} : memref<17x32xf32, #tpu.memory_space<vmem>>, vector<17x8xf32>,
    %c0_139 = arith.constant 0 : index
    %c0_140 = arith.constant 0 : index
    %298 = vector.load %arg24[%c0_139, %c0_140] : memref<17x32xf32, #tpu.memory_space<vmem>>, vector<17x32xf32>
    %c1_141 = arith.constant 1 : index
    %c0_142 = arith.constant 0 : index
    %c0_143 = arith.constant 0 : index
    %299 = vector.load %arg10[%c1_141, %c0_142, %c0_143] : memref<2x32x32xf32, #tpu.memory_space<vmem>>, vector<1x32x32xf32>
    %300 = vector.shape_cast %299 : vector<1x32x32xf32> to vector<32x32xf32>
    %cst_144 = arith.constant dense<0.000000e+00> : vector<17x32xf32>
    %301 = tpu.matmul %298, %300, %cst_144 {dimension_numbers = #tpu.dot_dimension_numbers<[1], [0], [0], [1], [0, 0, 1, 1], [], []>} : vector<17x32xf32>, vector<32x32xf32>, vector<17x32xf32> -> vector<17x32xf32>
    %c1_145 = arith.constant 1 : index
    %c0_146 = arith.constant 0 : index
    %c0_147 = arith.constant 0 : index
    %302 = vector.load %arg11[%c1_145, %c0_146, %c0_147] : memref<2x1x32xf32, #tpu.memory_space<vmem>>, vector<1x1x32xf32>
    %303 = vector.shape_cast %302 : vector<1x1x32xf32> to vector<1x32xf32>
    %304 = vector.broadcast %303 : vector<1x32xf32> to vector<17x32xf32>
    %305 = arith.addf %301, %304 : vector<17x32xf32>
    %306 = arith.addf %192, %305 : vector<17x32xf32>
    %c1_148 = arith.constant 1 : index
    %c0_149 = arith.constant 0 : index
    %c0_150 = arith.constant 0 : index
    %307 = vector.load %arg12[%c1_148, %c0_149, %c0_150] : memref<2x1x32xf32, #tpu.memory_space<vmem>>, vector<1x1x32xf32>
    %308 = vector.shape_cast %307 : vector<1x1x32xf32> to vector<1x32xf32>
    %c1_151 = arith.constant 1 : index
    %c0_152 = arith.constant 0 : index
    %c0_153 = arith.constant 0 : index
    %309 = vector.load %arg13[%c1_151, %c0_152, %c0_153] : memref<2x1x32xf32, #tpu.memory_space<vmem>>, vector<1x1x32xf32>
    %310 = vector.shape_cast %309 : vector<1x1x32xf32> to vector<1x32xf32>
    %cst_154 = arith.constant dense<0.000000e+00> : vector<17xf32>
    %311 = vector.multi_reduction <add>, %306, %cst_154 [1] : vector<17x32xf32> to vector<17xf32>
    %312 = vector.shape_cast %311 : vector<17xf32> to vector<17x1xf32>
    %cst_155 = arith.constant 3.200000e+01 : f32
    %313 = vector.broadcast %cst_155 : f32 to vector<17x1xf32>
    %314 = arith.divf %312, %313 : vector<17x1xf32>
    %315 = vector.broadcast %314 : vector<17x1xf32> to vector<17x32xf32>
    %316 = arith.subf %306, %315 : vector<17x32xf32>
    %317 = arith.mulf %316, %316 : vector<17x32xf32>
    %cst_156 = arith.constant dense<0.000000e+00> : vector<17xf32>
    %318 = vector.multi_reduction <add>, %317, %cst_156 [1] : vector<17x32xf32> to vector<17xf32>
    %319 = vector.shape_cast %318 : vector<17xf32> to vector<17x1xf32>
    %cst_157 = arith.constant 3.200000e+01 : f32
    %320 = vector.broadcast %cst_157 : f32 to vector<17x1xf32>
    %321 = arith.divf %319, %320 : vector<17x1xf32>
    %322 = vector.broadcast %314 : vector<17x1xf32> to vector<17x32xf32>
    %323 = arith.subf %306, %322 : vector<17x32xf32>
    %cst_158 = arith.constant 9.99999974E-6 : f32
    %324 = vector.broadcast %cst_158 : f32 to vector<17x1xf32>
    %325 = arith.addf %321, %324 : vector<17x1xf32>
    %326 = math.rsqrt %325 : vector<17x1xf32>
    %327 = vector.broadcast %326 : vector<17x1xf32> to vector<17x32xf32>
    %328 = arith.mulf %323, %327 : vector<17x32xf32>
    %329 = vector.broadcast %308 : vector<1x32xf32> to vector<17x32xf32>
    %330 = arith.mulf %328, %329 : vector<17x32xf32>
    %331 = vector.broadcast %310 : vector<1x32xf32> to vector<17x32xf32>
    %332 = arith.addf %330, %331 : vector<17x32xf32>
    %c1_159 = arith.constant 1 : index
    %c0_160 = arith.constant 0 : index
    %c0_161 = arith.constant 0 : index
    %333 = vector.load %arg14[%c1_159, %c0_160, %c0_161] : memref<2x32x128xf32, #tpu.memory_space<vmem>>, vector<1x32x128xf32>
    %334 = vector.shape_cast %333 : vector<1x32x128xf32> to vector<32x128xf32>
    %cst_162 = arith.constant dense<0.000000e+00> : vector<17x128xf32>
    %335 = tpu.matmul %332, %334, %cst_162 {dimension_numbers = #tpu.dot_dimension_numbers<[1], [0], [0], [1], [0, 0, 1, 1], [], []>} : vector<17x32xf32>, vector<32x128xf32>, vector<17x128xf32> -> vector<17x128xf32>
    %c1_163 = arith.constant 1 : index
    %c0_164 = arith.constant 0 : index
    %c0_165 = arith.constant 0 : index
    %336 = vector.load %arg15[%c1_163, %c0_164, %c0_165] : memref<2x1x128xf32, #tpu.memory_space<vmem>>, vector<1x1x128xf32>
    %337 = vector.shape_cast %336 : vector<1x1x128xf32> to vector<1x128xf32>
    %338 = vector.broadcast %337 : vector<1x128xf32> to vector<17x128xf32>
    %339 = arith.addf %335, %338 : vector<17x128xf32>
    %cst_166 = arith.constant 1.702000e+00 : f32
    %340 = vector.broadcast %cst_166 : f32 to vector<17x128xf32>
    %341 = arith.mulf %340, %339 : vector<17x128xf32>
    %342 = arith.negf %341 : vector<17x128xf32>
    %343 = math.exp %342 : vector<17x128xf32>
    %cst_167 = arith.constant 1.000000e+00 : f32
    %344 = vector.broadcast %cst_167 : f32 to vector<17x128xf32>
    %345 = arith.addf %344, %343 : vector<17x128xf32>
    %346 = arith.divf %344, %345 : vector<17x128xf32>
    %347 = arith.mulf %339, %346 : vector<17x128xf32>
    %c1_168 = arith.constant 1 : index
    %c0_169 = arith.constant 0 : index
    %c0_170 = arith.constant 0 : index
    %348 = vector.load %arg16[%c1_168, %c0_169, %c0_170] : memref<2x128x32xf32, #tpu.memory_space<vmem>>, vector<1x128x32xf32>
    %349 = vector.shape_cast %348 : vector<1x128x32xf32> to vector<128x32xf32>
    %cst_171 = arith.constant dense<0.000000e+00> : vector<17x32xf32>
    %350 = tpu.matmul %347, %349, %cst_171 {dimension_numbers = #tpu.dot_dimension_numbers<[1], [0], [0], [1], [0, 0, 1, 1], [], []>} : vector<17x128xf32>, vector<128x32xf32>, vector<17x32xf32> -> vector<17x32xf32>
    %c1_172 = arith.constant 1 : index
    %c0_173 = arith.constant 0 : index
    %c0_174 = arith.constant 0 : index
    %351 = vector.load %arg17[%c1_172, %c0_173, %c0_174] : memref<2x1x32xf32, #tpu.memory_space<vmem>>, vector<1x1x32xf32>
    %352 = vector.shape_cast %351 : vector<1x1x32xf32> to vector<1x32xf32>
    %353 = vector.broadcast %352 : vector<1x32xf32> to vector<17x32xf32>
    %354 = arith.addf %350, %353 : vector<17x32xf32>
    %355 = arith.addf %306, %354 : vector<17x32xf32>
    %356 = vector.extract_strided_slice %355 {offsets = [0, 0], sizes = [1, 32], strides = [1, 1]} : vector<17x32xf32> to vector<1x32xf32>
    %c0_175 = arith.constant 0 : index
    %c0_176 = arith.constant 0 : index
    %357 = vector.load %arg18[%c0_175, %c0_176] : memref<1x32xf32, #tpu.memory_space<vmem>>, vector<1x32xf32>
    %c0_177 = arith.constant 0 : index
    %c0_178 = arith.constant 0 : index
    %358 = vector.load %arg19[%c0_177, %c0_178] : memref<1x32xf32, #tpu.memory_space<vmem>>, vector<1x32xf32>
    %cst_179 = arith.constant dense<0.000000e+00> : vector<1xf32>
    %359 = vector.multi_reduction <add>, %356, %cst_179 [1] : vector<1x32xf32> to vector<1xf32>
    %360 = vector.shape_cast %359 : vector<1xf32> to vector<1x1xf32>
    %cst_180 = arith.constant 3.200000e+01 : f32
    %361 = vector.broadcast %cst_180 : f32 to vector<1x1xf32>
    %362 = arith.divf %360, %361 : vector<1x1xf32>
    %363 = vector.broadcast %362 : vector<1x1xf32> to vector<1x32xf32>
    %364 = arith.subf %356, %363 : vector<1x32xf32>
    %365 = arith.mulf %364, %364 : vector<1x32xf32>
    %cst_181 = arith.constant dense<0.000000e+00> : vector<1xf32>
    %366 = vector.multi_reduction <add>, %365, %cst_181 [1] : vector<1x32xf32> to vector<1xf32>
    %367 = vector.shape_cast %366 : vector<1xf32> to vector<1x1xf32>
    %cst_182 = arith.constant 3.200000e+01 : f32
    %368 = vector.broadcast %cst_182 : f32 to vector<1x1xf32>
    %369 = arith.divf %367, %368 : vector<1x1xf32>
    %370 = vector.broadcast %362 : vector<1x1xf32> to vector<1x32xf32>
    %371 = arith.subf %356, %370 : vector<1x32xf32>
    %cst_183 = arith.constant 9.99999974E-6 : f32
    %372 = vector.broadcast %cst_183 : f32 to vector<1x1xf32>
    %373 = arith.addf %369, %372 : vector<1x1xf32>
    %374 = math.rsqrt %373 : vector<1x1xf32>
    %375 = vector.broadcast %374 : vector<1x1xf32> to vector<1x32xf32>
    %376 = arith.mulf %371, %375 : vector<1x32xf32>
    %377 = arith.mulf %376, %357 : vector<1x32xf32>
    %378 = arith.addf %377, %358 : vector<1x32xf32>
    %c0_184 = arith.constant 0 : index
    %c0_185 = arith.constant 0 : index
    %379 = vector.load %arg20[%c0_184, %c0_185] : memref<32x16xf32, #tpu.memory_space<vmem>>, vector<32x16xf32>
    %cst_186 = arith.constant dense<0.000000e+00> : vector<1x16xf32>
    %380 = tpu.matmul %378, %379, %cst_186 {dimension_numbers = #tpu.dot_dimension_numbers<[1], [0], [0], [1], [0, 0, 1, 1], [], []>} : vector<1x32xf32>, vector<32x16xf32>, vector<1x16xf32> -> vector<1x16xf32>
    %c0_187 = arith.constant 0 : index
    %c0_188 = arith.constant 0 : index
    %381 = vector.load %arg21[%c0_187, %c0_188] : memref<16x10xf32, #tpu.memory_space<vmem>>, vector<16x10xf32>
    %cst_189 = arith.constant dense<0.000000e+00> : vector<1x10xf32>
    %382 = tpu.matmul %380, %381, %cst_189 {dimension_numbers = #tpu.dot_dimension_numbers<[1], [0], [0], [1], [0, 0, 1, 1], [], []>} : vector<1x16xf32>, vector<16x10xf32>, vector<1x10xf32> -> vector<1x10xf32>
    %c0_190 = arith.constant 0 : index
    %c0_191 = arith.constant 0 : index
    %383 = vector.load %arg22[%c0_190, %c0_191] : memref<1x10xf32, #tpu.memory_space<vmem>>, vector<1x10xf32>
    %384 = arith.addf %382, %383 : vector<1x10xf32>
    %c0_192 = arith.constant 0 : index
    %c0_193 = arith.constant 0 : index
    %c0_194 = arith.constant 0 : index
    %385 = vector.load %arg23[%c0_192, %c0_193, %c0_194] : memref<1x1x10xf32, #tpu.memory_space<vmem>>, vector<1x1x10xf32>
    %386 = vector.shape_cast %385 : vector<1x1x10xf32> to vector<1x10xf32>
    %387 = vector.shape_cast %384 : vector<1x10xf32> to vector<1x1x10xf32>
    tpu.vector_store %arg23[%c0_192, %c0_193, %c0_194], %387 {strides = array<i32>} : memref<1x1x10xf32, #tpu.memory_space<vmem>>, vector<1x1x10xf32>,
    return
  }
  func.func @transform_0(%arg0: i32) -> (i32, i32, i32) {
    %c0_i32 = arith.constant 0 : i32
    %c0_i32_0 = arith.constant 0 : i32
    %c0_i32_1 = arith.constant 0 : i32
    return %arg0, %c0_i32, %c0_i32_0 : i32, i32, i32
  }
  func.func @transform_1(%arg0: i32) -> (i32, i32) {
    %c0_i32 = arith.constant 0 : i32
    %c0_i32_0 = arith.constant 0 : i32
    %c0_i32_1 = arith.constant 0 : i32
    return %c0_i32, %c0_i32_0 : i32, i32
  }
  func.func @transform_2(%arg0: i32) -> (i32, i32) {
    %c0_i32 = arith.constant 0 : i32
    %c0_i32_0 = arith.constant 0 : i32
    %c0_i32_1 = arith.constant 0 : i32
    return %c0_i32, %c0_i32_0 : i32, i32
  }
  func.func @transform_3(%arg0: i32) -> (i32, i32) {
    %c0_i32 = arith.constant 0 : i32
    %c0_i32_0 = arith.constant 0 : i32
    %c0_i32_1 = arith.constant 0 : i32
    return %c0_i32, %c0_i32_0 : i32, i32
  }
  func.func @transform_4(%arg0: i32) -> (i32, i32) {
    %c0_i32 = arith.constant 0 : i32
    %c0_i32_0 = arith.constant 0 : i32
    %c0_i32_1 = arith.constant 0 : i32
    return %c0_i32, %c0_i32_0 : i32, i32
  }
  func.func @transform_5(%arg0: i32) -> (i32, i32, i32) {
    %c0_i32 = arith.constant 0 : i32
    %c0_i32_0 = arith.constant 0 : i32
    %c0_i32_1 = arith.constant 0 : i32
    %c0_i32_2 = arith.constant 0 : i32
    return %c0_i32, %c0_i32_0, %c0_i32_1 : i32, i32, i32
  }
  func.func @transform_6(%arg0: i32) -> (i32, i32, i32) {
    %c0_i32 = arith.constant 0 : i32
    %c0_i32_0 = arith.constant 0 : i32
    %c0_i32_1 = arith.constant 0 : i32
    %c0_i32_2 = arith.constant 0 : i32
    return %c0_i32, %c0_i32_0, %c0_i32_1 : i32, i32, i32
  }
  func.func @transform_7(%arg0: i32) -> (i32, i32, i32) {
    %c0_i32 = arith.constant 0 : i32
    %c0_i32_0 = arith.constant 0 : i32
    %c0_i32_1 = arith.constant 0 : i32
    %c0_i32_2 = arith.constant 0 : i32
    return %c0_i32, %c0_i32_0, %c0_i32_1 : i32, i32, i32
  }
  func.func @transform_8(%arg0: i32) -> (i32, i32, i32) {
    %c0_i32 = arith.constant 0 : i32
    %c0_i32_0 = arith.constant 0 : i32
    %c0_i32_1 = arith.constant 0 : i32
    %c0_i32_2 = arith.constant 0 : i32
    return %c0_i32, %c0_i32_0, %c0_i32_1 : i32, i32, i32
  }
  func.func @transform_9(%arg0: i32) -> (i32, i32, i32) {
    %c0_i32 = arith.constant 0 : i32
    %c0_i32_0 = arith.constant 0 : i32
    %c0_i32_1 = arith.constant 0 : i32
    %c0_i32_2 = arith.constant 0 : i32
    return %c0_i32, %c0_i32_0, %c0_i32_1 : i32, i32, i32
  }
  func.func @transform_10(%arg0: i32) -> (i32, i32, i32) {
    %c0_i32 = arith.constant 0 : i32
    %c0_i32_0 = arith.constant 0 : i32
    %c0_i32_1 = arith.constant 0 : i32
    %c0_i32_2 = arith.constant 0 : i32
    return %c0_i32, %c0_i32_0, %c0_i32_1 : i32, i32, i32
  }
  func.func @transform_11(%arg0: i32) -> (i32, i32, i32) {
    %c0_i32 = arith.constant 0 : i32
    %c0_i32_0 = arith.constant 0 : i32
    %c0_i32_1 = arith.constant 0 : i32
    %c0_i32_2 = arith.constant 0 : i32
    return %c0_i32, %c0_i32_0, %c0_i32_1 : i32, i32, i32
  }
  func.func @transform_12(%arg0: i32) -> (i32, i32, i32) {
    %c0_i32 = arith.constant 0 : i32
    %c0_i32_0 = arith.constant 0 : i32
    %c0_i32_1 = arith.constant 0 : i32
    %c0_i32_2 = arith.constant 0 : i32
    return %c0_i32, %c0_i32_0, %c0_i32_1 : i32, i32, i32
  }
  func.func @transform_13(%arg0: i32) -> (i32, i32, i32) {
    %c0_i32 = arith.constant 0 : i32
    %c0_i32_0 = arith.constant 0 : i32
    %c0_i32_1 = arith.constant 0 : i32
    %c0_i32_2 = arith.constant 0 : i32
    return %c0_i32, %c0_i32_0, %c0_i32_1 : i32, i32, i32
  }
  func.func @transform_14(%arg0: i32) -> (i32, i32, i32) {
    %c0_i32 = arith.constant 0 : i32
    %c0_i32_0 = arith.constant 0 : i32
    %c0_i32_1 = arith.constant 0 : i32
    %c0_i32_2 = arith.constant 0 : i32
    return %c0_i32, %c0_i32_0, %c0_i32_1 : i32, i32, i32
  }
  func.func @transform_15(%arg0: i32) -> (i32, i32, i32) {
    %c0_i32 = arith.constant 0 : i32
    %c0_i32_0 = arith.constant 0 : i32
    %c0_i32_1 = arith.constant 0 : i32
    %c0_i32_2 = arith.constant 0 : i32
    return %c0_i32, %c0_i32_0, %c0_i32_1 : i32, i32, i32
  }
  func.func @transform_16(%arg0: i32) -> (i32, i32, i32) {
    %c0_i32 = arith.constant 0 : i32
    %c0_i32_0 = arith.constant 0 : i32
    %c0_i32_1 = arith.constant 0 : i32
    %c0_i32_2 = arith.constant 0 : i32
    return %c0_i32, %c0_i32_0, %c0_i32_1 : i32, i32, i32
  }
  func.func @transform_17(%arg0: i32) -> (i32, i32) {
    %c0_i32 = arith.constant 0 : i32
    %c0_i32_0 = arith.constant 0 : i32
    %c0_i32_1 = arith.constant 0 : i32
    return %c0_i32, %c0_i32_0 : i32, i32
  }
  func.func @transform_18(%arg0: i32) -> (i32, i32) {
    %c0_i32 = arith.constant 0 : i32
    %c0_i32_0 = arith.constant 0 : i32
    %c0_i32_1 = arith.constant 0 : i32
    return %c0_i32, %c0_i32_0 : i32, i32
  }
  func.func @transform_19(%arg0: i32) -> (i32, i32) {
    %c0_i32 = arith.constant 0 : i32
    %c0_i32_0 = arith.constant 0 : i32
    %c0_i32_1 = arith.constant 0 : i32
    return %c0_i32, %c0_i32_0 : i32, i32
  }
  func.func @transform_20(%arg0: i32) -> (i32, i32) {
    %c0_i32 = arith.constant 0 : i32
    %c0_i32_0 = arith.constant 0 : i32
    %c0_i32_1 = arith.constant 0 : i32
    return %c0_i32, %c0_i32_0 : i32, i32
  }
  func.func @transform_21(%arg0: i32) -> (i32, i32) {
    %c0_i32 = arith.constant 0 : i32
    %c0_i32_0 = arith.constant 0 : i32
    %c0_i32_1 = arith.constant 0 : i32
    return %c0_i32, %c0_i32_0 : i32, i32
  }
  func.func @transform_22(%arg0: i32) -> (i32, i32, i32) {
    %c0_i32 = arith.constant 0 : i32
    %c0_i32_0 = arith.constant 0 : i32
    %c0_i32_1 = arith.constant 0 : i32
    return %arg0, %c0_i32, %c0_i32_0 : i32, i32, i32
  }
}

</mosaic_0001>

<bundles_post_ra>
// kernel: clip_image_encoder_forward.1
= control target key start
LH: loop header
LB: loop body
LE: loop exit
PB: predicated region body
PF: predicated region fallthrough
CT: control target
= control target key end

     0   :  { %s6804_s0 = inlined_call_operand.vmem [shape: f32[2,17,48], index: 0, kind: input, shape index: {}]   ;;  %s6805_s1 = inlined_call_operand.vmem [shape: f32[17,32], index: 1, kind: input, shape index: {}]   ;;  %s6806_s2 = inlined_call_operand.vmem [shape: f32[48,32], index: 2, kind: input, shape index: {}]   ;;  %s6807_s3 = inlined_call_operand.vmem [shape: f32[1,32], index: 3, kind: input, shape index: {}]   ;;  %s6808_s4 = inlined_call_operand.vmem [shape: f32[1,32], index: 4, kind: input, shape index: {}]   ;;  %s6809_s5 = inlined_call_operand.vmem [shape: f32[2,1,32], index: 5, kind: input, shape index: {}]   ;;  %s6810_s6 = inlined_call_operand.vmem [shape: f32[2,1,32], index: 6, kind: input, shape index: {}]   ;;  %s6811_s7 = inlined_call_operand.vmem [shape: f32[2,32,96], index: 7, kind: input, shape index: {}]   ;;  %s6812_s8 = inlined_call_operand.vmem [shape: f32[2,1,96], index: 8, kind: input, shape index: {}]   ;;  %s6813_s9 = inlined_call_operand.vmem [shape: f32[2,32,32], index: 9, kind: input, shape index: {}]   ;;  %s6814_s10 = inlined_call_operand.vmem [shape: f32[2,1,32], index: 10, kind: input, shape index: {}]   ;;  %s6815_s11 = inlined_call_operand.vmem [shape: f32[2,1,32], index: 11, kind: input, shape index: {}]   ;;  %s6816_s12 = inlined_call_operand.vmem [shape: f32[2,1,32], index: 12, kind: input, shape index: {}]   ;;  %s6817_s13 = inlined_call_operand.vmem [shape: f32[2,32,128], index: 13, kind: input, shape index: {}]   ;;  %s6818_s14 = inlined_call_operand.vmem [shape: f32[2,1,128], index: 14, kind: input, shape index: {}]   ;;  %s6819_s15 = inlined_call_operand.vmem [shape: f32[2,128,32], index: 15, kind: input, shape index: {}]   ;;  %s6820_s16 = inlined_call_operand.vmem [shape: f32[2,1,32], index: 16, kind: input, shape index: {}]   ;;  %s6821_s17 = inlined_call_operand.vmem [shape: f32[1,32], index: 17, kind: input, shape index: {}]   ;;  %s6822_s18 = inlined_call_operand.vmem [shape: f32[1,32], index: 18, kind: input, shape index: {}]   ;;  %s6823_s19 = inlined_call_operand.vmem [shape: f32[32,16], index: 19, kind: input, shape index: {}]   ;;  %s6824_s20 = inlined_call_operand.vmem [shape: f32[16,10], index: 20, kind: input, shape index: {}]   ;;  %s6825_s21 = inlined_call_operand.vmem [shape: f32[1,10], index: 21, kind: input, shape index: {}]   ;;  %s6826_s22 = inlined_call_operand.hbm [shape: f32[2,1,10], index: 22, kind: output, shape index: {}]  }
   0x1   :  { %6867 = sst [smem:[#allocation11_spill]] %s6804_s0 }
   0x2   :  { %6868 = sst [smem:[#allocation12_spill]] %s6805_s1 }
   0x3   :  { %6869 = sst [smem:[#allocation13_spill]] %s6806_s2 }
   0x4   :  { %6870 = sst [smem:[#allocation14_spill]] %s6807_s3 }
   0x5   :  { %6871 = sst [smem:[#allocation15_spill]] %s6808_s4 }
   0x6   :  { %6872 = sst [smem:[#allocation16_spill]] %s6809_s5 }
   0x7   :  { %6873 = sst [smem:[#allocation17_spill]] %s6810_s6 }
   0x8   :  { %6874 = sst [smem:[#allocation18_spill]] %s6811_s7 }
   0x9   :  { %27 = vsyncpa [#allocation4], 0 }
   0xa   :  { %29 = vsyncpa [#allocation4 + $0x1], 0  ;;  %s5674_s3 = smov 0   ;;  %s5676_s28 = smov 0  }
   0xb   :  { %s5678_s29 = smov 0   ;;  %s5680_s30 = smov 0  }
   0xc LB: > { %6875 = sst [smem:[#allocation6_spill]] %s5527_s3  ;;  %s5695_s4 = sadd.s32 4294967295, %s5539_s30   ;;  %s5539_s30 = sphi %s5680_s30, %s6909_s30   ;;  %s5535_s29 = sphi %s5678_s29, %s6911_s29   ;;  %s5531_s28 = sphi %s5676_s28, %s6913_s28   ;;  %s5527_s3 = sphi %s5674_s3, %s6912_s3  }
   0xd   : > { %6876 = sst [smem:[#allocation7_spill]] %s5535_s29  ;;  %s4203_s0 = sadd.s32 4294967294, %s5539_s30  }
   0xe   : > { %s5699_s23 = sadd.s32 1, %s5539_s30   ;;  %s509_s1 = sadd.s32 1, %s5535_s29 }
   0xf   : > { %6877 = sst [smem:[#allocation8_spill]] %s5699_s23  ;;  %s506_s5 = ssub.s32 %s5539_s30, %s5699_s23 }
  0x10   : > { %p519_p0 = scmp.ne.s32.totalorder %s5535_s29, %s5531_s28  ;;  %p507_p1 = scmp.eq.s32.totalorder %s506_s5, 0 }
  0x11   : > { %p520_p2 = scmp.eq.s32.totalorder %s5695_s4, 1  ;;  %p525_p3 = scmp.ne.s32.totalorder %s5531_s28, %s5527_s3 }
  0x12   : > { %p526_p4 = scmp.eq.s32.totalorder %s4203_s0, 1  ;;  %p4206_p7 = scmp.ge.s32.totalorder %s5539_s30, 1 }
  0x13   : > { %s5710_s24 = scalar_select %p507_p1, %s5535_s29, %s509_s1  }
  0x14   : > { %p5712_p5 = por %p520_p2, %p519_p0  ;;  %p5716_p6 = por %p526_p4, %p525_p3 }
  0x15   : > { %6878 = sst [smem:[#allocation9_spill]] %s5710_s24  ;;  %p615_p8 = scmp.lt.s32.totalorder %s5539_s30, 3 }
  0x16   : > { %s6880_s25 = scalar_select %p5716_p6, 1, 0 }
  0x17   : > { %p616_p9 = pnand %p4206_p7, %p615_p8 }
  0x18   : > { %6881 = sst [smem:[#allocation10_spill]] %s6880_s25  ;;  %s6882_s27 = sld [smem:[#allocation13_spill]] (!%p616_p9)  ;;  %v5541_v3 = vmov (!%p616_p9), 0.0|0.0   ;;  %vm5542_vm0 = vmmov (!%p616_p9), 0   ;;  %v5543_v6 = vmov (!%p616_p9), 0.0   ;;  %vm693_vm1 = vcmask (!%p616_p9), 392192  }
  0x19   : > { %619 = sbr.rel (%p616_p9) target bundleno = 6522 (0x197a), region = 108  ;;  %5030 = vmatprep.subr.bf16.mxu0 (!%p616_p9), %v5541_v3  ;;  %4579 = vmatprep.mubr.msk.f32.mxu0 (!%p616_p9), %vm5542_vm0, %v5543_v6  ;;  %p676_p10 = scmp.lt.s32.totalorder (!%p616_p9), %s5695_s4, 1  ;;  %vm785_vm2 = vcmask (!%p616_p9), 261120   ;;  %vm792_vm3 = vcmask (!%p616_p9), 253952   ;;  %vm1016_vm4 = vcmask (!%p616_p9), 64512   ;;  %vm1164_vm6 = vcmask (!%p616_p9), 1040384  }
  0x1a   : > { %5045 = vmatprep.subr.bf16.mxu1 (!%p616_p9), %v5541_v3  ;;  %4611 = vmatprep.mubr.msk.f32.mxu1 (!%p616_p9), %vm5542_vm0, %v5543_v6  ;;  %s6883_s25 = sld [smem:[#allocation11_spill]] (!%p616_p9)  ;;  %s6884_s26 = sld [smem:[#allocation12_spill]] (!%p616_p9)  ;;  %vm5867_vm5 = vmpackc.low (!%p616_p9), %vm1016_vm4, %vm1016_vm4  ;;  %vm1112_vm7 = vcmask (!%p616_p9), 138240   ;;  %vm1119_vm8 = vcmask (!%p616_p9), 131072   ;;  %vm1249_vm9 = vcmask (!%p616_p9), 57344   ;;  %vm1499_vm10 = vcmask (!%p616_p9), 130112  }
  0x1b   : > { %s6885_s5 = sld [smem:[#allocation14_spill]] (!%p616_p9)  ;;  %s6886_s2 = sld [smem:[#allocation15_spill]] (!%p616_p9)  ;;  %vm1752_vm11 = vcmask (!%p616_p9), 195712   ;;  %vm2005_vm12 = vcmask (!%p616_p9), 261312   ;;  %vm1502_vm13 = vcmask (!%p616_p9), 122944   ;;  %vm1755_vm14 = vcmask (!%p616_p9), 188544  }
  0x1c   : > { %s6887_s7 = sld [smem:[#allocation18_spill]] (!%p616_p9)  ;;  %s6836_s29 = smov (!%p616_p9), 80   ;;  %vm2008_vm15 = vcmask (!%p616_p9), 254144  }
  0x1d   : > { %s6848_s1 = smov (!%p616_p9), 112  }
  0x1e   : > { %v684_v0 = vld [vmem:[%s6882_s27] sm:$0xff] (!%p616_p9)  ;;  %v685_v1 = vld [vmem:[%s6882_s27 + $0x8] sm:$0xff] (!%p616_p9)  ;;  %v686_v2 = vld [vmem:[%s6882_s27 + $0x10] sm:$0xff] (!%p616_p9) }
  0x1f   : > { %v5031_v4 = vpack.c.bf16 (!%p616_p9), %v685_v1, %v684_v0  ;;  %v687_v5 = vld [vmem:[%s6882_s27 + $0x18] sm:$0xff] (!%p616_p9)  ;;  %v688_v8 = vld [vmem:[%s6882_s27 + $0x20] sm:$0xff] (!%p616_p9)  ;;  %v689_v9 = vld [vmem:[%s6882_s27 + $0x28] sm:$0xff] (!%p616_p9)  ;;  %s6898_s27 = smov (!%p616_p9), 72  }
  0x20   : > { %v5034_v7 = vpack.c.bf16 %v687_v5, %v686_v2  ;;  %s677_s24 = scalar_select %p676_p10, %s5695_s4, 1  ;;  %v5037_v10 = vpack.c.bf16 %v689_v9, %v688_v8  ;;  %v690_v14 = vld [vmem:[%s6884_s26] sm:$0xff]  ;;  %v691_v18 = vld [vmem:[%s6884_s26 + $0x8] sm:$0xff]  ;;  %v692_v23 = vld [vmem:[%s6884_s26 + $0x10] sm:$0x1] }
  0x21   : > { %5032 = vmatpush3.bf16.msra.mxu0 %v5031_v4  ;;  %v4211_v54 = vld [vmem:[%s6885_s5] ss:$0 sm:$0xff]  ;;  %s6890_s5 = sld [smem:[#allocation17_spill]]  ;;  %s6893_s26 = smov 8  }
  0x22   : > { %5033 = vmatprep.subr.bf16.mxu0 %v5541_v3  ;;  %s5188_s0 = smul.u32 24, %s677_s24  ;;  %v4212_v56 = vld [vmem:[%s6886_s2] ss:$0 sm:$0xff]  ;;  %s6856_s2 = smov 96  }
  0x23   : > { %s6838_s24 = smov 104  }
  0x24   : > { %s680_s3 = scalar_lea.vmem %s6883_s25, %s5188_s0  ;;  %s6852_s0 = smov 120  }
  0x25   : > { %5035 = vmatpush3.bf16.msra.mxu0 %v5034_v7  ;;  %v681_v11 = vld [vmem:[%s680_s3] sm:$0xff]  ;;  %v682_v12 = vld [vmem:[%s680_s3 + $0x8] sm:$0xff]  ;;  %v683_v13 = vld [vmem:[%s680_s3 + $0x10] sm:$0x1]  ;;  %s6888_s3 = sld [smem:[#allocation16_spill]]  ;;  %s6850_s25 = smov 72  }
  0x26   : > { %5036 = vmatprep.subr.bf16.mxu0 %v5541_v3 }
  0x29   : > { %5038 = vmatpush3.bf16.msra.mxu0 %v5037_v10 }
  0x2a   : > { %5039 = vmatprep.subr.bf16.mxu0 %v5541_v3 }
  0x2b   : > { %s6889_s23 = smov %s6888_s3 }
  0x2c   : > { %4580 = vmatmul.mubr.msk.f32.vlgmr.msra.gmra.mrb[0].mxu0 %vm693_vm1, %v681_v11 }
  0x2d   : > { %4582 = vmatprep.mubr.msk.f32.mxu0 %vm5542_vm0, %v5543_v6 }
  0x30   : > { %4583 = vmatmul.mubr.msk.f32.gmra.mrb[2].mxu0 %vm693_vm1, %v682_v12 }
  0x31   : > { %4585 = vmatprep.mubr.msk.f32.mxu0 %vm5542_vm0, %v5543_v6 }
  0x34   : > { %4586 = vmatmul.mubr.msk.f32.gmra.mrb[4].mxu0 %vm693_vm1, %v683_v13  ;;  %vm4133_vm1 = vcmask 73728  }
  0x35   : > { %4596 = vmatprep.mubr.msk.f32.mxu0 %vm5542_vm0, %v5543_v6 }
  0xff   : > { %v769_v15 = vpop.f32.mrb[0].mxu0 }
 0x100   : > { %v770_v16 = vadd.f32 %v769_v15, %v690_v14  ;;  %v4581_v17 = vpop.f32.mrb[1].mxu0 }
 0x102   : > { %v786_v19 = vsel %vm785_vm2, %v770_v16, 0.0 }
 0x103   : > { %787 = vadd.xlane.f32.xlu0 %v786_v19  ;;  %v774_v20 = vpop.f32.mrb[2].mxu0 }
 0x104   : > { %v775_v21 = vadd.f32 %v774_v20, %v691_v18  ;;  %v4584_v22 = vpop.f32.mrb[3].mxu0 }
 0x106   : > { %v789_v24 = vsel %vm785_vm2, %v775_v21, 0.0 }
 0x107   : > { %790 = vadd.xlane.f32.xlu0 %v789_v24  ;;  %v779_v25 = vpop.f32.mrb[4].mxu0  ;;  %v905_v24 = vld [vmem:[%s6887_s7 + $0x8] sm:$0xff] }
 0x108   : > { %v780_v26 = vadd.f32 %v779_v25, %v692_v23  ;;  %v4587_v27 = vpop.f32.mrb[5].mxu0  ;;  %v904_v23 = vld [vmem:[%s6887_s7] sm:$0xff] }
 0x109   : > { %v5040_v25 = vpack.c.bf16 %v905_v24, %v904_v23  ;;  %v907_v27 = vld [vmem:[%s6887_s7 + $0x18] sm:$0xff] }
 0x10a   : > { %v793_v28 = vsel %vm792_vm3, %v780_v26, 0.0 }
 0x10b   : > { %794 = vadd.xlane.f32.xlu1 %v793_v28  ;;  %5041 = vmatpush3.bf16.msra.mxu0 %v5040_v25 }
 0x10c   : > { %5042 = vmatprep.subr.bf16.mxu0 %v5541_v3 }
 0x190   : > { %v788_v29 = vpop.xlane.xlu0 %787 }
 0x191   : > { %v797_v30 = vmul.f32 0.03125, %v788_v29 }
 0x193   : > { %v800_v31 = vsub.f32 %v770_v16, %v797_v30 }
 0x194   : > { %v791_v32 = vpop.xlane.xlu0 %790 }
 0x195   : > { %v798_v33 = vmul.f32 0.03125, %v791_v32  ;;  %v803_v34 = vmul.f32 %v800_v31, %v800_v31 }
 0x197   : > { %v801_v35 = vsub.f32 %v775_v21, %v798_v33  ;;  %v806_v36 = vsel %vm785_vm2, %v803_v34, 0.0 }
 0x198   : > { %807 = vadd.xlane.f32.xlu1 %v806_v36  ;;  %v795_v37 = vpop.xlane.xlu1 %794 }
 0x199   : > { %v799_v38 = vmul.f32 0.03125, %v795_v37  ;;  %v804_v39 = vmul.f32 %v801_v35, %v801_v35 }
 0x19b   : > { %v802_v40 = vsub.f32 %v780_v26, %v799_v38  ;;  %v809_v41 = vsel %vm785_vm2, %v804_v39, 0.0  ;;  %v906_v26 = vld [vmem:[%s6887_s7 + $0x10] sm:$0xff]  ;;  %v4213_v39 = vld [vmem:[%s6888_s3] ss:$0 sm:$0xff]  ;;  %s6854_s3 = smov 88  }
 0x19c   : > { %810 = vadd.xlane.f32.xlu0 %v809_v41  ;;  %v5043_v28 = vpack.c.bf16 %v907_v27, %v906_v26  ;;  %v4214_v41 = vld [vmem:[%s6890_s5] ss:$0 sm:$0xff] }
 0x19d   : > { %v805_v42 = vmul.f32 %v802_v40, %v802_v40 }
 0x19e   : > { %5044 = vmatpush3.bf16.msra.mxu0 %v5043_v28 }
 0x19f   : > { %v812_v43 = vsel %vm792_vm3, %v805_v42, 0.0  ;;  %5049 = vmatprep.subr.bf16.mxu0 %v5541_v3 }
 0x1a0   : > { %813 = vadd.xlane.f32.xlu1 %v812_v43 }
 0x225   : > { %v808_v44 = vpop.xlane.xlu1 %807 }
 0x226   : > { %v815_v45 = vmul.f32 0.03125, %v808_v44 }
 0x228   : > { %v818_v46 = vadd.f32 1e-05, %v815_v45 }
 0x229   : > { %v811_v47 = vpop.xlane.xlu0 %810 }
 0x22a   : > { %5325 = vrsqrt.f32 %v818_v46  ;;  %v816_v48 = vmul.f32 0.03125, %v811_v47 }
 0x22c   : > { %v819_v49 = vadd.f32 1e-05, %v816_v48 }
 0x22d   : > { %v814_v50 = vpop.xlane.xlu1 %813 }
 0x22e   : > { %5327 = vrsqrt.f32 %v819_v49  ;;  %v817_v51 = vmul.f32 0.03125, %v814_v50 }
 0x230   : > { %v820_v52 = vadd.f32 1e-05, %v817_v51 }
 0x232   : > { %5329 = vrsqrt.f32 %v820_v52 }
 0x234   : > { %v5326_v53 = vpop.eup %5325 }
 0x235   : > { %v824_v55 = vmul.f32 %v5326_v53, %v800_v31 }
 0x237   : > { %v833_v57 = vmul.f32 %v4211_v54, %v824_v55 }
 0x238   : > { %v5328_v58 = vpop.eup %5327 }
 0x239   : > { %v5781_v59 = vadd.f32 %v4212_v56, %v833_v57  ;;  %v825_v60 = vmul.f32 %v5328_v58, %v801_v35 }
 0x23b   : > { %v847_v61 = vsel %vm785_vm2, %v5781_v59, 0.0  ;;  %v834_v62 = vmul.f32 %v4211_v54, %v825_v60 }
 0x23c   : > { %v5330_v63 = vpop.eup %5329  ;;  %848 = vadd.xlane.f32.xlu0 %v847_v61 }
 0x23d   : > { %v5785_v0 = vadd.f32 %v4212_v56, %v834_v62  ;;  %v826_v1 = vmul.f32 %v5330_v63, %v802_v40 }
 0x23f   : > { %v850_v2 = vsel %vm785_vm2, %v5785_v0, 0.0  ;;  %v835_v4 = vmul.f32 %v4211_v54, %v826_v1  ;;  %v4215_v54 = vld [vmem:[%s6812_s8] ss:$0 sm:$0xff] }
 0x240   : > { %851 = vadd.xlane.f32.xlu1 %v850_v2 }
 0x241   : > { %v5789_v5 = vadd.f32 %v4212_v56, %v835_v4 }
 0x243   : > { %v853_v7 = vsel %vm792_vm3, %v5789_v5, 0.0 }
 0x244   : > { %854 = vadd.xlane.f32.xlu0 %v853_v7 }
 0x2c9   : > { %v849_v8 = vpop.xlane.xlu0 %848 }
 0x2ca   : > { %v856_v9 = vmul.f32 0.03125, %v849_v8 }
 0x2cc   : > { %v859_v10 = vsub.f32 %v5781_v59, %v856_v9 }
 0x2cd   : > { %v852_v11 = vpop.xlane.xlu1 %851 }
 0x2ce   : > { %v857_v12 = vmul.f32 0.03125, %v852_v11  ;;  %v862_v13 = vmul.f32 %v859_v10, %v859_v10 }
 0x2d0   : > { %v860_v14 = vsub.f32 %v5785_v0, %v857_v12  ;;  %v865_v15 = vsel %vm785_vm2, %v862_v13, 0.0 }
 0x2d1   : > { %866 = vadd.xlane.f32.xlu1 %v865_v15  ;;  %v855_v16 = vpop.xlane.xlu0 %854 }
 0x2d2   : > { %v858_v17 = vmul.f32 0.03125, %v855_v16  ;;  %v863_v18 = vmul.f32 %v860_v14, %v860_v14 }
 0x2d4   : > { %v861_v19 = vsub.f32 %v5789_v5, %v858_v17  ;;  %v868_v20 = vsel %vm785_vm2, %v863_v18, 0.0 }
 0x2d5   : > { %869 = vadd.xlane.f32.xlu0 %v868_v20 }
 0x2d6   : > { %v864_v21 = vmul.f32 %v861_v19, %v861_v19 }
 0x2d8   : > { %v871_v22 = vsel %vm792_vm3, %v864_v21, 0.0 }
 0x2d9   : > { %872 = vadd.xlane.f32.xlu1 %v871_v22 }
 0x35e   : > { %v867_v29 = vpop.xlane.xlu1 %866 }
 0x35f   : > { %v874_v30 = vmul.f32 0.03125, %v867_v29 }
 0x361   : > { %v877_v31 = vadd.f32 1e-05, %v874_v30 }
 0x362   : > { %v870_v32 = vpop.xlane.xlu0 %869 }
 0x363   : > { %5331 = vrsqrt.f32 %v877_v31  ;;  %v875_v33 = vmul.f32 0.03125, %v870_v32 }
 0x365   : > { %v878_v34 = vadd.f32 1e-05, %v875_v33 }
 0x366   : > { %v873_v35 = vpop.xlane.xlu1 %872 }
 0x367   : > { %5333 = vrsqrt.f32 %v878_v34  ;;  %v876_v36 = vmul.f32 0.03125, %v873_v35 }
 0x369   : > { %v879_v37 = vadd.f32 1e-05, %v876_v36 }
 0x36b   : > { %5335 = vrsqrt.f32 %v879_v37 }
 0x36d   : > { %v5332_v38 = vpop.eup %5331 }
 0x36e   : > { %v883_v40 = vmul.f32 %v5332_v38, %v859_v10 }
 0x370   : > { %v892_v42 = vmul.f32 %v4213_v39, %v883_v40 }
 0x371   : > { %v5334_v43 = vpop.eup %5333 }
 0x372   : > { %v901_v44 = vadd.f32 %v4214_v41, %v892_v42  ;;  %v884_v45 = vmul.f32 %v5334_v43, %v860_v14 }
 0x374   : > { %4597 = vmatmul.mubr.msk.f32.vlgmr.msra.gmra.mrb[6].mxu0 %vm785_vm2, %v901_v44  ;;  %v893_v46 = vmul.f32 %v4213_v39, %v884_v45 }
 0x375   : > { %v5336_v47 = vpop.eup %5335  ;;  %4599 = vmatprep.mubr.msk.f32.mxu0 %vm5542_vm0, %v5543_v6 }
 0x376   : > { %v902_v48 = vadd.f32 %v4214_v41, %v893_v46  ;;  %v885_v49 = vmul.f32 %v5336_v47, %v861_v19 }
 0x378   : > { %4600 = vmatmul.mubr.msk.f32.gmra.mrb[8].mxu0 %vm785_vm2, %v902_v48  ;;  %v894_v50 = vmul.f32 %v4213_v39, %v885_v49 }
 0x379   : > { %4602 = vmatprep.mubr.msk.f32.mxu0 %vm5542_vm0, %v5543_v6 }
 0x37a   : > { %v903_v51 = vadd.f32 %v4214_v41, %v894_v50 }
 0x37c   : > { %4603 = vmatmul.mubr.msk.f32.gmra.mrb[10].mxu0 %vm785_vm2, %v903_v51 }
 0x37d   : > { %4626 = vmatprep.mubr.msk.f32.mxu0 %vm5542_vm0, %v5543_v6 }
 0x447   : > { %v990_v52 = vpop.f32.mrb[6].mxu0 }
 0x448   : > { %v4598_v53 = vpop.f32.mrb[7].mxu0  ;;  %v991_v56 = vadd.f32 %v4215_v54, %v990_v52 }
 0x44a   : > { %v1004_v2 = vmul.f32 0.35355338, %v991_v56 }
 0x44b   : > { %v995_v55 = vpop.f32.mrb[8].mxu0 }
 0x44c   : > { %v996_v57 = vadd.f32 %v4215_v54, %v995_v55  ;;  %v4601_v58 = vpop.f32.mrb[9].mxu0 }
 0x44e   : > { %v5831_v60 = vpack.i.bf16 %v996_v57, %v991_v56  ;;  %v1005_v1 = vmul.f32 0.35355338, %v996_v57 }
 0x44f   : > { %v1000_v61 = vpop.f32.mrb[10].mxu0 }
 0x450   : > { %v5833_v62 = vadd.f32 %v4215_v54, %v1000_v61  ;;  %5246 = vrot.lane.b32.xlu0 %v5831_v60, %s6856_s2  ;;  %v4604_v63 = vpop.f32.mrb[11].mxu0 }
 0x452   : > { %1014 = vrot.lane.b32.xlu1 %v5833_v62, %s6856_s2  ;;  %v1006_v4 = vmul.f32 0.35355338, %v5833_v62  ;;  %s6894_s2 = smov 96  }
 0x454   : > { %5256 = vrot.lane.b32.xlu0 %v5831_v60, %s6836_s29 }
 0x456   : > { %5251 = vrot.lane.b32.xlu1 %v5831_v60, %s6854_s3 }
 0x458   : > { %1253 = vrot.lane.b32.xlu0 %v1005_v1, %s6852_s0 }
 0x45a   : > { %1261 = vrot.lane.b32.xlu1 %v5833_v62, %s6854_s3  ;;  %s6863_s3 = smov 16  }
 0x45c   : > { %1514 = vrot.lane.b32.xlu0 %v5833_v62, %s6836_s29  ;;  %s6840_s29 = smov 64  }
 0x45e   : > { %1251 = vrot.lane.b32.xlu1 %v1004_v2, %s6852_s0 }
 0x460   : > { %1504 = vrot.lane.b32.xlu0 %v1004_v2, %s6848_s1 }
 0x462   : > { %1255 = vrot.lane.b32.xlu1 %v1006_v4, %s6852_s0  ;;  %s6861_s0 = smov 24  }
 0x464   : > { %1508 = vrot.lane.b32.xlu0 %v1006_v4, %s6848_s1 }
 0x466   : > { %5261 = vrot.lane.b32.xlu1 %v5831_v60, %s6850_s25 }
 0x468   : > { %1757 = vrot.lane.b32.xlu0 %v1004_v2, %s6838_s24 }
 0x46a   : > { %1506 = vrot.lane.b32.xlu1 %v1005_v1, %s6848_s1  ;;  %s6901_s1 = smov 104  }
 0x46c   : > { %1761 = vrot.lane.b32.xlu0 %v1006_v4, %s6838_s24 }
 0x46e   : > { %1767 = vrot.lane.b32.xlu1 %v5833_v62, %s6850_s25  ;;  %s6896_s25 = smov 120  }
 0x470   : > { %5266 = vrot.lane.b32.xlu0 %v5831_v60, %s6840_s29 }
 0x472   : > { %1759 = vrot.lane.b32.xlu1 %v1005_v1, %s6838_s24  ;;  %s6846_s24 = smov 56  }
 0x476   : > { %1151 = vrot.lane.b32.xlu1 %v5833_v62, %s6840_s29  ;;  %s6842_s29 = smov 48  }
 0x4c2   : > { %v5247_v7 = vpop.permute.xlu0 %5246 }
 0x4c3   : > { %v5249_v8 = vunpack.i.h.bf16 %v5247_v7  ;;  %v5248_v9 = vunpack.i.l.bf16 %v5247_v7 }
 0x4c4   : > { %v1015_v10 = vpop.permute.xlu1 %1014 }
 0x4c5   : > { %v5046_v12 = vpack.c.bf16 %v5249_v8, %v5248_v9 }
 0x4c6   : > { %v5257_v13 = vpop.permute.xlu0 %5256 }
 0x4c7   : > { %5048 = vmatpush3.bf16.xpose.msk.msra.mxu1 %vm5867_vm5, %v5046_v12  ;;  %v5259_v26 = vunpack.i.h.bf16 %v5257_v13  ;;  %v5258_v27 = vunpack.i.l.bf16 %v5257_v13 }
 0x4c8   : > { %v5252_v14 = vpop.permute.xlu1 %5251  ;;  %4609 = vmatprep.subr.mxu1 %v5543_v6 }
 0x4c9   : > { %v5254_v17 = vunpack.i.h.bf16 %v5252_v14  ;;  %v5253_v18 = vunpack.i.l.bf16 %v5252_v14  ;;  %v5060_v30 = vpack.c.bf16 %v5259_v26, %v5258_v27 }
 0x4ca   : > { %v1254_v15 = vpop.permute.xlu0 %1253 }
 0x4cb   : > { %v5053_v21 = vpack.c.bf16 %v5254_v17, %v5253_v18 }
 0x4cc   : > { %v1262_v16 = vpop.permute.xlu1 %1261 }
 0x4ce   : > { %v1515_v19 = vpop.permute.xlu0 %1514 }
 0x4cf   : > { %4610 = vmatpush3.xpose.msk.msra.mxu1 %vm1016_vm4, %v1015_v10 }
 0x4d0   : > { %v1252_v20 = vpop.permute.xlu1 %1251  ;;  %5052 = vmatprep.subr.bf16.mxu1 %v5541_v3 }
 0x4d2   : > { %v1505_v22 = vpop.permute.xlu0 %1504  ;;  %4612 = vmatmul.mubr.msk.f32.vlgmr.msra.gmra.mrb[0].mxu1 %vm1016_vm4, %v1004_v2 }
 0x4d3   : > { %5055 = vmatpush3.bf16.xpose.msk.msra.mxu1 %vm5867_vm5, %v5053_v21  ;;  %4614 = vmatprep.mubr.msk.f32.mxu1 %vm5542_vm0, %v5543_v6 }
 0x4d4   : > { %v1256_v23 = vpop.permute.xlu1 %1255  ;;  %4639 = vmatprep.subr.mxu1 %v5543_v6 }
 0x4d6   : > { %4615 = vmatmul.mubr.msk.f32.gmra.mrb[2].mxu1 %vm1016_vm4, %v1005_v1  ;;  %v1509_v24 = vpop.permute.xlu0 %1508 }
 0x4d7   : > { %4617 = vmatprep.mubr.msk.f32.mxu1 %vm5542_vm0, %v5543_v6 }
 0x4d8   : > { %v5262_v25 = vpop.permute.xlu1 %5261 }
 0x4d9   : > { %v5264_v37 = vunpack.i.h.bf16 %v5262_v25  ;;  %v5263_v38 = vunpack.i.l.bf16 %v5262_v25 }
 0x4da   : > { %v1758_v28 = vpop.permute.xlu0 %1757  ;;  %4618 = vmatmul.mubr.msk.f32.gmra.mrb[4].mxu1 %vm1016_vm4, %v1006_v4 }
 0x4db   : > { %4640 = vmatpush3.xpose.msk.msra.mxu1 %vm1016_vm4, %v1262_v16  ;;  %4641 = vmatprep.mubr.msk.f32.mxu1 %vm5542_vm0, %v5543_v6  ;;  %v5067_v40 = vpack.c.bf16 %v5264_v37, %v5263_v38 }
 0x4dc   : > { %v1507_v29 = vpop.permute.xlu1 %1506  ;;  %5059 = vmatprep.subr.bf16.mxu1 %v5541_v3 }
 0x4de   : > { %v1762_v31 = vpop.permute.xlu0 %1761  ;;  %4642 = vmatmul.mubr.msk.f32.vlgmr.msra.gmra.mrb[6].mxu1 %vm1016_vm4, %v1252_v20 }
 0x4df   : > { %5062 = vmatpush3.bf16.xpose.msk.msra.mxu1 %vm5867_vm5, %v5060_v30  ;;  %4644 = vmatprep.mubr.msk.f32.mxu1 %vm5542_vm0, %v5543_v6 }
 0x4e0   : > { %v1768_v32 = vpop.permute.xlu1 %1767  ;;  %4669 = vmatprep.subr.mxu1 %v5543_v6 }
 0x4e2   : > { %v5267_v33 = vpop.permute.xlu0 %5266  ;;  %4645 = vmatmul.mubr.msk.f32.gmra.mrb[8].mxu1 %vm1016_vm4, %v1254_v15 }
 0x4e3   : > { %v5269_v34 = vunpack.i.h.bf16 %v5267_v33  ;;  %v5268_v35 = vunpack.i.l.bf16 %v5267_v33  ;;  %4647 = vmatprep.mubr.msk.f32.mxu1 %vm5542_vm0, %v5543_v6 }
 0x4e4   : > { %v1760_v36 = vpop.permute.xlu1 %1759 }
 0x4e5   : > { %v5050_v39 = vpack.c.bf16 %v5269_v34, %v5268_v35 }
 0x4e6   : > { %4648 = vmatmul.mubr.msk.f32.gmra.mrb[10].mxu1 %vm1016_vm4, %v1256_v23 }
 0x4e7   : > { %5051 = vmatpush3.bf16.msra.mxu0 %v5050_v39  ;;  %4670 = vmatpush3.xpose.msk.msra.mxu1 %vm1016_vm4, %v1515_v19 }
 0x4e8   : > { %4671 = vmatprep.mubr.msk.f32.mxu1 %vm5542_vm0, %v5543_v6  ;;  %4624 = vmatprep.subr.mxu0 %v5543_v6  ;;  %v1152_v41 = vpop.permute.xlu1 %1151 }
 0x4e9   : > { %5066 = vmatprep.subr.bf16.mxu1 %v5541_v3 }
 0x4ea   : > { %4672 = vmatmul.mubr.msk.f32.vlgmr.msra.gmra.mrb[12].mxu1 %vm1016_vm4, %v1505_v22 }
 0x4eb   : > { %4625 = vmatpush3.msk.msra.mxu0 %vm1164_vm6, %v1152_v41  ;;  %5069 = vmatpush3.bf16.xpose.msk.msra.mxu1 %vm5867_vm5, %v5067_v40 }
 0x4ec   : > { %4674 = vmatprep.mubr.msk.f32.mxu1 %vm5542_vm0, %v5543_v6  ;;  %4699 = vmatprep.subr.mxu1 %v5543_v6 }
 0x4ed   : > { %5056 = vmatprep.subr.bf16.mxu0 %v5541_v3 }
 0x4ee   : > { %4675 = vmatmul.mubr.msk.f32.gmra.mrb[14].mxu1 %vm1016_vm4, %v1507_v29 }
 0x4ef   : > { %4677 = vmatprep.mubr.msk.f32.mxu1 %vm5542_vm0, %v5543_v6 }
 0x4f2   : > { %4678 = vmatmul.mubr.msk.f32.gmra.mrb[16].mxu1 %vm1016_vm4, %v1509_v24 }
 0x4f3   : > { %4700 = vmatpush3.xpose.msk.msra.mxu1 %vm1016_vm4, %v1768_v32  ;;  %4701 = vmatprep.mubr.msk.f32.mxu1 %vm5542_vm0, %v5543_v6 }
 0x4f4   : > { %5073 = vmatprep.subr.bf16.mxu1 %v5541_v3 }
 0x4f6   : > { %4702 = vmatmul.mubr.msk.f32.vlgmr.msra.gmra.mrb[18].mxu1 %vm1016_vm4, %v1758_v28 }
 0x4f7   : > { %4704 = vmatprep.mubr.msk.f32.mxu1 %vm5542_vm0, %v5543_v6 }
 0x4fa   : > { %4705 = vmatmul.mubr.msk.f32.gmra.mrb[20].mxu1 %vm1016_vm4, %v1760_v36 }
 0x4fb   : > { %4707 = vmatprep.mubr.msk.f32.mxu1 %vm5542_vm0, %v5543_v6 }
 0x4fe   : > { %4708 = vmatmul.mubr.msk.f32.gmra.mrb[22].mxu1 %vm1016_vm4, %v1762_v31 }
 0x4ff   : > { %4733 = vmatprep.mubr.msk.f32.mxu1 %vm5542_vm0, %v5543_v6 }
 0x5a5   : > { %v1098_v42 = vpop.f32.mrb[0].mxu1 }
 0x5a6   : > { %v4613_v43 = vpop.f32.mrb[1].mxu1  ;;  %v1113_v44 = vsel %vm1112_vm7, %v1098_v42, -inf }
 0x5a7   : > { %1114 = vmax.xlane.f32.xlu1 %v1113_v44 }
 0x5a9   : > { %v1103_v45 = vpop.f32.mrb[2].mxu1 }
 0x5aa   : > { %v4616_v46 = vpop.f32.mrb[3].mxu1  ;;  %v1116_v47 = vsel %vm1112_vm7, %v1103_v45, -inf }
 0x5ab   : > { %1117 = vmax.xlane.f32.xlu0 %v1116_v47 }
 0x5ad   : > { %v1108_v48 = vpop.f32.mrb[4].mxu1 }
 0x5ae   : > { %v4619_v49 = vpop.f32.mrb[5].mxu1  ;;  %v1120_v50 = vsel %vm1119_vm8, %v1108_v48, -inf }
 0x5af   : > { %1121 = vmax.xlane.f32.xlu0 %v1120_v50 }
 0x5b1   : > { %v1341_v51 = vpop.f32.mrb[6].mxu1 }
 0x5b2   : > { %v4643_v52 = vpop.f32.mrb[7].mxu1  ;;  %v1355_v53 = vsel %vm1112_vm7, %v1341_v51, -inf }
 0x5b3   : > { %1356 = vmax.xlane.f32.xlu0 %v1355_v53 }
 0x5b5   : > { %v1346_v54 = vpop.f32.mrb[8].mxu1 }
 0x5b6   : > { %v4646_v55 = vpop.f32.mrb[9].mxu1  ;;  %v1358_v56 = vsel %vm1112_vm7, %v1346_v54, -inf }
 0x5b7   : > { %1359 = vmax.xlane.f32.xlu1 %v1358_v56 }
 0x5b9   : > { %v1351_v57 = vpop.f32.mrb[10].mxu1 }
 0x5ba   : > { %v4649_v58 = vpop.f32.mrb[11].mxu1  ;;  %v1361_v61 = vsel %vm1119_vm8, %v1351_v57, -inf }
 0x5bb   : > { %1362 = vmax.xlane.f32.xlu0 %v1361_v61 }
 0x5bd   : > { %v5936_v63 = vpop.f32.mrb[12].mxu1 }
 0x5be   : > { %v4673_v1 = vpop.f32.mrb[13].mxu1  ;;  %v1608_v19 = vsel %vm1112_vm7, %v5936_v63, -inf }
 0x5c1   : > { %v5938_v2 = vpop.f32.mrb[14].mxu1 }
 0x5c2   : > { %v4676_v4 = vpop.f32.mrb[15].mxu1  ;;  %v1611_v7 = vsel %vm1112_vm7, %v5938_v2, -inf }
 0x5c3   : > { %1612 = vmax.xlane.f32.xlu0 %v1611_v7 }
 0x5c5   : > { %v5942_v8 = vpop.f32.mrb[16].mxu1 }
 0x5c6   : > { %v4679_v9 = vpop.f32.mrb[17].mxu1  ;;  %v1614_v20 = vsel %vm1119_vm8, %v5942_v8, -inf }
 0x5c8   : > { %5271 = vrot.lane.b32.xlu1 %v5831_v60, %s6846_s24 }
 0x5c9   : > { %v5946_v10 = vpop.f32.mrb[18].mxu1 }
 0x5ca   : > { %v4703_v12 = vpop.f32.mrb[19].mxu1  ;;  %v1861_v13 = vsel %vm1112_vm7, %v5946_v10, -inf }
 0x5cb   : > { %1862 = vmax.xlane.f32.xlu0 %v1861_v13 }
 0x5cd   : > { %v5950_v14 = vpop.f32.mrb[20].mxu1 }
 0x5ce   : > { %v4706_v15 = vpop.f32.mrb[21].mxu1  ;;  %v1864_v21 = vsel %vm1112_vm7, %v5950_v14, -inf }
 0x5d1   : > { %v5952_v16 = vpop.f32.mrb[22].mxu1 }
 0x5d2   : > { %v4709_v17 = vpop.f32.mrb[23].mxu1  ;;  %v1867_v18 = vsel %vm1119_vm8, %v5952_v16, -inf }
 0x5d3   : > { %1868 = vmax.xlane.f32.xlu0 %v1867_v18 }
 0x5e9   : > { %1392 = vrot.lane.b32.xlu0 %v5833_v62, %s6846_s24  ;;  %s6900_s24 = smov 64  }
 0x5ec   : > { %1609 = vmax.xlane.f32.xlu1 %v1608_v19 }
 0x5f0   : > { %1615 = vmax.xlane.f32.xlu1 %v1614_v20 }
 0x5f4   : > { %1865 = vmax.xlane.f32.xlu1 %v1864_v21 }
 0x605   : > { %5276 = vrot.lane.b32.xlu1 %v5831_v60, %s6842_s29 }
 0x634   : > { %v1115_v22 = vpop.xlane.xlu1 %1114 }
 0x635   : > { %v1123_v23 = vsub.f32 %v1098_v42, %v1115_v22 }
 0x637   : > { %v1126_v24 = vmul.f32 1.442695, %v1123_v23 }
 0x638   : > { %v1118_v25 = vpop.xlane.xlu0 %1117 }
 0x639   : > { %5337 = vpow2.f32 %v1126_v24  ;;  %v1124_v26 = vsub.f32 %v1103_v45, %v1118_v25 }
 0x63b   : > { %v1128_v27 = vmul.f32 1.442695, %v1124_v26 }
 0x63c   : > { %v1122_v28 = vpop.xlane.xlu0 %1121 }
 0x63d   : > { %5339 = vpow2.f32 %v1128_v27  ;;  %v1125_v29 = vsub.f32 %v1108_v48, %v1122_v28 }
 0x63f   : > { %v1130_v30 = vmul.f32 1.442695, %v1125_v29 }
 0x640   : > { %v1357_v31 = vpop.xlane.xlu0 %1356 }
 0x641   : > { %5341 = vpow2.f32 %v1130_v30  ;;  %v1364_v32 = vsub.f32 %v1341_v51, %v1357_v31 }
 0x643   : > { %v5966_v33 = vpop.eup %5337  ;;  %v1367_v34 = vmul.f32 1.442695, %v1364_v32 }
 0x644   : > { %v1360_v35 = vpop.xlane.xlu1 %1359  ;;  %v1132_v36 = vsel %vm1112_vm7, %v5966_v33, 0.0 }
 0x645   : > { %5343 = vpow2.f32 %v1367_v34  ;;  %v1365_v37 = vsub.f32 %v1346_v54, %v1360_v35  ;;  %1133 = vadd.xlane.f32.xlu1 %v1132_v36 }
 0x647   : > { %v5970_v38 = vpop.eup %5339  ;;  %v1369_v39 = vmul.f32 1.442695, %v1365_v37 }
 0x648   : > { %v1363_v40 = vpop.xlane.xlu0 %1362  ;;  %v1135_v41 = vsel %vm1112_vm7, %v5970_v38, 0.0  ;;  %v5272_v4 = vpop.permute.xlu1 %5271 }
 0x649   : > { %5345 = vpow2.f32 %v1369_v39  ;;  %v1366_v42 = vsub.f32 %v1351_v57, %v1363_v40  ;;  %1136 = vadd.xlane.f32.xlu0 %v1135_v41  ;;  %v5274_v32 = vunpack.i.h.bf16 %v5272_v4  ;;  %v5273_v34 = vunpack.i.l.bf16 %v5272_v4 }
 0x64b   : > { %v5974_v43 = vpop.eup %5341  ;;  %v1371_v44 = vmul.f32 1.442695, %v1366_v42  ;;  %v5057_v39 = vpack.c.bf16 %v5274_v32, %v5273_v34  ;;  %v2013_v32 = vld [vmem:[%s6813_s9] sm:$0xff]  ;;  %v2014_v34 = vld [vmem:[%s6813_s9 + $0x8] sm:$0xff] }
 0x64c   : > { %v1138_v45 = vsel %vm1119_vm8, %v5974_v43, 0.0 }
 0x64d   : > { %5347 = vpow2.f32 %v1371_v44  ;;  %1139 = vadd.xlane.f32.xlu1 %v1138_v45 }
 0x64f   : > { %v5978_v46 = vpop.eup %5343 }
 0x650   : > { %v1613_v47 = vpop.xlane.xlu0 %1612  ;;  %v1373_v48 = vsel %vm1112_vm7, %v5978_v46, 0.0 }
 0x651   : > { %v1618_v49 = vsub.f32 %v5938_v2, %v1613_v47  ;;  %1374 = vadd.xlane.f32.xlu0 %v1373_v48 }
 0x653   : > { %v5983_v50 = vpop.eup %5345  ;;  %v1622_v51 = vmul.f32 1.442695, %v1618_v49 }
 0x654   : > { %v1376_v52 = vsel %vm1112_vm7, %v5983_v50, 0.0 }
 0x655   : > { %5349 = vpow2.f32 %v1622_v51  ;;  %1377 = vadd.xlane.f32.xlu1 %v1376_v52 }
 0x657   : > { %v5987_v53 = vpop.eup %5347 }
 0x658   : > { %v1863_v54 = vpop.xlane.xlu0 %1862  ;;  %v1379_v55 = vsel %vm1119_vm8, %v5987_v53, 0.0 }
 0x659   : > { %v1870_v56 = vsub.f32 %v5946_v10, %v1863_v54  ;;  %1380 = vadd.xlane.f32.xlu1 %v1379_v55 }
 0x65b   : > { %v1873_v57 = vmul.f32 1.442695, %v1870_v56 }
 0x65d   : > { %5351 = vpow2.f32 %v1873_v57 }
 0x65f   : > { %v5992_v58 = vpop.eup %5349 }
 0x660   : > { %v1629_v61 = vsel %vm1112_vm7, %v5992_v58, 0.0  ;;  %v1869_v20 = vpop.xlane.xlu0 %1868 }
 0x661   : > { %1630 = vadd.xlane.f32.xlu0 %v1629_v61 }
 0x664   : > { %v1393_v28 = vpop.permute.xlu0 %1392 }
 0x667   : > { %v5996_v1 = vpop.eup %5351 }
 0x668   : > { %v1879_v2 = vsel %vm1112_vm7, %v5996_v1, 0.0 }
 0x669   : > { %1880 = vadd.xlane.f32.xlu0 %v1879_v2 }
 0x679   : > { %v1610_v7 = vpop.xlane.xlu1 %1609 }
 0x67a   : > { %v1617_v9 = vsub.f32 %v5936_v63, %v1610_v7  ;;  %v1872_v63 = vsub.f32 %v5952_v16, %v1869_v20 }
 0x67c   : > { %v1620_v10 = vmul.f32 1.442695, %v1617_v9  ;;  %v1877_v23 = vmul.f32 1.442695, %v1872_v63 }
 0x67d   : > { %v1616_v12 = vpop.xlane.xlu1 %1615 }
 0x67e   : > { %5353 = vpow2.f32 %v1620_v10  ;;  %v1619_v13 = vsub.f32 %v5942_v8, %v1616_v12 }
 0x67f   : > { %1645 = vrot.lane.b32.xlu0 %v5833_v62, %s6842_s29  ;;  %s6844_s29 = smov 40  }
 0x680   : > { %v1624_v15 = vmul.f32 1.442695, %v1619_v13 }
 0x681   : > { %v1866_v17 = vpop.xlane.xlu1 %1865 }
 0x682   : > { %5355 = vpow2.f32 %v1624_v15  ;;  %v1871_v18 = vsub.f32 %v5950_v14, %v1866_v17 }
 0x684   : > { %v1875_v19 = vmul.f32 1.442695, %v1871_v18 }
 0x685   : > { %v5277_v27 = vpop.permute.xlu1 %5276 }
 0x686   : > { %5357 = vpow2.f32 %v1875_v19  ;;  %v5279_v44 = vunpack.i.h.bf16 %v5277_v27  ;;  %v5278_v45 = vunpack.i.l.bf16 %v5277_v27 }
 0x687   : > { %5359 = vpow2.f32 %v1877_v23 }
 0x688   : > { %v6005_v21 = vpop.eup %5353  ;;  %v5064_v48 = vpack.c.bf16 %v5279_v44, %v5278_v45 }
 0x689   : > { %v1626_v22 = vsel %vm1112_vm7, %v6005_v21, 0.0 }
 0x68a   : > { %1627 = vadd.xlane.f32.xlu1 %v1626_v22 }
 0x68c   : > { %v6010_v8 = vpop.eup %5355 }
 0x68d   : > { %v1632_v24 = vsel %vm1119_vm8, %v6010_v8, 0.0 }
 0x68e   : > { %1633 = vadd.xlane.f32.xlu1 %v1632_v24 }
 0x690   : > { %v6014_v25 = vpop.eup %5357 }
 0x691   : > { %v1882_v14 = vsel %vm1112_vm7, %v6014_v25, 0.0  ;;  %v6018_v26 = vpop.eup %5359 }
 0x692   : > { %1883 = vadd.xlane.f32.xlu1 %v1882_v14  ;;  %v1885_v16 = vsel %vm1119_vm8, %v6018_v26, 0.0 }
 0x69e   : > { %1886 = vadd.xlane.f32.xlu0 %v1885_v16 }
 0x6a3   : > { %5281 = vrot.lane.b32.xlu1 %v5831_v60, %s6844_s29 }
 0x6a7   : > { %1898 = vrot.lane.b32.xlu1 %v5833_v62, %s6844_s29  ;;  %s6858_s29 = smov 8  }
 0x6d2   : > { %v1134_v29 = vpop.xlane.xlu1 %1133 }
 0x6d3   : > { %5361 = vrcp.f32 %v1134_v29 }
 0x6d6   : > { %v1137_v30 = vpop.xlane.xlu0 %1136 }
 0x6d7   : > { %5363 = vrcp.f32 %v1137_v30 }
 0x6da   : > { %v1140_v31 = vpop.xlane.xlu1 %1139 }
 0x6db   : > { %5365 = vrcp.f32 %v1140_v31 }
 0x6dd   : > { %v5362_v35 = vpop.eup %5361 }
 0x6de   : > { %v1144_v36 = vmul.f32 %v5362_v35, %v5966_v33  ;;  %v1375_v37 = vpop.xlane.xlu0 %1374 }
 0x6df   : > { %5367 = vrcp.f32 %v1375_v37 }
 0x6e0   : > { %4627 = vmatmul.mubr.msk.f32.vlgmr.msra.gmra.mrb[12].mxu0 %vm1112_vm7, %v1144_v36  ;;  %v5074_v36 = vpack.c.bf16 %v2014_v34, %v2013_v32  ;;  %v2176_v32 = vld [vmem:[%s6817_s13 + $0x8] sm:$0xff] }
 0x6e1   : > { %v5364_v60 = vpop.eup %5363  ;;  %5058 = vmatpush3.bf16.msra.mxu0 %v5057_v39  ;;  %4629 = vmatprep.mubr.msk.f32.mxu0 %vm5542_vm0, %v5543_v6  ;;  %v2015_v39 = vld [vmem:[%s6813_s9 + $0x10] sm:$0xff] }
 0x6e2   : > { %v1378_v62 = vpop.xlane.xlu1 %1377  ;;  %4654 = vmatprep.subr.mxu0 %v5543_v6  ;;  %v1145_v40 = vmul.f32 %v5364_v60, %v5970_v38  ;;  %5075 = vmatpush3.bf16.msra.mxu1 %v5074_v36  ;;  %v2016_v60 = vld [vmem:[%s6813_s9 + $0x18] sm:$0xff] }
 0x6e3   : > { %5369 = vrcp.f32 %v1378_v62  ;;  %5076 = vmatprep.subr.bf16.mxu1 %v5541_v3  ;;  %v2178_v36 = vld [vmem:[%s6817_s13 + $0x18] sm:$0xff] }
 0x6e4   : > { %4630 = vmatmul.mubr.msk.f32.gmra.mrb[14].mxu0 %vm1112_vm7, %v1145_v40  ;;  %v5077_v40 = vpack.c.bf16 %v2016_v60, %v2015_v39 }
 0x6e5   : > { %v5366_v41 = vpop.eup %5365  ;;  %4655 = vmatpush3.msk.msra.mxu0 %vm1164_vm6, %v1393_v28  ;;  %4632 = vmatprep.mubr.msk.f32.mxu0 %vm5542_vm0, %v5543_v6 }
 0x6e6   : > { %v1381_v33 = vpop.xlane.xlu1 %1380  ;;  %v1146_v42 = vmul.f32 %v5366_v41, %v5974_v43  ;;  %5063 = vmatprep.subr.bf16.mxu0 %v5541_v3  ;;  %5078 = vmatpush3.bf16.msra.mxu1 %v5077_v40 }
 0x6e7   : > { %5371 = vrcp.f32 %v1381_v33  ;;  %5085 = vmatprep.subr.bf16.mxu1 %v5541_v3 }
 0x6e8   : > { %4633 = vmatmul.mubr.msk.f32.gmra.mrb[16].mxu0 %vm1112_vm7, %v1146_v42 }
 0x6e9   : > { %v5368_v38 = vpop.eup %5367  ;;  %4656 = vmatprep.mubr.msk.f32.mxu0 %vm5542_vm0, %v5543_v6 }
 0x6ea   : > { %v1385_v47 = vmul.f32 %v5368_v38, %v5978_v46 }
 0x6ec   : > { %4657 = vmatmul.mubr.msk.f32.vlgmr.msra.gmra.mrb[18].mxu0 %vm1112_vm7, %v1385_v47 }
 0x6ed   : > { %v5370_v49 = vpop.eup %5369  ;;  %5065 = vmatpush3.bf16.msra.mxu0 %v5064_v48  ;;  %4659 = vmatprep.mubr.msk.f32.mxu0 %vm5542_vm0, %v5543_v6 }
 0x6ee   : > { %v1386_v43 = vmul.f32 %v5370_v49, %v5983_v50  ;;  %4684 = vmatprep.subr.mxu0 %v5543_v6  ;;  %v1631_v52 = vpop.xlane.xlu0 %1630 }
 0x6f0   : > { %4660 = vmatmul.mubr.msk.f32.gmra.mrb[20].mxu0 %vm1112_vm7, %v1386_v43 }
 0x6f1   : > { %v5372_v51 = vpop.eup %5371  ;;  %4662 = vmatprep.mubr.msk.f32.mxu0 %vm5542_vm0, %v5543_v6 }
 0x6f2   : > { %v1387_v46 = vmul.f32 %v5372_v51, %v5987_v53 }
 0x6f4   : > { %4663 = vmatmul.mubr.msk.f32.gmra.mrb[22].mxu0 %vm1112_vm7, %v1387_v46 }
 0x6f5   : > { %4686 = vmatprep.mubr.msk.f32.mxu0 %vm5542_vm0, %v5543_v6 }
 0x6f6   : > { %v1881_v54 = vpop.xlane.xlu0 %1880 }
 0x6fa   : > { %v1646_v55 = vpop.permute.xlu0 %1645 }
 0x6fb   : > { %4685 = vmatpush3.msk.msra.mxu0 %vm1164_vm6, %v1646_v55 }
 0x6fc   : > { %5070 = vmatprep.subr.bf16.mxu0 %v5541_v3 }
 0x717   : > { %v1628_v50 = vpop.xlane.xlu1 %1627 }
 0x718   : > { %5373 = vrcp.f32 %v1628_v50 }
 0x719   : > { %5375 = vrcp.f32 %v1631_v52 }
 0x71b   : > { %v1634_v56 = vpop.xlane.xlu1 %1633 }
 0x71c   : > { %5377 = vrcp.f32 %v1634_v56 }
 0x71d   : > { %5379 = vrcp.f32 %v1881_v54 }
 0x71f   : > { %v1884_v57 = vpop.xlane.xlu1 %1883 }
 0x720   : > { %5381 = vrcp.f32 %v1884_v57 }
 0x722   : > { %v5374_v61 = vpop.eup %5373 }
 0x723   : > { %v1638_v53 = vmul.f32 %v5374_v61, %v6005_v21  ;;  %v5282_v2 = vpop.permute.xlu1 %5281  ;;  %v5376_v4 = vpop.eup %5375 }
 0x724   : > { %v5284_v7 = vunpack.i.h.bf16 %v5282_v2  ;;  %v5283_v9 = vunpack.i.l.bf16 %v5282_v2  ;;  %v1639_v12 = vmul.f32 %v5376_v4, %v5992_v58  ;;  %v4259_v2 = vld [vmem:[%s6814_s10] ss:$0 sm:$0xff] }
 0x725   : > { %4687 = vmatmul.mubr.msk.f32.vlgmr.msra.gmra.mrb[24].mxu0 %vm1112_vm7, %v1638_v53 }
 0x726   : > { %v5071_v10 = vpack.c.bf16 %v5284_v7, %v5283_v9  ;;  %4689 = vmatprep.mubr.msk.f32.mxu0 %vm5542_vm0, %v5543_v6  ;;  %v5378_v13 = vpop.eup %5377 }
 0x727   : > { %v1899_v15 = vpop.permute.xlu1 %1898  ;;  %v1640_v18 = vmul.f32 %v5378_v13, %v6010_v8  ;;  %v5380_v19 = vpop.eup %5379 }
 0x728   : > { %5072 = vmatpush3.bf16.msra.mxu0 %v5071_v10  ;;  %v1891_v58 = vmul.f32 %v5380_v19, %v5996_v1 }
 0x729   : > { %4690 = vmatmul.mubr.msk.f32.gmra.mrb[26].mxu0 %vm1112_vm7, %v1639_v12  ;;  %4714 = vmatprep.subr.mxu0 %v5543_v6 }
 0x72a   : > { %4692 = vmatprep.mubr.msk.f32.mxu0 %vm5542_vm0, %v5543_v6  ;;  %v5382_v20 = vpop.eup %5381 }
 0x72b   : > { %v1887_v17 = vpop.xlane.xlu0 %1886  ;;  %v1892_v21 = vmul.f32 %v5382_v20, %v6014_v25 }
 0x72c   : > { %5383 = vrcp.f32 %v1887_v17  ;;  %4715 = vmatpush3.msk.msra.mxu0 %vm1164_vm6, %v1899_v15 }
 0x72d   : > { %4693 = vmatmul.mubr.msk.f32.gmra.mrb[28].mxu0 %vm1112_vm7, %v1640_v18  ;;  %5079 = vmatprep.subr.bf16.mxu0 %v5541_v3 }
 0x72e   : > { %4716 = vmatprep.mubr.msk.f32.mxu0 %vm5542_vm0, %v5543_v6 }
 0x731   : > { %4717 = vmatmul.mubr.msk.f32.vlgmr.msra.gmra.mrb[30].mxu0 %vm1112_vm7, %v1891_v58 }
 0x732   : > { %4719 = vmatprep.mubr.msk.f32.mxu0 %vm5542_vm0, %v5543_v6 }
 0x735   : > { %4720 = vmatmul.mubr.msk.f32.gmra.mrb[32].mxu0 %vm1112_vm7, %v1892_v21 }
 0x736   : > { %v5384_v63 = vpop.eup %5383  ;;  %4722 = vmatprep.mubr.msk.f32.mxu0 %vm5542_vm0, %v5543_v6 }
 0x737   : > { %v1893_v22 = vmul.f32 %v5384_v63, %v6018_v26 }
 0x739   : > { %4723 = vmatmul.mubr.msk.f32.gmra.mrb[34].mxu0 %vm1112_vm7, %v1893_v22 }
 0x73a   : > { %4750 = vmatprep.mubr.msk.f32.mxu0 %vm5542_vm0, %v5543_v6 }
 0x7b3   : > { %v1233_v1 = vpop.f32.mrb[12].mxu0 }
 0x7b4   : > { %1247 = vst.msk [vmem:[#allocation2] sm:$0xff] %vm1016_vm4, %v1233_v1  ;;  %v4628_v8 = vpop.f32.mrb[13].mxu0 }
 0x7b7   : > { %v1238_v23 = vpop.f32.mrb[14].mxu0 }
 0x7b8   : > { %1248 = vst.msk [vmem:[#allocation2 + $0x8] sm:$0xff] %vm1016_vm4, %v1238_v23  ;;  %v4631_v24 = vpop.f32.mrb[15].mxu0 }
 0x7bb   : > { %v1243_v25 = vpop.f32.mrb[16].mxu0 }
 0x7bc   : > { %1250 = vst.msk [vmem:[#allocation2 + $0x10] sm:$0x1] %vm1249_vm9, %v1243_v25  ;;  %v4634_v14 = vpop.f32.mrb[17].mxu0 }
 0x7bf   : > { %v1473_v16 = vpop.f32.mrb[18].mxu0 }
 0x7c0   : > { %1490 = vrot.lane.b32.xlu1 %v1473_v16, %s6858_s29  ;;  %v4658_v26 = vpop.f32.mrb[19].mxu0 }
 0x7c3   : > { %v1478_v27 = vpop.f32.mrb[20].mxu0 }
 0x7c4   : > { %1492 = vrot.lane.b32.xlu1 %v1478_v27, %s6858_s29  ;;  %v4661_v28 = vpop.f32.mrb[21].mxu0  ;;  %s6895_s29 = smov 88  }
 0x7c7   : > { %v1483_v29 = vpop.f32.mrb[22].mxu0 }
 0x7c8   : > { %v4664_v30 = vpop.f32.mrb[23].mxu0 }
 0x7f8   : > { %v1726_v31 = vpop.f32.mrb[24].mxu0 }
 0x7f9   : > { %1743 = vrot.lane.b32.xlu1 %v1726_v31, %s6863_s3  ;;  %v4688_v35 = vpop.f32.mrb[25].mxu0  ;;  %v2175_v31 = vld [vmem:[%s6817_s13] sm:$0xff] }
 0x7fa   : > { %v5080_v34 = vpack.c.bf16 %v2176_v32, %v2175_v31  ;;  %v2177_v35 = vld [vmem:[%s6817_s13 + $0x10] sm:$0xff] }
 0x7fc   : > { %v1731_v37 = vpop.f32.mrb[26].mxu0  ;;  %5081 = vmatpush3.bf16.msra.mxu0 %v5080_v34 }
 0x7fd   : > { %v4691_v62 = vpop.f32.mrb[27].mxu0  ;;  %5082 = vmatprep.subr.bf16.mxu0 %v5541_v3 }
 0x800   : > { %v1736_v41 = vpop.f32.mrb[28].mxu0 }
 0x801   : > { %v4694_v33 = vpop.f32.mrb[29].mxu0 }
 0x804   : > { %v1979_v42 = vpop.f32.mrb[30].mxu0 }
 0x805   : > { %1996 = vrot.lane.b32.xlu1 %v1979_v42, %s6861_s0  ;;  %v4718_v44 = vpop.f32.mrb[31].mxu0 }
 0x806   : > { %v4263_v44 = vld [vmem:[%s6815_s11] ss:$0 sm:$0xff] }
 0x808   : > { %v1984_v45 = vpop.f32.mrb[32].mxu0 }
 0x809   : > { %1745 = vrot.lane.b32.xlu1 %v1731_v37, %s6863_s3  ;;  %1998 = vrot.lane.b32.xlu0 %v1984_v45, %s6861_s0  ;;  %v4721_v38 = vpop.f32.mrb[33].mxu0  ;;  %v5083_v37 = vpack.c.bf16 %v2178_v36, %v2177_v35 }
 0x80b   : > { %5084 = vmatpush3.bf16.msra.mxu0 %v5083_v37 }
 0x80c   : > { %v1989_v47 = vpop.f32.mrb[34].mxu0  ;;  %5109 = vmatprep.subr.bf16.mxu0 %v5541_v3 }
 0x80d   : > { %1494 = vrot.lane.b32.xlu1 %v1483_v29, %s6893_s26  ;;  %v4724_v48 = vpop.f32.mrb[35].mxu0 }
 0x811   : > { %1747 = vrot.lane.b32.xlu1 %v1736_v41, %s6863_s3  ;;  %s6899_s3 = smov 112  }
 0x815   : > { %2000 = vrot.lane.b32.xlu1 %v1989_v47, %s6861_s0  ;;  %v4264_v47 = vld [vmem:[%s6816_s12] ss:$0 sm:$0xff]  ;;  %s6897_s0 = smov 80  }
 0x832   : > { %v1491_v49 = vpop.permute.xlu1 %1490 }
 0x833   : > { %1500 = vst.msk [vmem:[#allocation2] sm:$0xff] %vm1499_vm10, %v1491_v49 }
 0x836   : > { %v1493_v43 = vpop.permute.xlu1 %1492 }
 0x837   : > { %1501 = vst.msk [vmem:[#allocation2 + $0x8] sm:$0xff] %vm1499_vm10, %v1493_v43 }
 0x86b   : > { %v1744_v51 = vpop.permute.xlu1 %1743 }
 0x86c   : > { %1753 = vst.msk [vmem:[#allocation2] sm:$0xff] %vm1752_vm11, %v1744_v51 }
 0x877   : > { %v1997_v52 = vpop.permute.xlu1 %1996 }
 0x878   : > { %2006 = vst.msk [vmem:[#allocation2] sm:$0xff] %vm2005_vm12, %v1997_v52 }
 0x87b   : > { %v1746_v46 = vpop.permute.xlu1 %1745  ;;  %v1999_v54 = vpop.permute.xlu0 %1998 }
 0x87c   : > { %1754 = vst.msk [vmem:[#allocation2 + $0x8] sm:$0xff] %vm1752_vm11, %v1746_v46 }
 0x87d   : > { %2007 = vst.msk [vmem:[#allocation2 + $0x8] sm:$0xff] %vm2005_vm12, %v1999_v54 }
 0x87f   : > { %v1495_v55 = vpop.permute.xlu1 %1494  ;;  %v2010_v50 = vld [vmem:[#allocation2] sm:$0xff] }
 0x880   : > { %1503 = vst.msk [vmem:[#allocation2 + $0x10] sm:$0x1] %vm1502_vm13, %v1495_v55  ;;  %4734 = vmatmul.mubr.msk.f32.vlgmr.msra.gmra.mrb[24].mxu1 %vm785_vm2, %v2010_v50 }
 0x881   : > { %4736 = vmatprep.mubr.msk.f32.mxu1 %vm5542_vm0, %v5543_v6 }
 0x883   : > { %v1748_v56 = vpop.permute.xlu1 %1747 }
 0x884   : > { %1756 = vst.msk [vmem:[#allocation2 + $0x10] sm:$0x1] %vm1755_vm14, %v1748_v56  ;;  %v2011_v57 = vld [vmem:[#allocation2 + $0x8] sm:$0xff] }
 0x885   : > { %4737 = vmatmul.mubr.msk.f32.gmra.mrb[26].mxu1 %vm785_vm2, %v2011_v57 }
 0x886   : > { %4739 = vmatprep.mubr.msk.f32.mxu1 %vm5542_vm0, %v5543_v6 }
 0x887   : > { %v2001_v61 = vpop.permute.xlu1 %2000 }
 0x888   : > { %2009 = vst.msk [vmem:[#allocation2 + $0x10] sm:$0x1] %vm2008_vm15, %v2001_v61 }
 0x88f   : > { %v2012_v53 = vld [vmem:[#allocation2 + $0x10] sm:$0x1] }
 0x890   : > { %4740 = vmatmul.mubr.msk.f32.gmra.mrb[28].mxu1 %vm785_vm2, %v2012_v53  ;;  %v2299_v53 = vld [vmem:[%s6819_s15] sm:$0xff] }
 0x891   : > { %4791 = vmatprep.mubr.msk.f32.mxu1 %vm5542_vm0, %v5543_v6 }
 0x953   : > { %v2099_v4 = vpop.f32.mrb[24].mxu1 }
 0x954   : > { %v2100_v7 = vadd.f32 %v4259_v2, %v2099_v4  ;;  %v4735_v9 = vpop.f32.mrb[25].mxu1 }
 0x955   : > { %v2302_v9 = vld [vmem:[%s6819_s15 + $0x18] sm:$0xff] }
 0x956   : > { %v6131_v10 = vadd.f32 %v2100_v7, %v5781_v59  ;;  %v2301_v7 = vld [vmem:[%s6819_s15 + $0x10] sm:$0xff] }
 0x958   : > { %v2104_v12 = vpop.f32.mrb[26].mxu1  ;;  %v2118_v13 = vsel %vm785_vm2, %v6131_v10, 0.0 }
 0x959   : > { %v2105_v15 = vadd.f32 %v4259_v2, %v2104_v12  ;;  %v4738_v17 = vpop.f32.mrb[27].mxu1  ;;  %2119 = vadd.xlane.f32.xlu1 %v2118_v13  ;;  %v5089_v12 = vpack.c.bf16 %v2302_v9, %v2301_v7  ;;  %v2303_v13 = vld [vmem:[%s6819_s15 + $0x20] sm:$0xff] }
 0x95b   : > { %v6136_v18 = vadd.f32 %v2105_v15, %v5785_v0  ;;  %v2304_v15 = vld [vmem:[%s6819_s15 + $0x28] sm:$0xff] }
 0x95c   : > { %v5092_v17 = vpack.c.bf16 %v2304_v15, %v2303_v13 }
 0x95d   : > { %v2121_v19 = vsel %vm785_vm2, %v6136_v18, 0.0 }
 0x95e   : > { %2122 = vadd.xlane.f32.xlu0 %v2121_v19  ;;  %v2305_v19 = vld [vmem:[%s6819_s15 + $0x30] sm:$0xff] }
 0x963   : > { %v2109_v58 = vpop.f32.mrb[28].mxu1 }
 0x964   : > { %v2110_v20 = vadd.f32 %v4259_v2, %v2109_v58  ;;  %v4741_v21 = vpop.f32.mrb[29].mxu1  ;;  %v2300_v2 = vld [vmem:[%s6819_s15 + $0x8] sm:$0xff]  ;;  %v2306_v58 = vld [vmem:[%s6819_s15 + $0x38] sm:$0xff] }
 0x965   : > { %v5086_v4 = vpack.c.bf16 %v2300_v2, %v2299_v53  ;;  %v2307_v21 = vld [vmem:[%s6819_s15 + $0x40] sm:$0xff] }
 0x966   : > { %v6141_v59 = vadd.f32 %v2110_v20, %v5789_v5  ;;  %v5095_v20 = vpack.c.bf16 %v2306_v58, %v2305_v19 }
 0x967   : > { %5087 = vmatpush3.bf16.msra.mxu1 %v5086_v4 }
 0x968   : > { %v2124_v63 = vsel %vm792_vm3, %v6141_v59, 0.0  ;;  %5088 = vmatprep.subr.bf16.mxu1 %v5541_v3 }
 0x969   : > { %2125 = vadd.xlane.f32.xlu1 %v2124_v63  ;;  %v2308_v63 = vld [vmem:[%s6819_s15 + $0x48] sm:$0xff] }
 0x96b   : > { %5090 = vmatpush3.bf16.msra.mxu1 %v5089_v12 }
 0x96c   : > { %5091 = vmatprep.subr.bf16.mxu1 %v5541_v3 }
 0x96f   : > { %5093 = vmatpush3.bf16.msra.mxu1 %v5092_v17 }
 0x970   : > { %5094 = vmatprep.subr.bf16.mxu1 %v5541_v3 }
 0x973   : > { %5096 = vmatpush3.bf16.msra.mxu1 %v5095_v20 }
 0x974   : > { %5097 = vmatprep.subr.bf16.mxu1 %v5541_v3 }
 0x9e6   : > { %v2120_v22 = vpop.xlane.xlu1 %2119 }
 0x9e7   : > { %v2127_v1 = vmul.f32 0.03125, %v2120_v22  ;;  %v5098_v22 = vpack.c.bf16 %v2308_v63, %v2307_v21 }
 0x9e9   : > { %v2130_v8 = vsub.f32 %v6131_v10, %v2127_v1  ;;  %5099 = vmatpush3.bf16.msra.mxu1 %v5098_v22  ;;  %v2309_v1 = vld [vmem:[%s6819_s15 + $0x50] sm:$0xff] }
 0x9ea   : > { %5100 = vmatprep.subr.bf16.mxu1 %v5541_v3 }
 0x9eb   : > { %v2123_v0 = vpop.xlane.xlu0 %2122  ;;  %v2133_v23 = vmul.f32 %v2130_v8, %v2130_v8 }
 0x9ec   : > { %v2128_v24 = vmul.f32 0.03125, %v2123_v0 }
 0x9ed   : > { %v2136_v25 = vsel %vm785_vm2, %v2133_v23, 0.0  ;;  %v2311_v23 = vld [vmem:[%s6819_s15 + $0x60] sm:$0xff] }
 0x9ee   : > { %v2131_v14 = vsub.f32 %v6136_v18, %v2128_v24  ;;  %2137 = vadd.xlane.f32.xlu1 %v2136_v25  ;;  %v2312_v24 = vld [vmem:[%s6819_s15 + $0x68] sm:$0xff] }
 0x9ef   : > { %v5104_v25 = vpack.c.bf16 %v2312_v24, %v2311_v23 }
 0x9f0   : > { %v2134_v16 = vmul.f32 %v2131_v14, %v2131_v14 }
 0x9f2   : > { %v2139_v5 = vsel %vm785_vm2, %v2134_v16, 0.0  ;;  %v2314_v16 = vld [vmem:[%s6819_s15 + $0x78] sm:$0xff] }
 0x9f3   : > { %2140 = vadd.xlane.f32.xlu0 %v2139_v5 }
 0x9f6   : > { %v2126_v26 = vpop.xlane.xlu1 %2125 }
 0x9f7   : > { %v2129_v27 = vmul.f32 0.03125, %v2126_v26  ;;  %v4265_v26 = vld [vmem:[%s6818_s14] ss:$0 sm:$0xff] }
 0x9f9   : > { %v2132_v28 = vsub.f32 %v6141_v59, %v2129_v27 }
 0x9fb   : > { %v2135_v29 = vmul.f32 %v2132_v28, %v2132_v28 }
 0x9fd   : > { %v2142_v30 = vsel %vm792_vm3, %v2135_v29, 0.0 }
 0x9fe   : > { %2143 = vadd.xlane.f32.xlu1 %v2142_v30 }
 0xa7b   : > { %v2138_v39 = vpop.xlane.xlu1 %2137 }
 0xa7c   : > { %v2145_v60 = vmul.f32 0.03125, %v2138_v39 }
 0xa7e   : > { %v2148_v62 = vadd.f32 1e-05, %v2145_v60 }
 0xa80   : > { %5385 = vrsqrt.f32 %v2148_v62  ;;  %v2141_v40 = vpop.xlane.xlu0 %2140 }
 0xa81   : > { %v2146_v41 = vmul.f32 0.03125, %v2141_v40 }
 0xa83   : > { %v2149_v33 = vadd.f32 1e-05, %v2146_v41 }
 0xa85   : > { %5387 = vrsqrt.f32 %v2149_v33 }
 0xa8a   : > { %v5386_v42 = vpop.eup %5385 }
 0xa8b   : > { %v2154_v45 = vmul.f32 %v5386_v42, %v2130_v8  ;;  %v2144_v38 = vpop.xlane.xlu1 %2143  ;;  %v2310_v8 = vld [vmem:[%s6819_s15 + $0x58] sm:$0xff] }
 0xa8c   : > { %v2147_v48 = vmul.f32 0.03125, %v2144_v38  ;;  %v5101_v0 = vpack.c.bf16 %v2310_v8, %v2309_v1 }
 0xa8d   : > { %v2163_v49 = vmul.f32 %v4263_v44, %v2154_v45 }
 0xa8e   : > { %v2150_v43 = vadd.f32 1e-05, %v2147_v48  ;;  %5102 = vmatpush3.bf16.msra.mxu1 %v5101_v0 }
 0xa8f   : > { %v5388_v51 = vpop.eup %5387  ;;  %v2172_v52 = vadd.f32 %v4264_v47, %v2163_v49  ;;  %5103 = vmatprep.subr.bf16.mxu1 %v5541_v3 }
 0xa90   : > { %5389 = vrsqrt.f32 %v2150_v43  ;;  %v2155_v46 = vmul.f32 %v5388_v51, %v2131_v14  ;;  %v2313_v14 = vld [vmem:[%s6819_s15 + $0x70] sm:$0xff] }
 0xa91   : > { %4751 = vmatmul.mubr.msk.f32.vlgmr.msra.gmra.mrb[36].mxu0 %vm785_vm2, %v2172_v52  ;;  %v5107_v5 = vpack.c.bf16 %v2314_v16, %v2313_v14  ;;  %v4277_v16 = vld [vmem:[%s6887_s7 + $0x20] sm:$0xff] }
 0xa92   : > { %4753 = vmatprep.mubr.msk.f32.mxu0 %vm5542_vm0, %v5543_v6  ;;  %v2164_v54 = vmul.f32 %v4263_v44, %v2155_v46  ;;  %5105 = vmatpush3.bf16.msra.mxu1 %v5104_v25 }
 0xa93   : > { %5106 = vmatprep.subr.bf16.mxu1 %v5541_v3 }
 0xa94   : > { %v2173_v55 = vadd.f32 %v4264_v47, %v2164_v54  ;;  %v4272_v54 = vld [vmem:[%s6820_s16] ss:$0 sm:$0xff] }
 0xa96   : > { %4754 = vmatmul.mubr.msk.f32.gmra.mrb[38].mxu0 %vm785_vm2, %v2173_v55  ;;  %5108 = vmatpush3.bf16.msra.mxu1 %v5107_v5  ;;  %v4278_v5 = vld [vmem:[%s6887_s7 + $0x28] sm:$0xff] }
 0xa97   : > { %4756 = vmatprep.mubr.msk.f32.mxu0 %vm5542_vm0, %v5543_v6  ;;  %5122 = vmatprep.subr.bf16.mxu1 %v5541_v3 }
 0xa9a   : > { %v5390_v50 = vpop.eup %5389 }
 0xa9b   : > { %v2156_v56 = vmul.f32 %v5390_v50, %v2132_v28 }
 0xa9d   : > { %v2165_v57 = vmul.f32 %v4263_v44, %v2156_v56 }
 0xa9f   : > { %v2174_v61 = vadd.f32 %v4264_v47, %v2165_v57 }
 0xaa1   : > { %4757 = vmatmul.mubr.msk.f32.gmra.mrb[40].mxu0 %vm785_vm2, %v2174_v61 }
 0xaa2   : > { %4808 = vmatprep.mubr.msk.f32.mxu0 %vm5542_vm0, %v5543_v6 }
 0xb64   : > { %v2261_v27 = vpop.f32.mrb[36].mxu0 }
 0xb65   : > { %v2262_v28 = vadd.f32 %v4265_v26, %v2261_v27  ;;  %v4752_v29 = vpop.f32.mrb[37].mxu0  ;;  %v4279_v27 = vld [vmem:[%s6887_s7 + $0x30] sm:$0xff] }
 0xb67   : > { %v4269_v30 = vmul.f32 -1.702, %v2262_v28 }
 0xb69   : > { %v2281_v31 = vmul.f32 1.442695, %v4269_v30  ;;  %v2266_v32 = vpop.f32.mrb[38].mxu0 }
 0xb6a   : > { %v2267_v34 = vadd.f32 %v4265_v26, %v2266_v32  ;;  %v4755_v35 = vpop.f32.mrb[39].mxu0 }
 0xb6b   : > { %5391 = vpow2.f32 %v2281_v31 }
 0xb6c   : > { %v4270_v36 = vmul.f32 -1.702, %v2267_v34 }
 0xb6e   : > { %v2283_v37 = vmul.f32 1.442695, %v4270_v36 }
 0xb70   : > { %5393 = vpow2.f32 %v2283_v37 }
 0xb74   : > { %v2271_v39 = vpop.f32.mrb[40].mxu0 }
 0xb75   : > { %v5392_v60 = vpop.eup %5391  ;;  %v2272_v62 = vadd.f32 %v4265_v26, %v2271_v39  ;;  %v4758_v40 = vpop.f32.mrb[41].mxu0  ;;  %v5110_v26 = vpack.c.bf16 %v4278_v5, %v4277_v16  ;;  %v4275_v39 = vld [vmem:[%s6889_s23 + $0x1] ss:$0 sm:$0xff] }
 0xb76   : > { %v2287_v41 = vadd.f32 1.0, %v5392_v60  ;;  %v4276_v40 = vld [vmem:[%s6890_s5 + $0x1] ss:$0 sm:$0xff]  ;;  %s4371_s5 = sshll.u32 %s5695_s4, 4  ;;  %s5558_s4 = smov [#allocation3]  }
 0xb77   : > { %v4271_v33 = vmul.f32 -1.702, %v2272_v62  ;;  %5111 = vmatpush3.bf16.msra.mxu0 %v5110_v26 }
 0xb78   : > { %5395 = vrcp.f32 %v2287_v41  ;;  %5112 = vmatprep.subr.bf16.mxu0 %v5541_v3 }
 0xb79   : > { %v2285_v42 = vmul.f32 1.442695, %v4271_v33 }
 0xb7a   : > { %v5394_v44 = vpop.eup %5393 }
 0xb7b   : > { %v2288_v45 = vadd.f32 1.0, %v5394_v44  ;;  %5397 = vpow2.f32 %v2285_v42 }
 0xb7d   : > { %5399 = vrcp.f32 %v2288_v45 }
 0xb82   : > { %v5396_v38 = vpop.eup %5395 }
 0xb83   : > { %v2296_v47 = vmul.f32 %v5396_v38, %v2262_v28  ;;  %v4280_v28 = vld [vmem:[%s6887_s7 + $0x38] sm:$0xff] }
 0xb84   : > { %v5113_v29 = vpack.c.bf16 %v4280_v28, %v4279_v27 }
 0xb85   : > { %v5398_v48 = vpop.eup %5397  ;;  %4792 = vmatmul.mubr.f32.vlgmr.msra.gmra.mrb[30].mxu1 %v2296_v47 }
 0xb86   : > { %v2289_v49 = vadd.f32 1.0, %v5398_v48  ;;  %4794 = vmatprep.mubr.msk.f32.mxu1 %vm5542_vm0, %v5543_v6  ;;  %5114 = vmatpush3.bf16.msra.mxu0 %v5113_v29 }
 0xb87   : > { %v5400_v43 = vpop.eup %5399  ;;  %5115 = vmatprep.subr.bf16.mxu0 %v5541_v3 }
 0xb88   : > { %v2297_v51 = vmul.f32 %v5400_v43, %v2267_v34  ;;  %5401 = vrcp.f32 %v2289_v49 }
 0xb8a   : > { %4795 = vmatmul.mubr.f32.gmra.mrb[32].mxu1 %v2297_v51 }
 0xb8b   : > { %4797 = vmatprep.mubr.msk.f32.mxu1 %vm5542_vm0, %v5543_v6 }
 0xb92   : > { %v5402_v52 = vpop.eup %5401 }
 0xb93   : > { %v2298_v46 = vmul.f32 %v5402_v52, %v2272_v62 }
 0xb95   : > { %4798 = vmatmul.mubr.f32.gmra.mrb[34].mxu1 %v2298_v46 }
 0xb96   : > { %4853 = vmatprep.mubr.msk.f32.mxu1 %vm5542_vm0, %v5543_v6 }
 0xc58   : > { %v2388_v55 = vpop.f32.mrb[30].mxu1 }
 0xc59   : > { %v2389_v50 = vadd.f32 %v4272_v54, %v2388_v55  ;;  %v4793_v56 = vpop.f32.mrb[31].mxu1  ;;  %v4282_v55 = vld [vmem:[%s6812_s8 + $0x1] ss:$0 sm:$0xff] }
 0xc5b   : > { %v6249_v57 = vadd.f32 %v2389_v50, %v6131_v10 }
 0xc5d   : > { %v2393_v61 = vpop.f32.mrb[32].mxu1  ;;  %v2409_v53 = vsel %vm785_vm2, %v6249_v57, 0.0 }
 0xc5e   : > { %v2394_v2 = vadd.f32 %v4272_v54, %v2393_v61  ;;  %2410 = vadd.xlane.f32.xlu0 %v2409_v53  ;;  %v4796_v4 = vpop.f32.mrb[33].mxu1 }
 0xc60   : > { %v6254_v7 = vadd.f32 %v2394_v2, %v6136_v18 }
 0xc62   : > { %v2412_v9 = vsel %vm785_vm2, %v6254_v7, 0.0 }
 0xc63   : > { %2413 = vadd.xlane.f32.xlu1 %v2412_v9 }
 0xc68   : > { %v2398_v12 = vpop.f32.mrb[34].mxu1 }
 0xc69   : > { %v2399_v13 = vadd.f32 %v4272_v54, %v2398_v12  ;;  %v4799_v15 = vpop.f32.mrb[35].mxu1 }
 0xc6b   : > { %v6259_v10 = vadd.f32 %v2399_v13, %v6141_v59 }
 0xc6d   : > { %v2415_v17 = vsel %vm792_vm3, %v6259_v10, 0.0 }
 0xc6e   : > { %2416 = vadd.xlane.f32.xlu0 %v2415_v17 }
 0xceb   : > { %v2411_v19 = vpop.xlane.xlu0 %2410 }
 0xcec   : > { %v2418_v58 = vmul.f32 0.03125, %v2411_v19 }
 0xcee   : > { %v2421_v20 = vsub.f32 %v6249_v57, %v2418_v58 }
 0xcf0   : > { %v2414_v18 = vpop.xlane.xlu1 %2413  ;;  %v2424_v21 = vmul.f32 %v2421_v20, %v2421_v20 }
 0xcf1   : > { %v2419_v63 = vmul.f32 0.03125, %v2414_v18 }
 0xcf2   : > { %v2427_v22 = vsel %vm785_vm2, %v2424_v21, 0.0 }
 0xcf3   : > { %v2422_v1 = vsub.f32 %v6254_v7, %v2419_v63  ;;  %2428 = vadd.xlane.f32.xlu1 %v2427_v22 }
 0xcf5   : > { %v2425_v8 = vmul.f32 %v2422_v1, %v2422_v1 }
 0xcf7   : > { %v2430_v59 = vsel %vm785_vm2, %v2425_v8, 0.0 }
 0xcf8   : > { %2431 = vadd.xlane.f32.xlu0 %v2430_v59 }
 0xcfb   : > { %v2417_v0 = vpop.xlane.xlu0 %2416 }
 0xcfc   : > { %v2420_v23 = vmul.f32 0.03125, %v2417_v0 }
 0xcfe   : > { %v2423_v24 = vsub.f32 %v6259_v10, %v2420_v23 }
 0xd00   : > { %v2426_v25 = vmul.f32 %v2423_v24, %v2423_v24 }
 0xd02   : > { %v2433_v14 = vsel %vm792_vm3, %v2426_v25, 0.0 }
 0xd03   : > { %2434 = vadd.xlane.f32.xlu1 %v2433_v14 }
 0xd80   : > { %v2429_v30 = vpop.xlane.xlu1 %2428 }
 0xd81   : > { %v2436_v31 = vmul.f32 0.03125, %v2429_v30 }
 0xd83   : > { %v2439_v32 = vadd.f32 1e-05, %v2436_v31 }
 0xd85   : > { %5403 = vrsqrt.f32 %v2439_v32  ;;  %v2432_v34 = vpop.xlane.xlu0 %2431 }
 0xd86   : > { %v2437_v35 = vmul.f32 0.03125, %v2432_v34 }
 0xd88   : > { %v2440_v36 = vadd.f32 1e-05, %v2437_v35 }
 0xd8a   : > { %5405 = vrsqrt.f32 %v2440_v36 }
 0xd8f   : > { %v5404_v37 = vpop.eup %5403 }
 0xd90   : > { %v2445_v60 = vmul.f32 %v5404_v37, %v2421_v20  ;;  %v2435_v62 = vpop.xlane.xlu1 %2434 }
 0xd91   : > { %v2438_v41 = vmul.f32 0.03125, %v2435_v62 }
 0xd92   : > { %v2454_v33 = vmul.f32 %v4275_v39, %v2445_v60 }
 0xd93   : > { %v2441_v42 = vadd.f32 1e-05, %v2438_v41 }
 0xd94   : > { %v5406_v44 = vpop.eup %5405  ;;  %v2463_v45 = vadd.f32 %v4276_v40, %v2454_v33 }
 0xd95   : > { %5407 = vrsqrt.f32 %v2441_v42  ;;  %v2446_v38 = vmul.f32 %v5406_v44, %v2422_v1 }
 0xd96   : > { %4809 = vmatmul.mubr.msk.f32.vlgmr.msra.gmra.mrb[42].mxu0 %vm785_vm2, %v2463_v45 }
 0xd97   : > { %4811 = vmatprep.mubr.msk.f32.mxu0 %vm5542_vm0, %v5543_v6  ;;  %v2455_v47 = vmul.f32 %v4275_v39, %v2446_v38 }
 0xd99   : > { %v2464_v48 = vadd.f32 %v4276_v40, %v2455_v47 }
 0xd9b   : > { %4812 = vmatmul.mubr.msk.f32.gmra.mrb[44].mxu0 %vm785_vm2, %v2464_v48 }
 0xd9c   : > { %4814 = vmatprep.mubr.msk.f32.mxu0 %vm5542_vm0, %v5543_v6 }
 0xd9f   : > { %v5408_v49 = vpop.eup %5407 }
 0xda0   : > { %v2447_v43 = vmul.f32 %v5408_v49, %v2423_v24 }
 0xda2   : > { %v2456_v51 = vmul.f32 %v4275_v39, %v2447_v43 }
 0xda4   : > { %v2465_v52 = vadd.f32 %v4276_v40, %v2456_v51 }
 0xda6   : > { %4815 = vmatmul.mubr.msk.f32.gmra.mrb[46].mxu0 %vm785_vm2, %v2465_v52 }
 0xda7   : > { %4823 = vmatprep.mubr.msk.f32.mxu0 %vm5542_vm0, %v5543_v6 }
 0xe69   : > { %v2554_v46 = vpop.f32.mrb[42].mxu0 }
 0xe6a   : > { %v4810_v54 = vpop.f32.mrb[43].mxu0  ;;  %v2555_v56 = vadd.f32 %v4282_v55, %v2554_v46 }
 0xe6c   : > { %v2568_v13 = vmul.f32 0.35355338, %v2555_v56 }
 0xe6e   : > { %v2559_v50 = vpop.f32.mrb[44].mxu0 }
 0xe6f   : > { %v2560_v61 = vadd.f32 %v4282_v55, %v2559_v50  ;;  %v4813_v53 = vpop.f32.mrb[45].mxu0 }
 0xe71   : > { %v6301_v2 = vpack.i.bf16 %v2560_v61, %v2555_v56  ;;  %v6321_v17 = vmul.f32 0.35355338, %v2560_v61 }
 0xe73   : > { %5286 = vrot.lane.b32.xlu0 %v6301_v2, %s6894_s2 }
 0xe79   : > { %v2564_v4 = vpop.f32.mrb[46].mxu0 }
 0xe7a   : > { %v6305_v9 = vadd.f32 %v4282_v55, %v2564_v4  ;;  %v4816_v12 = vpop.f32.mrb[47].mxu0 }
 0xe7c   : > { %2820 = vrot.lane.b32.xlu0 %v6305_v9, %s6895_s29  ;;  %2578 = vrot.lane.b32.xlu1 %v6305_v9, %s6894_s2  ;;  %v6315_v15 = vmul.f32 0.35355338, %v6305_v9  ;;  %s6902_s2 = smov 56  }
 0xe80   : > { %2810 = vrot.lane.b32.xlu0 %v2568_v13, %s6896_s25  ;;  %5291 = vrot.lane.b32.xlu1 %v6301_v2, %s6895_s29  ;;  %s6903_s29 = smov 48  }
 0xe84   : > { %5296 = vrot.lane.b32.xlu1 %v6301_v2, %s6897_s0  ;;  %2814 = vrot.lane.b32.xlu0 %v6315_v15, %s6896_s25 }
 0xe88   : > { %2812 = vrot.lane.b32.xlu1 %v6321_v17, %s6896_s25  ;;  %5301 = vrot.lane.b32.xlu0 %v6301_v2, %s6898_s27  ;;  %s6904_s25 = smov 40  }
 0xe8c   : > { %3071 = vrot.lane.b32.xlu1 %v6305_v9, %s6897_s0  ;;  %3063 = vrot.lane.b32.xlu0 %v6321_v17, %s6899_s3  ;;  %s6905_s0 = smov 16  }
 0xe90   : > { %3061 = vrot.lane.b32.xlu1 %v2568_v13, %s6899_s3  ;;  %3322 = vrot.lane.b32.xlu0 %v6305_v9, %s6898_s27  ;;  %s6906_s27 = smov 24  }
 0xe94   : > { %3065 = vrot.lane.b32.xlu1 %v6315_v15, %s6899_s3  ;;  %5306 = vrot.lane.b32.xlu0 %v6301_v2, %s6900_s24 }
 0xe98   : > { %3312 = vrot.lane.b32.xlu1 %v2568_v13, %s6901_s1 }
 0xe9c   : > { %2712 = vrot.lane.b32.xlu1 %v6305_v9, %s6900_s24  ;;  %s5481_s24 = sshll.u32 %s5558_s4, 4  ;;  %s5482_s24 = int_to_ptr.vmem [resolvable:$false] %s5481_s24 }
 0xe9d   : > { %s5483_s7 = scalar_lea.vmem %s5482_s24, 32 }
 0xee5   : > { %v5287_v19 = vpop.permute.xlu0 %5286 }
 0xee6   : > { %v5289_v58 = vunpack.i.h.bf16 %v5287_v19  ;;  %v5288_v20 = vunpack.i.l.bf16 %v5287_v19 }
 0xee8   : > { %v5116_v18 = vpack.c.bf16 %v5289_v58, %v5288_v20 }
 0xeea   : > { %5118 = vmatpush3.bf16.xpose.msk.msra.mxu0 %vm5867_vm5, %v5116_v18 }
 0xeeb   : > { %4821 = vmatprep.subr.mxu0 %v5543_v6 }
 0xeee   : > { %v2821_v21 = vpop.permute.xlu0 %2820  ;;  %v2579_v63 = vpop.permute.xlu1 %2578 }
 0xef2   : > { %v2811_v22 = vpop.permute.xlu0 %2810  ;;  %4822 = vmatpush3.xpose.msk.msra.mxu0 %vm1016_vm4, %v2579_v63  ;;  %v5292_v1 = vpop.permute.xlu1 %5291 }
 0xef3   : > { %v5294_v8 = vunpack.i.h.bf16 %v5292_v1  ;;  %v5293_v59 = vunpack.i.l.bf16 %v5292_v1  ;;  %5119 = vmatprep.subr.bf16.mxu0 %v5541_v3 }
 0xef5   : > { %v5123_v0 = vpack.c.bf16 %v5294_v8, %v5293_v59  ;;  %4824 = vmatmul.mubr.msk.f32.vlgmr.msra.gmra.mrb[48].mxu0 %vm1016_vm4, %v2568_v13 }
 0xef6   : > { %v5297_v23 = vpop.permute.xlu1 %5296  ;;  %v2815_v24 = vpop.permute.xlu0 %2814  ;;  %4826 = vmatprep.mubr.msk.f32.mxu0 %vm5542_vm0, %v5543_v6 }
 0xef7   : > { %5125 = vmatpush3.bf16.xpose.msk.msra.mxu1 %vm5867_vm5, %v5123_v0  ;;  %v5299_v16 = vunpack.i.h.bf16 %v5297_v23  ;;  %v5298_v5 = vunpack.i.l.bf16 %v5297_v23 }
 0xef8   : > { %4851 = vmatprep.subr.mxu1 %v5543_v6 }
 0xef9   : > { %4827 = vmatmul.mubr.msk.f32.gmra.mrb[50].mxu0 %vm1016_vm4, %v6321_v17  ;;  %v5130_v28 = vpack.c.bf16 %v5299_v16, %v5298_v5 }
 0xefa   : > { %v2813_v25 = vpop.permute.xlu1 %2812  ;;  %v5302_v14 = vpop.permute.xlu0 %5301  ;;  %4829 = vmatprep.mubr.msk.f32.mxu0 %vm5542_vm0, %v5543_v6 }
 0xefb   : > { %v5304_v36 = vunpack.i.h.bf16 %v5302_v14  ;;  %v5303_v37 = vunpack.i.l.bf16 %v5302_v14 }
 0xefd   : > { %4830 = vmatmul.mubr.msk.f32.gmra.mrb[52].mxu0 %vm1016_vm4, %v6315_v15  ;;  %v5137_v62 = vpack.c.bf16 %v5304_v36, %v5303_v37 }
 0xefe   : > { %v3072_v26 = vpop.permute.xlu1 %3071  ;;  %v3064_v27 = vpop.permute.xlu0 %3063  ;;  %4838 = vmatprep.mubr.msk.f32.mxu0 %vm5542_vm0, %v5543_v6 }
 0xeff   : > { %4852 = vmatpush3.xpose.msk.msra.mxu1 %vm1016_vm4, %v2821_v21 }
 0xf00   : > { %5129 = vmatprep.subr.bf16.mxu1 %v5541_v3 }
 0xf02   : > { %v3062_v29 = vpop.permute.xlu1 %3061  ;;  %4854 = vmatmul.mubr.msk.f32.vlgmr.msra.gmra.mrb[36].mxu1 %vm1016_vm4, %v2811_v22  ;;  %v3323_v30 = vpop.permute.xlu0 %3322 }
 0xf03   : > { %5132 = vmatpush3.bf16.xpose.msk.msra.mxu1 %vm5867_vm5, %v5130_v28  ;;  %4856 = vmatprep.mubr.msk.f32.mxu1 %vm5542_vm0, %v5543_v6 }
 0xf04   : > { %4881 = vmatprep.subr.mxu1 %v5543_v6 }
 0xf06   : > { %4857 = vmatmul.mubr.msk.f32.gmra.mrb[38].mxu1 %vm1016_vm4, %v2813_v25  ;;  %v3066_v31 = vpop.permute.xlu1 %3065  ;;  %v5307_v32 = vpop.permute.xlu0 %5306 }
 0xf07   : > { %v5309_v34 = vunpack.i.h.bf16 %v5307_v32  ;;  %v5308_v35 = vunpack.i.l.bf16 %v5307_v32  ;;  %4859 = vmatprep.mubr.msk.f32.mxu1 %vm5542_vm0, %v5543_v6 }
 0xf09   : > { %v5120_v39 = vpack.c.bf16 %v5309_v34, %v5308_v35 }
 0xf0a   : > { %v3313_v60 = vpop.permute.xlu1 %3312  ;;  %4860 = vmatmul.mubr.msk.f32.gmra.mrb[40].mxu1 %vm1016_vm4, %v2815_v24 }
 0xf0b   : > { %5121 = vmatpush3.bf16.msra.mxu0 %v5120_v39  ;;  %4882 = vmatpush3.xpose.msk.msra.mxu1 %vm1016_vm4, %v3072_v26 }
 0xf0c   : > { %4883 = vmatprep.mubr.msk.f32.mxu1 %vm5542_vm0, %v5543_v6  ;;  %5136 = vmatprep.subr.bf16.mxu1 %v5541_v3 }
 0xf0d   : > { %4836 = vmatprep.subr.mxu0 %v5543_v6 }
 0xf0e   : > { %v2713_v40 = vpop.permute.xlu1 %2712  ;;  %4884 = vmatmul.mubr.msk.f32.vlgmr.msra.gmra.mrb[42].mxu1 %vm1016_vm4, %v3062_v29 }
 0xf0f   : > { %4837 = vmatpush3.msk.msra.mxu0 %vm1164_vm6, %v2713_v40  ;;  %5139 = vmatpush3.bf16.xpose.msk.msra.mxu1 %vm5867_vm5, %v5137_v62 }
 0xf10   : > { %4886 = vmatprep.mubr.msk.f32.mxu1 %vm5542_vm0, %v5543_v6  ;;  %4911 = vmatprep.subr.mxu1 %v5543_v6 }
 0xf11   : > { %5126 = vmatprep.subr.bf16.mxu0 %v5541_v3 }
 0xf12   : > { %4887 = vmatmul.mubr.msk.f32.gmra.mrb[44].mxu1 %vm1016_vm4, %v3064_v27 }
 0xf13   : > { %4889 = vmatprep.mubr.msk.f32.mxu1 %vm5542_vm0, %v5543_v6 }
 0xf16   : > { %4890 = vmatmul.mubr.msk.f32.gmra.mrb[46].mxu1 %vm1016_vm4, %v3066_v31 }
 0xf17   : > { %4912 = vmatpush3.xpose.msk.msra.mxu1 %vm1016_vm4, %v3323_v30  ;;  %4913 = vmatprep.mubr.msk.f32.mxu1 %vm5542_vm0, %v5543_v6 }
 0xf18   : > { %5143 = vmatprep.subr.bf16.mxu1 %v5541_v3 }
 0xf1a   : > { %4914 = vmatmul.mubr.msk.f32.vlgmr.msra.gmra.mrb[48].mxu1 %vm1016_vm4, %v3313_v60 }
 0xf1b   : > { %4916 = vmatprep.mubr.msk.f32.mxu1 %vm5542_vm0, %v5543_v6 }
 0xfc8   : > { %v2661_v11 = vpop.f32.mrb[48].mxu0 }
 0xfc9   : > { %v4825_v41 = vpop.f32.mrb[49].mxu0  ;;  %v2675_v33 = vsel %vm1112_vm7, %v2661_v11, -inf }
 0xfca   : > { %2676 = vmax.xlane.f32.xlu0 %v2675_v33 }
 0xfcc   : > { %v2666_v42 = vpop.f32.mrb[50].mxu0 }
 0xfcd   : > { %v4828_v44 = vpop.f32.mrb[51].mxu0  ;;  %v2678_v45 = vsel %vm1112_vm7, %v2666_v42, -inf }
 0xfce   : > { %2679 = vmax.xlane.f32.xlu1 %v2678_v45 }
 0xfd0   : > { %v2671_v38 = vpop.f32.mrb[52].mxu0 }
 0xfd1   : > { %v4831_v47 = vpop.f32.mrb[53].mxu0  ;;  %v2681_v54 = vsel %vm1119_vm8, %v2671_v38, -inf }
 0xfd5   : > { %v2900_v48 = vpop.f32.mrb[36].mxu1 }
 0xfd6   : > { %v4855_v49 = vpop.f32.mrb[37].mxu1  ;;  %v2914_v43 = vsel %vm1112_vm7, %v2900_v48, -inf }
 0xfd7   : > { %2915 = vmax.xlane.f32.xlu0 %v2914_v43 }
 0xfd9   : > { %v2905_v51 = vpop.f32.mrb[38].mxu1 }
 0xfda   : > { %v4858_v52 = vpop.f32.mrb[39].mxu1  ;;  %v2917_v46 = vsel %vm1112_vm7, %v2905_v51, -inf }
 0xfdb   : > { %2918 = vmax.xlane.f32.xlu1 %v2917_v46  ;;  %2682 = vmax.xlane.f32.xlu0 %v2681_v54 }
 0xfdd   : > { %v6401_v55 = vpop.f32.mrb[40].mxu1 }
 0xfde   : > { %v4861_v50 = vpop.f32.mrb[41].mxu1  ;;  %v2920_v56 = vsel %vm1119_vm8, %v6401_v55, -inf }
 0xfdf   : > { %2921 = vmax.xlane.f32.xlu0 %v2920_v56 }
 0xfe1   : > { %v6405_v61 = vpop.f32.mrb[42].mxu1 }
 0xfe2   : > { %v4885_v53 = vpop.f32.mrb[43].mxu1  ;;  %v3165_v4 = vsel %vm1112_vm7, %v6405_v61, -inf }
 0xfe3   : > { %3166 = vmax.xlane.f32.xlu1 %v3165_v4 }
 0xfe5   : > { %v3156_v12 = vpop.f32.mrb[44].mxu1 }
 0xfe6   : > { %v4888_v13 = vpop.f32.mrb[45].mxu1  ;;  %v3168_v19 = vsel %vm1112_vm7, %v3156_v12, -inf }
 0xfe7   : > { %3169 = vmax.xlane.f32.xlu0 %v3168_v19 }
 0xfe9   : > { %v6410_v58 = vpop.f32.mrb[46].mxu1 }
 0xfea   : > { %v4891_v20 = vpop.f32.mrb[47].mxu1  ;;  %v3171_v18 = vsel %vm1119_vm8, %v6410_v58, -inf }
 0xfeb   : > { %3172 = vmax.xlane.f32.xlu1 %v3171_v18 }
 0xfed   : > { %v3402_v21 = vpop.f32.mrb[48].mxu1 }
 0xfee   : > { %v4915_v63 = vpop.f32.mrb[49].mxu1  ;;  %v3416_v22 = vsel %vm1112_vm7, %v3402_v21, -inf }
 0xfef   : > { %3417 = vmax.xlane.f32.xlu0 %v3416_v22 }
 0xffc   : > { %5311 = vrot.lane.b32.xlu1 %v6301_v2, %s6902_s2 }
0x1005   : > { %2951 = vrot.lane.b32.xlu0 %v6305_v9, %s6902_s2 }
0x1057   : > { %v2677_v1 = vpop.xlane.xlu0 %2676 }
0x1058   : > { %v2684_v8 = vsub.f32 %v2661_v11, %v2677_v1 }
0x105a   : > { %v2687_v59 = vmul.f32 1.442695, %v2684_v8 }
0x105b   : > { %v2680_v0 = vpop.xlane.xlu1 %2679 }
0x105c   : > { %5409 = vpow2.f32 %v2687_v59  ;;  %v2685_v23 = vsub.f32 %v2666_v42, %v2680_v0 }
0x105e   : > { %v2689_v16 = vmul.f32 1.442695, %v2685_v23 }
0x1064   : > { %v2916_v24 = vpop.xlane.xlu0 %2915 }
0x1065   : > { %v2923_v25 = vsub.f32 %v2900_v48, %v2916_v24 }
0x1066   : > { %v6419_v14 = vpop.eup %5409 }
0x1067   : > { %v2926_v5 = vmul.f32 1.442695, %v2923_v25  ;;  %v2693_v26 = vsel %vm1112_vm7, %v6419_v14, 0.0 }
0x1068   : > { %2694 = vadd.xlane.f32.xlu1 %v2693_v26  ;;  %v2919_v27 = vpop.xlane.xlu1 %2918  ;;  %v2683_v28 = vpop.xlane.xlu0 %2682 }
0x1069   : > { %5411 = vpow2.f32 %v2926_v5  ;;  %v2924_v29 = vsub.f32 %v2905_v51, %v2919_v27  ;;  %v2686_v30 = vsub.f32 %v2671_v38, %v2683_v28 }
0x106a   : > { %5413 = vpow2.f32 %v2689_v16 }
0x106b   : > { %v2928_v31 = vmul.f32 1.442695, %v2924_v29  ;;  %v2691_v32 = vmul.f32 1.442695, %v2686_v30 }
0x106c   : > { %v2922_v11 = vpop.xlane.xlu0 %2921 }
0x106d   : > { %5415 = vpow2.f32 %v2928_v31  ;;  %v2925_v44 = vsub.f32 %v6401_v55, %v2922_v11 }
0x106e   : > { %5417 = vpow2.f32 %v2691_v32 }
0x106f   : > { %v2930_v48 = vmul.f32 1.442695, %v2925_v44 }
0x1070   : > { %v3167_v47 = vpop.xlane.xlu1 %3166 }
0x1071   : > { %v3174_v49 = vsub.f32 %v6405_v61, %v3167_v47 }
0x1073   : > { %v6423_v34 = vpop.eup %5411  ;;  %v3177_v52 = vmul.f32 1.442695, %v3174_v49 }
0x1074   : > { %v2932_v35 = vsel %vm1112_vm7, %v6423_v34, 0.0  ;;  %v6427_v36 = vpop.eup %5413  ;;  %v3170_v41 = vpop.xlane.xlu0 %3169 }
0x1075   : > { %2933 = vadd.xlane.f32.xlu0 %v2932_v35  ;;  %v2696_v60 = vsel %vm1112_vm7, %v6427_v36, 0.0  ;;  %v3175_v33 = vsub.f32 %v3156_v12, %v3170_v41 }
0x1077   : > { %v6429_v37 = vpop.eup %5415  ;;  %v3179_v45 = vmul.f32 1.442695, %v3175_v33 }
0x1078   : > { %v2935_v39 = vsel %vm1112_vm7, %v6429_v37, 0.0  ;;  %v6435_v62 = vpop.eup %5417  ;;  %v3173_v51 = vpop.xlane.xlu1 %3172 }
0x1079   : > { %2936 = vadd.xlane.f32.xlu1 %v2935_v39  ;;  %2697 = vadd.xlane.f32.xlu0 %v2696_v60  ;;  %v2699_v40 = vsel %vm1119_vm8, %v6435_v62, 0.0  ;;  %5419 = vpow2.f32 %v3179_v45  ;;  %v3176_v46 = vsub.f32 %v6410_v58, %v3173_v51 }
0x107a   : > { %5421 = vpow2.f32 %v2930_v48 }
0x107b   : > { %v3181_v54 = vmul.f32 1.442695, %v3176_v46 }
0x107c   : > { %v3418_v42 = vpop.xlane.xlu0 %3417  ;;  %v5312_v20 = vpop.permute.xlu1 %5311 }
0x107d   : > { %2700 = vadd.xlane.f32.xlu1 %v2699_v40  ;;  %v3425_v38 = vsub.f32 %v3402_v21, %v3418_v42  ;;  %v5314_v21 = vunpack.i.h.bf16 %v5312_v20  ;;  %v5313_v63 = vunpack.i.l.bf16 %v5312_v20 }
0x107f   : > { %v3428_v43 = vmul.f32 1.442695, %v3425_v38  ;;  %v5127_v59 = vpack.c.bf16 %v5314_v21, %v5313_v63 }
0x1080   : > { %v2952_v22 = vpop.permute.xlu0 %2951 }
0x1081   : > { %5423 = vpow2.f32 %v3428_v43 }
0x1082   : > { %5425 = vpow2.f32 %v3177_v52 }
0x1083   : > { %v6446_v50 = vpop.eup %5419  ;;  %5427 = vpow2.f32 %v3181_v54 }
0x1084   : > { %v6448_v55 = vpop.eup %5421  ;;  %v3186_v56 = vsel %vm1112_vm7, %v6446_v50, 0.0 }
0x1085   : > { %v2938_v61 = vsel %vm1119_vm8, %v6448_v55, 0.0 }
0x108b   : > { %v6452_v53 = vpop.eup %5423 }
0x108c   : > { %v3434_v4 = vsel %vm1112_vm7, %v6452_v53, 0.0  ;;  %v6458_v12 = vpop.eup %5425 }
0x108d   : > { %v3183_v13 = vsel %vm1112_vm7, %v6458_v12, 0.0  ;;  %v6462_v19 = vpop.eup %5427 }
0x108e   : > { %5316 = vrot.lane.b32.xlu1 %v6301_v2, %s6903_s29  ;;  %v3189_v58 = vsel %vm1119_vm8, %v6462_v19, 0.0 }
0x108f   : > { %3202 = vrot.lane.b32.xlu0 %v6305_v9, %s6903_s29 }
0x10ae   : > { %3187 = vadd.xlane.f32.xlu0 %v3186_v56 }
0x10b2   : > { %2939 = vadd.xlane.f32.xlu1 %v2938_v61  ;;  %3435 = vadd.xlane.f32.xlu0 %v3434_v4 }
0x10b6   : > { %3184 = vadd.xlane.f32.xlu1 %v3183_v13 }
0x10ba   : > { %3190 = vadd.xlane.f32.xlu1 %v3189_v58  ;;  %v4327_v58 = vld [vmem:[%s6813_s9 + $0x28] sm:$0xff] }
0x10c8   : > { %5321 = vrot.lane.b32.xlu0 %v6301_v2, %s6904_s25 }
0x10cb   : > { %3453 = vrot.lane.b32.xlu1 %v6305_v9, %s6904_s25  ;;  %s674_s25 = sand.u32 1, %s5531_s28  }
0x10cc   : > { %3314 = vrot.lane.b32.xlu0 %v6321_v17, %s6901_s1  ;;  %s4136_s29 = scalar_lea.sflag [#allocation4], %s674_s25 }
0x10cf   : > { %3316 = vrot.lane.b32.xlu1 %v6315_v15, %s6901_s1 }
0x10f5   : > { %v2695_v18 = vpop.xlane.xlu1 %2694 }
0x10f6   : > { %5429 = vrcp.f32 %v2695_v18 }
0x1100   : > { %v5430_v1 = vpop.eup %5429 }
0x1101   : > { %v2705_v8 = vmul.f32 %v5430_v1, %v6419_v14 }
0x1102   : > { %v2934_v2 = vpop.xlane.xlu0 %2933 }
0x1103   : > { %4839 = vmatmul.mubr.msk.f32.vlgmr.msra.gmra.mrb[54].mxu0 %vm1112_vm7, %v2705_v8 }
0x1104   : > { %5128 = vmatpush3.bf16.msra.mxu0 %v5127_v59  ;;  %4841 = vmatprep.mubr.msk.f32.mxu0 %vm5542_vm0, %v5543_v6 }
0x1105   : > { %4866 = vmatprep.subr.mxu0 %v5543_v6 }
0x1106   : > { %v2937_v9 = vpop.xlane.xlu1 %2936  ;;  %v2698_v15 = vpop.xlane.xlu0 %2697 }
0x1107   : > { %5431 = vrcp.f32 %v2698_v15 }
0x1108   : > { %4867 = vmatpush3.msk.msra.mxu0 %vm1164_vm6, %v2952_v22 }
0x1109   : > { %5133 = vmatprep.subr.bf16.mxu0 %v5541_v3 }
0x110a   : > { %v2701_v17 = vpop.xlane.xlu1 %2700  ;;  %v3203_v31 = vpop.permute.xlu0 %3202 }
0x110b   : > { %5433 = vrcp.f32 %v2701_v17 }
0x110c   : > { %5435 = vrcp.f32 %v2934_v2  ;;  %v4328_v2 = vld [vmem:[%s6813_s9 + $0x30] sm:$0xff] }
0x110d   : > { %5437 = vrcp.f32 %v2937_v9  ;;  %v4329_v9 = vld [vmem:[%s6813_s9 + $0x38] sm:$0xff] }
0x110e   : > { %v5317_v25 = vpop.permute.xlu1 %5316  ;;  %v5147_v17 = vpack.c.bf16 %v4329_v9, %v4328_v2  ;;  %v6617_v2 = vld [vmem:[%s6816_s12 + $0x1] ss:$0 sm:$0xff] }
0x110f   : > { %v5319_v5 = vunpack.i.h.bf16 %v5317_v25  ;;  %v5318_v26 = vunpack.i.l.bf16 %v5317_v25 }
0x1111   : > { %v5432_v0 = vpop.eup %5431  ;;  %v5134_v29 = vpack.c.bf16 %v5319_v5, %v5318_v26 }
0x1112   : > { %v2706_v23 = vmul.f32 %v5432_v0, %v6427_v36 }
0x1114   : > { %4842 = vmatmul.mubr.msk.f32.gmra.mrb[56].mxu0 %vm1112_vm7, %v2706_v23 }
0x1115   : > { %v5434_v24 = vpop.eup %5433  ;;  %4844 = vmatprep.mubr.msk.f32.mxu0 %vm5542_vm0, %v5543_v6 }
0x1116   : > { %v2707_v14 = vmul.f32 %v5434_v24, %v6435_v62  ;;  %v5436_v16 = vpop.eup %5435 }
0x1117   : > { %v2944_v27 = vmul.f32 %v5436_v16, %v6423_v34  ;;  %v5438_v28 = vpop.eup %5437 }
0x1118   : > { %4845 = vmatmul.mubr.msk.f32.gmra.mrb[58].mxu0 %vm1112_vm7, %v2707_v14  ;;  %v2945_v30 = vmul.f32 %v5438_v28, %v6429_v37 }
0x1119   : > { %4868 = vmatprep.mubr.msk.f32.mxu0 %vm5542_vm0, %v5543_v6 }
0x111c   : > { %4869 = vmatmul.mubr.msk.f32.vlgmr.msra.gmra.mrb[60].mxu0 %vm1112_vm7, %v2944_v27 }
0x111d   : > { %5135 = vmatpush3.bf16.msra.mxu0 %v5134_v29  ;;  %4871 = vmatprep.mubr.msk.f32.mxu0 %vm5542_vm0, %v5543_v6 }
0x111e   : > { %4896 = vmatprep.subr.mxu0 %v5543_v6 }
0x1120   : > { %4872 = vmatmul.mubr.msk.f32.gmra.mrb[62].mxu0 %vm1112_vm7, %v2945_v30 }
0x1121   : > { %4897 = vmatpush3.msk.msra.mxu0 %vm1164_vm6, %v3203_v31  ;;  %4874 = vmatprep.mubr.msk.f32.mxu0 %vm5542_vm0, %v5543_v6 }
0x1122   : > { %5140 = vmatprep.subr.bf16.mxu0 %v5541_v3 }
0x113b   : > { %v3188_v32 = vpop.xlane.xlu0 %3187 }
0x113f   : > { %v2940_v34 = vpop.xlane.xlu1 %2939  ;;  %v3436_v35 = vpop.xlane.xlu0 %3435 }
0x1140   : > { %5439 = vrcp.f32 %v2940_v34 }
0x1143   : > { %v3185_v36 = vpop.xlane.xlu1 %3184  ;;  %v5322_v39 = vpop.permute.xlu0 %5321 }
0x1144   : > { %5441 = vrcp.f32 %v3185_v36  ;;  %v5324_v41 = vunpack.i.h.bf16 %v5322_v39  ;;  %v5323_v33 = vunpack.i.l.bf16 %v5322_v39 }
0x1145   : > { %5443 = vrcp.f32 %v3188_v32 }
0x1146   : > { %v5141_v47 = vpack.c.bf16 %v5324_v41, %v5323_v33 }
0x1147   : > { %v3191_v60 = vpop.xlane.xlu1 %3190  ;;  %v3315_v37 = vpop.permute.xlu0 %3314 }
0x1148   : > { %4917 = vmatmul.mubr.msk.f32.gmra.mrb[50].mxu1 %vm1016_vm4, %v3315_v37  ;;  %5445 = vrcp.f32 %v3191_v60 }
0x1149   : > { %4919 = vmatprep.mubr.msk.f32.mxu1 %vm5542_vm0, %v5543_v6  ;;  %5447 = vrcp.f32 %v3436_v35 }
0x114a   : > { %v5440_v62 = vpop.eup %5439 }
0x114b   : > { %v3454_v40 = vpop.permute.xlu1 %3453  ;;  %v2946_v11 = vmul.f32 %v5440_v62, %v6448_v55 }
0x114d   : > { %4875 = vmatmul.mubr.msk.f32.gmra.mrb[64].mxu0 %vm1112_vm7, %v2946_v11 }
0x114e   : > { %v5442_v42 = vpop.eup %5441  ;;  %4898 = vmatprep.mubr.msk.f32.mxu0 %vm5542_vm0, %v5543_v6 }
0x114f   : > { %v3195_v44 = vmul.f32 %v5442_v42, %v6458_v12  ;;  %v3317_v45 = vpop.permute.xlu1 %3316  ;;  %v5444_v38 = vpop.eup %5443 }
0x1150   : > { %4920 = vmatmul.mubr.msk.f32.gmra.mrb[52].mxu1 %vm1016_vm4, %v3317_v45  ;;  %v3196_v48 = vmul.f32 %v5444_v38, %v6446_v50 }
0x1151   : > { %4899 = vmatmul.mubr.msk.f32.vlgmr.msra.gmra.mrb[66].mxu0 %vm1112_vm7, %v3195_v44  ;;  %4945 = vmatprep.mubr.msk.f32.mxu1 %vm5542_vm0, %v5543_v6 }
0x1152   : > { %5142 = vmatpush3.bf16.msra.mxu0 %v5141_v47  ;;  %4901 = vmatprep.mubr.msk.f32.mxu0 %vm5542_vm0, %v5543_v6  ;;  %v5446_v49 = vpop.eup %5445 }
0x1153   : > { %4926 = vmatprep.subr.mxu0 %v5543_v6  ;;  %v3197_v43 = vmul.f32 %v5446_v49, %v6462_v19  ;;  %v5448_v51 = vpop.eup %5447  ;;  %v4326_v19 = vld [vmem:[%s6813_s9 + $0x20] sm:$0xff] }
0x1154   : > { %v3446_v52 = vmul.f32 %v5448_v51, %v6452_v53  ;;  %v5144_v20 = vpack.c.bf16 %v4327_v58, %v4326_v19 }
0x1155   : > { %4902 = vmatmul.mubr.msk.f32.gmra.mrb[68].mxu0 %vm1112_vm7, %v3196_v48 }
0x1156   : > { %4927 = vmatpush3.msk.msra.mxu0 %vm1164_vm6, %v3454_v40  ;;  %4904 = vmatprep.mubr.msk.f32.mxu0 %vm5542_vm0, %v5543_v6  ;;  %v6567_v40 = vld [vmem:[%s6814_s10 + $0x1] ss:$0 sm:$0xff] }
0x1157   : > { %5149 = vmatprep.subr.bf16.mxu0 %v5541_v3  ;;  %5145 = vmatpush3.bf16.msra.mxu1 %v5144_v20 }
0x1158   : > { %5146 = vmatprep.subr.bf16.mxu1 %v5541_v3 }
0x1159   : > { %4905 = vmatmul.mubr.msk.f32.gmra.mrb[70].mxu0 %vm1112_vm7, %v3197_v43 }
0x115a   : > { %4928 = vmatprep.mubr.msk.f32.mxu0 %vm5542_vm0, %v5543_v6 }
0x115b   : > { %5148 = vmatpush3.bf16.msra.mxu1 %v5147_v17 }
0x115c   : > { %5155 = vmatprep.subr.bf16.mxu1 %v5541_v3 }
0x115d   : > { %4929 = vmatmul.mubr.msk.f32.vlgmr.msra.gmra.mrb[72].mxu0 %vm1112_vm7, %v3446_v52 }
0x115e   : > { %4931 = vmatprep.mubr.msk.f32.mxu0 %vm5542_vm0, %v5543_v6 }
0x11d6   : > { %v2793_v46 = vpop.f32.mrb[54].mxu0 }
0x11d7   : > { %2807 = vst.msk [vmem:[#allocation2] sm:$0xff] %vm1016_vm4, %v2793_v46  ;;  %v4840_v54 = vpop.f32.mrb[55].mxu0 }
0x11e7   : > { %v2798_v50 = vpop.f32.mrb[56].mxu0 }
0x11e8   : > { %2808 = vst.msk [vmem:[#allocation2 + $0x8] sm:$0xff] %vm1016_vm4, %v2798_v50  ;;  %v4843_v55 = vpop.f32.mrb[57].mxu0 }
0x11eb   : > { %v2803_v56 = vpop.f32.mrb[58].mxu0 }
0x11ec   : > { %2809 = vst.msk [vmem:[#allocation2 + $0x10] sm:$0x1] %vm1249_vm9, %v2803_v56  ;;  %v4846_v61 = vpop.f32.mrb[59].mxu0 }
0x11ed   : > { %v4339_v61 = vld [vmem:[%s6817_s13 + $0x20] sm:$0xff] }
0x11ef   : > { %v3032_v4 = vpop.f32.mrb[60].mxu0 }
0x11f0   : > { %3049 = vrot.lane.b32.xlu0 %v3032_v4, %s6893_s26  ;;  %v4870_v53 = vpop.f32.mrb[61].mxu0  ;;  %v4340_v4 = vld [vmem:[%s6817_s13 + $0x28] sm:$0xff] }
0x11f1   : > { %v5150_v53 = vpack.c.bf16 %v4340_v4, %v4339_v61 }
0x11f3   : > { %v6533_v12 = vpop.f32.mrb[62].mxu0  ;;  %5151 = vmatpush3.bf16.msra.mxu0 %v5150_v53 }
0x11f4   : > { %v4873_v13 = vpop.f32.mrb[63].mxu0  ;;  %5152 = vmatprep.subr.bf16.mxu0 %v5541_v3 }
0x11f5   : > { %v4342_v13 = vld [vmem:[%s6817_s13 + $0x38] sm:$0xff] }
0x121b   : > { %v3407_v18 = vpop.f32.mrb[50].mxu1 }
0x121c   : > { %v4918_v21 = vpop.f32.mrb[51].mxu1  ;;  %v3419_v5 = vsel %vm1112_vm7, %v3407_v18, -inf }
0x1220   : > { %v3042_v63 = vpop.f32.mrb[64].mxu0 }
0x1221   : > { %v4876_v22 = vpop.f32.mrb[65].mxu0 }
0x1223   : > { %v3412_v1 = vpop.f32.mrb[52].mxu1 }
0x1224   : > { %v3283_v8 = vpop.f32.mrb[66].mxu0  ;;  %v4921_v59 = vpop.f32.mrb[53].mxu1  ;;  %v3422_v26 = vsel %vm1119_vm8, %v3412_v1, -inf }
0x1225   : > { %3300 = vrot.lane.b32.xlu1 %v3283_v8, %s6905_s0  ;;  %v4900_v15 = vpop.f32.mrb[67].mxu0  ;;  %v6612_v8 = vld [vmem:[%s6815_s11 + $0x1] ss:$0 sm:$0xff] }
0x1228   : > { %v6549_v0 = vpop.f32.mrb[68].mxu0 }
0x1229   : > { %v4903_v23 = vpop.f32.mrb[69].mxu0 }
0x122c   : > { %v6552_v24 = vpop.f32.mrb[70].mxu0 }
0x122d   : > { %v4906_v25 = vpop.f32.mrb[71].mxu0 }
0x1230   : > { %v3534_v14 = vpop.f32.mrb[72].mxu0 }
0x1231   : > { %3551 = vrot.lane.b32.xlu0 %v3534_v14, %s6906_s27  ;;  %v4930_v16 = vpop.f32.mrb[73].mxu0  ;;  %v4351_v14 = vld [vmem:[%s6819_s15 + $0x80] sm:$0xff] }
0x1232   : > { %v4352_v16 = vld [vmem:[%s6819_s15 + $0x88] sm:$0xff] }
0x1249   : > { %3420 = vmax.xlane.f32.xlu1 %v3419_v5  ;;  %v5156_v5 = vpack.c.bf16 %v4352_v16, %v4351_v14 }
0x1250   : > { %3423 = vmax.xlane.f32.xlu0 %v3422_v26  ;;  %v4353_v26 = vld [vmem:[%s6819_s15 + $0x90] sm:$0xff] }
0x1262   : > { %v3050_v27 = vpop.permute.xlu0 %3049 }
0x1263   : > { %3058 = vst.msk [vmem:[#allocation2] sm:$0xff] %vm1499_vm10, %v3050_v27  ;;  %v4354_v27 = vld [vmem:[%s6819_s15 + $0x98] sm:$0xff] }
0x1297   : > { %v3301_v28 = vpop.permute.xlu1 %3300 }
0x1298   : > { %3309 = vst.msk [vmem:[#allocation2] sm:$0xff] %vm1752_vm11, %v3301_v28  ;;  %v5159_v28 = vpack.c.bf16 %v4354_v27, %v4353_v26 }
0x12a3   : > { %v3552_v29 = vpop.permute.xlu0 %3551 }
0x12a4   : > { %3560 = vst.msk [vmem:[#allocation2] sm:$0xff] %vm2005_vm12, %v3552_v29  ;;  %v4355_v29 = vld [vmem:[%s6819_s15 + $0xa0] sm:$0xff] }
0x12ab   : > { %v3563_v30 = vld [vmem:[#allocation2] sm:$0xff] }
0x12ac   : > { %4946 = vmatmul.mubr.msk.f32.vlgmr.msra.gmra.mrb[54].mxu1 %vm785_vm2, %v3563_v30  ;;  %v4356_v30 = vld [vmem:[%s6819_s15 + $0xa8] sm:$0xff] }
0x12ad   : > { %4948 = vmatprep.mubr.msk.f32.mxu1 %vm5542_vm0, %v5543_v6  ;;  %5157 = vmatpush3.bf16.msra.mxu1 %v5156_v5 }
0x12ae   : > { %5158 = vmatprep.subr.bf16.mxu1 %v5541_v3 }
0x12b1   : > { %5160 = vmatpush3.bf16.msra.mxu1 %v5159_v28 }
0x12b2   : > { %5161 = vmatprep.subr.bf16.mxu1 %v5541_v3 }
0x12d6   : > { %v3421_v31 = vpop.xlane.xlu1 %3420 }
0x12d7   : > { %v3426_v32 = vsub.f32 %v3407_v18, %v3421_v31  ;;  %v5162_v31 = vpack.c.bf16 %v4356_v30, %v4355_v29 }
0x12d9   : > { %v3430_v34 = vmul.f32 1.442695, %v3426_v32  ;;  %5163 = vmatpush3.bf16.msra.mxu1 %v5162_v31  ;;  %v4357_v32 = vld [vmem:[%s6819_s15 + $0xb0] sm:$0xff] }
0x12da   : > { %5164 = vmatprep.subr.bf16.mxu1 %v5541_v3 }
0x12db   : > { %5449 = vpow2.f32 %v3430_v34  ;;  %v4358_v34 = vld [vmem:[%s6819_s15 + $0xb8] sm:$0xff] }
0x12dd   : > { %v3424_v39 = vpop.xlane.xlu0 %3423 }
0x12de   : > { %v3427_v60 = vsub.f32 %v3412_v1, %v3424_v39  ;;  %v4360_v39 = vld [vmem:[%s6819_s15 + $0xc8] sm:$0xff] }
0x12e0   : > { %v3432_v62 = vmul.f32 1.442695, %v3427_v60 }
0x12e5   : > { %v5450_v35 = vpop.eup %5449 }
0x12e6   : > { %v3437_v36 = vsel %vm1112_vm7, %v5450_v35, 0.0 }
0x12e7   : > { %3438 = vadd.xlane.f32.xlu1 %v3437_v36  ;;  %v4359_v36 = vld [vmem:[%s6819_s15 + $0xc0] sm:$0xff] }
0x12e8   : > { %v5168_v60 = vpack.c.bf16 %v4360_v39, %v4359_v36 }
0x1374   : > { %v3439_v37 = vpop.xlane.xlu1 %3438 }
0x1375   : > { %5451 = vrcp.f32 %v3439_v37  ;;  %v4361_v37 = vld [vmem:[%s6819_s15 + $0xd0] sm:$0xff] }
0x1376   : > { %5453 = vpow2.f32 %v3432_v62  ;;  %v4362_v62 = vld [vmem:[%s6819_s15 + $0xd8] sm:$0xff] }
0x137f   : > { %v5452_v11 = vpop.eup %5451  ;;  %v3654_v41 = vpop.f32.mrb[54].mxu1 }
0x1380   : > { %v3655_v33 = vadd.f32 %v6567_v40, %v3654_v41  ;;  %v4947_v42 = vpop.f32.mrb[55].mxu1  ;;  %v3447_v44 = vmul.f32 %v5452_v11, %v5450_v35  ;;  %v5454_v47 = vpop.eup %5453  ;;  %v5165_v35 = vpack.c.bf16 %v4358_v34, %v4357_v32  ;;  %v5171_v11 = vpack.c.bf16 %v4362_v62, %v4361_v37  ;;  %v4363_v41 = vld [vmem:[%s6819_s15 + $0xe0] sm:$0xff]  ;;  %v3980_v37 = vld [vmem:[%s6823_s19 + $0x8] sm:$0xff] }
0x1381   : > { %v3440_v48 = vsel %vm1119_vm8, %v5454_v47, 0.0 }
0x1382   : > { %v6571_v45 = vadd.f32 %v3655_v33, %v6249_v57  ;;  %4932 = vmatmul.mubr.msk.f32.gmra.mrb[74].mxu0 %vm1112_vm7, %v3447_v44  ;;  %5166 = vmatpush3.bf16.msra.mxu1 %v5165_v35  ;;  %v4364_v33 = vld [vmem:[%s6819_s15 + $0xe8] sm:$0xff]  ;;  %v4365_v44 = vld [vmem:[%s6819_s15 + $0xf0] sm:$0xff] }
0x1383   : > { %4934 = vmatprep.mubr.msk.f32.mxu0 %vm5542_vm0, %v5543_v6  ;;  %5167 = vmatprep.subr.bf16.mxu1 %v5541_v3  ;;  %v5174_v42 = vpack.c.bf16 %v4364_v33, %v4363_v41  ;;  %v3982_v41 = vld [vmem:[%s6823_s19 + $0x18] sm:$0xff] }
0x1384   : > { %v3675_v38 = vsel %vm785_vm2, %v6571_v45, 0.0 }
0x1385   : > { %3676 = vadd.xlane.f32.xlu0 %v3675_v38  ;;  %v4366_v38 = vld [vmem:[%s6819_s15 + $0xf8] sm:$0xff] }
0x1386   : > { %5169 = vmatpush3.bf16.msra.mxu1 %v5168_v60  ;;  %v3979_v60 = vld [vmem:[%s6823_s19] sm:$0xff] }
0x1387   : > { %5170 = vmatprep.subr.bf16.mxu1 %v5541_v3  ;;  %v5180_v62 = vpack.c.bf16 %v3980_v37, %v3979_v60 }
0x1389   : > { %3441 = vadd.xlane.f32.xlu0 %v3440_v48 }
0x138a   : > { %5172 = vmatpush3.bf16.msra.mxu1 %v5171_v11  ;;  %v3981_v11 = vld [vmem:[%s6823_s19 + $0x10] sm:$0xff] }
0x138b   : > { %5173 = vmatprep.subr.bf16.mxu1 %v5541_v3  ;;  %v5183_v33 = vpack.c.bf16 %v3982_v41, %v3981_v11 }
0x138e   : > { %5175 = vmatpush3.bf16.msra.mxu1 %v5174_v42 }
0x138f   : > { %5176 = vmatprep.subr.bf16.mxu1 %v5541_v3 }
0x139f   : > { %3051 = vrot.lane.b32.xlu0 %v6533_v12, %s6893_s26  ;;  %v4341_v12 = vld [vmem:[%s6817_s13 + $0x30] sm:$0xff] }
0x13a0   : > { %v5153_v19 = vpack.c.bf16 %v4342_v13, %v4341_v12 }
0x13a2   : > { %5154 = vmatpush3.bf16.msra.mxu0 %v5153_v19 }
0x13a3   : > { %3053 = vrot.lane.b32.xlu0 %v3042_v63, %s6893_s26  ;;  %5179 = vmatprep.subr.bf16.mxu0 %v5541_v3  ;;  %s675_s26 = scalar_lea.vmem [#allocation3], %s674_s25 }
0x13a4   : > { %s4148_s1 = sshll.u32 %s675_s26, 4  ;;  %s6764_s1 = int_to_ptr.vmem [resolvable:$true] %s4148_s1 }
0x13a5   : > { %s5477_s3 = scalar_lea.vmem %s6764_s1, 16  ;;  %p5484_p0 = scmp.lt.s32.totalorder %s6764_s1, %s5482_s24 }
0x13a6   : > { %p5478_p11 = scmp.ne.s32.totalorder %s6764_s1, %s5477_s3  ;;  %p5485_p1 = scmp.lt.s32.totalorder %s5483_s7, %s5477_s3 }
0x13a8   : > { %p5479_p12 = pnand %p5478_p11, %p5712_p5  ;;  %p5486_p2 = por %p5485_p1, %p5484_p0 }
0x13aa   : > { %p5480_p13 = pneg %p5479_p12 }
0x13ac   : > { %p5487_p3 = pnand %p5486_p2, %p5480_p13 }
0x1412   : > { %v3677_v57 = vpop.xlane.xlu0 %3676 }
0x1413   : > { %v3684_v49 = vmul.f32 0.03125, %v3677_v57 }
0x1415   : > { %v3687_v43 = vsub.f32 %v6571_v45, %v3684_v49  ;;  %v6692_v49 = vld [vmem:[%s6818_s14 + $0x1] ss:$0 sm:$0xff] }
0x1416   : > { %v3442_v51 = vpop.xlane.xlu0 %3441 }
0x1417   : > { %5455 = vrcp.f32 %v3442_v51  ;;  %v3690_v52 = vmul.f32 %v3687_v43, %v3687_v43 }
0x1419   : > { %v3693_v46 = vsel %vm785_vm2, %v3690_v52, 0.0 }
0x141a   : > { %3694 = vadd.xlane.f32.xlu1 %v3693_v46  ;;  %v3052_v54 = vpop.permute.xlu0 %3051 }
0x141b   : > { %3059 = vst.msk [vmem:[#allocation2 + $0x8] sm:$0xff] %vm1499_vm10, %v3052_v54 }
0x141e   : > { %v3054_v50 = vpop.permute.xlu0 %3053 }
0x141f   : > { %3060 = vst.msk [vmem:[#allocation2 + $0x10] sm:$0x1] %vm1502_vm13, %v3054_v50 }
0x1421   : > { %v5456_v55 = vpop.eup %5455 }
0x1422   : > { %v3448_v56 = vmul.f32 %v5456_v55, %v5454_v47  ;;  %v5177_v47 = vpack.c.bf16 %v4366_v38, %v4365_v44 }
0x1424   : > { %4935 = vmatmul.mubr.msk.f32.gmra.mrb[76].mxu0 %vm1112_vm7, %v3448_v56  ;;  %5178 = vmatpush3.bf16.msra.mxu1 %v5177_v47 }
0x1425   : > { %4962 = vmatprep.mubr.msk.f32.mxu0 %vm5542_vm0, %v5543_v6 }
0x142b   : > { %3302 = vrot.lane.b32.xlu1 %v6549_v0, %s6905_s0 }
0x1455   : > { %v3539_v58 = vpop.f32.mrb[74].mxu0 }
0x1456   : > { %3553 = vrot.lane.b32.xlu1 %v3539_v58, %s6906_s27  ;;  %v4933_v20 = vpop.f32.mrb[75].mxu0 }
0x145a   : > { %3304 = vrot.lane.b32.xlu1 %v6552_v24, %s6905_s0  ;;  %s6762_s0 = scalar_lea.hbm %s6826_s22, %s4371_s5 }
0x14a7   : > { %v3695_v18 = vpop.xlane.xlu1 %3694 }
0x14a8   : > { %v3702_v21 = vmul.f32 0.03125, %v3695_v18 }
0x14aa   : > { %v3705_v63 = vadd.f32 1e-05, %v3702_v21 }
0x14ab   : > { %v3303_v22 = vpop.permute.xlu1 %3302 }
0x14ac   : > { %5457 = vrsqrt.f32 %v3705_v63  ;;  %3310 = vst.msk [vmem:[#allocation2 + $0x8] sm:$0xff] %vm1752_vm11, %v3303_v22 }
0x14b6   : > { %v5458_v1 = vpop.eup %5457 }
0x14b7   : > { %v3711_v59 = vmul.f32 %v5458_v1, %v3687_v43 }
0x14b9   : > { %v3720_v9 = vmul.f32 %v6612_v8, %v3711_v59 }
0x14bb   : > { %v3729_v15 = vadd.f32 %v6617_v2, %v3720_v9 }
0x14bd   : > { %4963 = vmatmul.mubr.msk.f32.vlgmr.msra.gmra.mrb[78].mxu0 %vm785_vm2, %v3729_v15  ;;  %v4368_v15 = vld [vmem:[%s6820_s16 + $0x1] ss:$0 sm:$0xff] }
0x14be   : > { %4965 = vmatprep.mubr.msk.f32.mxu0 %vm5542_vm0, %v5543_v6  ;;  %5181 = vmatpush3.bf16.msra.mxu0 %v5180_v62 }
0x14bf   : > { %5182 = vmatprep.subr.bf16.mxu0 %v5541_v3 }
0x14c2   : > { %5184 = vmatpush3.bf16.msra.mxu0 %v5183_v33 }
0x14c3   : > { %5185 = vmatprep.subr.bf16.mxu0 %v5541_v3 }
0x14c8   : > { %v3554_v17 = vpop.permute.xlu1 %3553 }
0x14c9   : > { %3561 = vst.msk [vmem:[#allocation2 + $0x8] sm:$0xff] %vm2005_vm12, %v3554_v17 }
0x14cc   : > { %v3305_v0 = vpop.permute.xlu1 %3304 }
0x14cd   : > { %3311 = vst.msk [vmem:[#allocation2 + $0x10] sm:$0x1] %vm1755_vm14, %v3305_v0 }
0x14d0   : > { %v3564_v23 = vld [vmem:[#allocation2 + $0x8] sm:$0xff] }
0x14d1   : > { %4949 = vmatmul.mubr.msk.f32.gmra.mrb[56].mxu1 %vm785_vm2, %v3564_v23 }
0x14d2   : > { %4951 = vmatprep.mubr.msk.f32.mxu1 %vm5542_vm0, %v5543_v6 }
0x14f7   : > { %v3544_v24 = vpop.f32.mrb[76].mxu0 }
0x14f8   : > { %3555 = vrot.lane.b32.xlu0 %v3544_v24, %s6906_s27  ;;  %v4936_v25 = vpop.f32.mrb[77].mxu0 }
0x156a   : > { %v3556_v48 = vpop.permute.xlu0 %3555 }
0x156b   : > { %3562 = vst.msk [vmem:[#allocation2 + $0x10] sm:$0x1] %vm2008_vm15, %v3556_v48 }
0x1572   : > { %v3565_v57 = vld [vmem:[#allocation2 + $0x10] sm:$0x1] }
0x1573   : > { %4952 = vmatmul.mubr.msk.f32.gmra.mrb[58].mxu1 %vm785_vm2, %v3565_v57 }
0x1574   : > { %5003 = vmatprep.mubr.msk.f32.mxu1 %vm5542_vm0, %v5543_v6 }
0x1590   : > { %v3820_v43 = vpop.f32.mrb[78].mxu0 }
0x1591   : > { %v3821_v51 = vadd.f32 %v6692_v49, %v3820_v43  ;;  %v4964_v52 = vpop.f32.mrb[79].mxu0 }
0x1593   : > { %v4348_v46 = vmul.f32 -1.702, %v3821_v51 }
0x1595   : > { %v3840_v54 = vmul.f32 1.442695, %v4348_v46 }
0x1597   : > { %5459 = vpow2.f32 %v3840_v54 }
0x15a1   : > { %v5460_v50 = vpop.eup %5459 }
0x15a2   : > { %v3846_v55 = vadd.f32 1.0, %v5460_v50 }
0x15a4   : > { %5461 = vrcp.f32 %v3846_v55  ;;  %v3659_v56 = vpop.f32.mrb[56].mxu1 }
0x15a5   : > { %v3660_v61 = vadd.f32 %v6567_v40, %v3659_v56  ;;  %v4950_v4 = vpop.f32.mrb[57].mxu1 }
0x15a6   : > { %v3963_v4 = vld [vmem:[%s6822_s18] sm:$0x1] }
0x15a7   : > { %v3669_v53 = vadd.f32 %v3660_v61, %v6254_v7 }
0x15a9   : > { %v3678_v12 = vsel %vm785_vm2, %v3669_v53, 0.0 }
0x15aa   : > { %3679 = vadd.xlane.f32.xlu1 %v3678_v12 }
0x15ae   : > { %v5462_v13 = vpop.eup %5461 }
0x15af   : > { %v3855_v19 = vmul.f32 %v5462_v13, %v3821_v51 }
0x15b1   : > { %5004 = vmatmul.mubr.f32.vlgmr.msra.gmra.mrb[60].mxu1 %v3855_v19 }
0x15b2   : > { %5006 = vmatprep.mubr.msk.f32.mxu1 %vm5542_vm0, %v5543_v6 }
0x1637   : > { %v3680_v58 = vpop.xlane.xlu1 %3679 }
0x1638   : > { %v3685_v20 = vmul.f32 0.03125, %v3680_v58 }
0x163a   : > { %v3688_v18 = vsub.f32 %v3669_v53, %v3685_v20 }
0x163c   : > { %v3691_v21 = vmul.f32 %v3688_v18, %v3688_v18 }
0x163e   : > { %v3696_v63 = vsel %vm785_vm2, %v3691_v21, 0.0  ;;  %v4057_v21 = vld [vmem:[%s6824_s20 + $0x8] sm:$0xff] }
0x163f   : > { %3697 = vadd.xlane.f32.xlu1 %v3696_v63 }
0x1646   : > { %v3664_v22 = vpop.f32.mrb[58].mxu1 }
0x1647   : > { %v3665_v1 = vadd.f32 %v6567_v40, %v3664_v22  ;;  %v4953_v7 = vpop.f32.mrb[59].mxu1 }
0x1649   : > { %v3670_v59 = vadd.f32 %v3665_v1, %v6259_v10 }
0x164b   : > { %v3681_v9 = vsel %vm792_vm3, %v3670_v59, 0.0 }
0x164c   : > { %3682 = vadd.xlane.f32.xlu0 %v3681_v9 }
0x1684   : > { %v3949_v17 = vpop.f32.mrb[60].mxu1 }
0x1685   : > { %v3950_v0 = vadd.f32 %v4368_v15, %v3949_v17  ;;  %v5005_v23 = vpop.f32.mrb[61].mxu1 }
0x1687   : > { %v3961_v24 = vadd.f32 %v3950_v0, %v6571_v45 }
0x1689   : > { %v3964_v25 = vsel %vm792_vm3, %v3961_v24, 0.0 }
0x168a   : > { %3965 = vadd.xlane.f32.xlu0 %v3964_v25 }
0x16cc   : > { %v3698_v14 = vpop.xlane.xlu1 %3697 }
0x16cd   : > { %v3703_v40 = vmul.f32 0.03125, %v3698_v14 }
0x16cf   : > { %v3706_v16 = vadd.f32 1e-05, %v3703_v40 }
0x16d1   : > { %5463 = vrsqrt.f32 %v3706_v16  ;;  %v4058_v16 = vld [vmem:[%s6825_s21] sm:$0x1] }
0x16d9   : > { %v3683_v10 = vpop.xlane.xlu0 %3682 }
0x16da   : > { %v3686_v5 = vmul.f32 0.03125, %v3683_v10 }
0x16db   : > { %v5464_v26 = vpop.eup %5463 }
0x16dc   : > { %v3689_v27 = vsub.f32 %v3670_v59, %v3686_v5  ;;  %v3712_v28 = vmul.f32 %v5464_v26, %v3688_v18  ;;  %v4056_v18 = vld [vmem:[%s6824_s20] sm:$0xff] }
0x16dd   : > { %v5186_v63 = vpack.c.bf16 %v4057_v21, %v4056_v18 }
0x16de   : > { %v3692_v29 = vmul.f32 %v3689_v27, %v3689_v27  ;;  %v3721_v30 = vmul.f32 %v6612_v8, %v3712_v28 }
0x16e0   : > { %v3699_v31 = vsel %vm792_vm3, %v3692_v29, 0.0  ;;  %v3730_v32 = vadd.f32 %v6617_v2, %v3721_v30 }
0x16e1   : > { %3700 = vadd.xlane.f32.xlu0 %v3699_v31 }
0x16e2   : > { %4966 = vmatmul.mubr.msk.f32.gmra.mrb[80].mxu0 %vm785_vm2, %v3730_v32 }
0x16e3   : > { %4968 = vmatprep.mubr.msk.f32.mxu0 %vm5542_vm0, %v5543_v6 }
0x1717   : > { %v3966_v45 = vpop.xlane.xlu0 %3965 }
0x1718   : > { %v3967_v34 = vmul.f32 0.03125, %v3966_v45 }
0x171a   : > { %v3968_v35 = vsub.f32 %v3961_v24, %v3967_v34 }
0x171c   : > { %v3969_v36 = vmul.f32 %v3968_v35, %v3968_v35 }
0x171e   : > { %v3970_v39 = vsel %vm792_vm3, %v3969_v36, 0.0 }
0x171f   : > { %3971 = vadd.xlane.f32.xlu1 %v3970_v39 }
0x176e   : > { %v3701_v42 = vpop.xlane.xlu0 %3700 }
0x176f   : > { %v3704_v44 = vmul.f32 0.03125, %v3701_v42 }
0x1771   : > { %v3707_v38 = vadd.f32 1e-05, %v3704_v44 }
0x1773   : > { %5465 = vrsqrt.f32 %v3707_v38 }
0x177d   : > { %v5466_v47 = vpop.eup %5465 }
0x177e   : > { %v3713_v48 = vmul.f32 %v5466_v47, %v3689_v27 }
0x1780   : > { %v3722_v57 = vmul.f32 %v6612_v8, %v3713_v48  ;;  %v3962_v8 = vld [vmem:[%s6821_s17] sm:$0x1] }
0x1782   : > { %v3731_v43 = vadd.f32 %v6617_v2, %v3722_v57 }
0x1784   : > { %4969 = vmatmul.mubr.msk.f32.gmra.mrb[82].mxu0 %vm785_vm2, %v3731_v43 }
0x1785   : > { %5020 = vmatprep.mubr.msk.f32.mxu0 %vm5542_vm0, %v5543_v6 }
0x17ac   : > { %v3972_v51 = vpop.xlane.xlu1 %3971 }
0x17ad   : > { %v3973_v52 = vmul.f32 0.03125, %v3972_v51 }
0x17af   : > { %v3974_v46 = vadd.f32 1e-05, %v3973_v52 }
0x17b1   : > { %5467 = vrsqrt.f32 %v3974_v46 }
0x17b5   : > { %v3825_v3 = vpop.f32.mrb[80].mxu0 }
0x17b6   : > { %v3826_v54 = vadd.f32 %v6692_v49, %v3825_v3  ;;  %v4967_v50 = vpop.f32.mrb[81].mxu0 }
0x17b8   : > { %v4349_v55 = vmul.f32 -1.702, %v3826_v54 }
0x17ba   : > { %v3842_v56 = vmul.f32 1.442695, %v4349_v55 }
0x17bb   : > { %v5468_v61 = vpop.eup %5467 }
0x17bc   : > { %v3976_v2 = vmul.f32 %v5468_v61, %v3968_v35  ;;  %5469 = vpow2.f32 %v3842_v56 }
0x17be   : > { %v3977_v53 = vmul.f32 %v3976_v2, %v3962_v8 }
0x17c0   : > { %v3978_v12 = vadd.f32 %v3977_v53, %v3963_v4 }
0x17c2   : > { %5021 = vmatmul.mubr.msk.f32.vlgmr.msra.gmra.mrb[84].mxu0 %vm785_vm2, %v3978_v12 }
0x17c3   : > { %5027 = vmatprep.mubr.msk.f32.mxu0 %vm5542_vm0, %v5543_v6  ;;  %5187 = vmatpush3.bf16.msra.mxu0 %v5186_v63 }
0x17c6   : > { %v5470_v13 = vpop.eup %5469 }
0x17c7   : > { %v3847_v19 = vadd.f32 1.0, %v5470_v13 }
0x17c9   : > { %5471 = vrcp.f32 %v3847_v19 }
0x17d3   : > { %v5472_v58 = vpop.eup %5471 }
0x17d4   : > { %v3856_v20 = vmul.f32 %v5472_v58, %v3826_v54 }
0x17d6   : > { %5007 = vmatmul.mubr.f32.gmra.mrb[62].mxu1 %v3856_v20 }
0x17d7   : > { %5009 = vmatprep.mubr.msk.f32.mxu1 %vm5542_vm0, %v5543_v6  ;;  %vm4059_vm0 = vcmask 130048  }
0x1857   : > { %v3830_v22 = vpop.f32.mrb[82].mxu0 }
0x1858   : > { %v3831_v1 = vadd.f32 %v6692_v49, %v3830_v22  ;;  %v4970_v7 = vpop.f32.mrb[83].mxu0 }
0x185a   : > { %v4350_v59 = vmul.f32 -1.702, %v3831_v1 }
0x185c   : > { %v3844_v9 = vmul.f32 1.442695, %v4350_v59 }
0x185e   : > { %5473 = vpow2.f32 %v3844_v9 }
0x1868   : > { %v5474_v15 = vpop.eup %5473 }
0x1869   : > { %v3848_v6 = vadd.f32 1.0, %v5474_v15 }
0x186b   : > { %5475 = vrcp.f32 %v3848_v6 }
0x1875   : > { %v5476_v17 = vpop.eup %5475 }
0x1876   : > { %v3857_v0 = vmul.f32 %v5476_v17, %v3831_v1 }
0x1878   : > { %5010 = vmatmul.mubr.f32.gmra.mrb[64].mxu1 %v3857_v0 }
0x1895   : > { %v4052_v23 = vpop.f32.mrb[84].mxu0 }
0x1896   : > { %v5022_v24 = vpop.f32.mrb[85].mxu0  ;;  %5028 = vmatmul.mubr.msk.f32.vlgmr.msra.gmra.mrb[86].mxu0 %vm4059_vm0, %v4052_v23 }
0x18a9   : > { %v3954_v25 = vpop.f32.mrb[62].mxu1 }
0x18aa   : > { %v5008_v14 = vpop.f32.mrb[63].mxu1 }
0x194b   : > { %v3958_v40 = vpop.f32.mrb[64].mxu1 }
0x194c   : > { %v5011_v49 = vpop.f32.mrb[65].mxu1 }
0x1969   : > { %v4129_v10 = vpop.f32.mrb[86].mxu0 }
0x196a   : > { %v4130_v5 = vadd.f32 %v4129_v10, %v4058_v16  ;;  %v5029_v26 = vpop.f32.mrb[87].mxu0 }
0x196c   : > { %4134 = vst.msk [vmem:[%s675_s26] sm:$0x1] %vm4133_vm1, %v4130_v5 }
0x196d   : > { %5490 = shalt.err (!%p5487_p3)
}
0x196e   : > { %s5491_s25 = scalar_lea.hbm %s6762_s0, 16  ;;  %s5495_s27 = scalar_lea.hbm %s6826_s22, 32 }
0x196f   : > { %p5492_p4 = scmp.ne.s32.totalorder %s6762_s0, %s5491_s25  ;;  %p5496_p9 = scmp.lt.u32.totalorder %s6762_s0, %s6826_s22 }
0x1970   : > { %p5497_p10 = scmp.lt.u32.totalorder %s5495_s27, %s5491_s25  ;;  %p5499_p12 = scmp.lt.u32.totalorder %s5491_s25, %s6762_s0 }
0x1971   : > { %p5493_p7 = pnand %p5492_p4, %p5712_p5 }
0x1972   : > { %p5498_p11 = por %p5497_p10, %p5496_p9 }
0x1973   : > { %p5494_p8 = pneg %p5493_p7 }
0x1974   : > { %p5500_p13 = por %p5499_p12, %p5498_p11 }
0x1976   : > { %p5501_p0 = pnand %p5500_p13, %p5494_p8 }
0x1978   : > { %5504 = shalt.err (!%p5501_p0)
}
0x1979   : > { %5189 = dma.vmem_to_hbm [thread:$0]  (%p5712_p5), %s6764_s1, 16, %s6762_s0, %s4136_s29  }
0x197a PF: > { %s6907_s7 = sld [smem:[#allocation6_spill]]  ;;  %p5195_p1 = scmp.ge.s32.totalorder %s5539_s30, 2 }
0x197c   : > { %p5192_p2 = pnand %p5195_p1, %p5716_p6 }
0x1980   : > { %s4160_s24 = sand.u32 1, %s6907_s7  }
0x1981   : > { %s4161_s5 = scalar_lea.sflag [#allocation4], %s4160_s24 }
0x1982   : > { %5522 = dma.done.wait (!%p5192_p2), %s4161_s5, 16  }
0x1983   : > { %5524 = vsyncadd (!%p5192_p2), %s4161_s5, 4294967280  ;;  %s6909_s30 = sld [smem:[#allocation8_spill]]  ;;  %s6910_s25 = sld [smem:[#allocation7_spill]] }
0x1984   : > { %s6911_s29 = sld [smem:[#allocation9_spill]]  ;;  %s6912_s3 = smov %s5531_s28 }
0x1989   : > { %p32_p3 = scmp.ge.s32.totalorder %s6909_s30, 4   ;;  %s6913_s28 = smov %s6910_s25 }
0x198b   :  { %34 = sbr.rel (!%p32_p3) target bundleno = 12 (0xc), region = 155 }
0x1992   :  { %4165 = vsyncpa [#allocation4], 1 }
0x1993   :  { %4167 = vsyncpa [#allocation4 + $0x1], 1 }

</bundles_post_ra>
